<compile_context>
chip_gen: v7x
topology: tpu7x:2x2x1
jax: 0.10.0
libtpu: 0.0.40
codegen_flags: <defaults>
</compile_context>

<pallas_src>
import functools

import jax
import jax.numpy as jnp
from jax.experimental import pallas as pl
from jax.experimental.pallas import tpu as pltpu


def _round_up(x, m):
    return ((x + m - 1) // m) * m


# ---------------------------------------------------------------------------
# Fused GRU stack: all layers + all timesteps in one kernel (no grid).
# Gate order follows PyTorch: [r, z, n], laid out on Hp-aligned lane blocks.
# ---------------------------------------------------------------------------
def _gru_stack_kernel(x_ref, wih_ref, whh_ref, bgi_ref, bgh_ref, out_ref,
                      seq_scr, gi_scr, h_scr, *, num_layers, seq_len, Bp, Hp):
    # x_ref   : ((T+1)*Bp, Dp)      padded input sequence (time-major, flattened)
    # wih_ref : (L, Dp, 3*Hp)       padded, pre-transposed W_ih
    # whh_ref : (L, Hp, 3*Hp)       padded, pre-transposed W_hh
    # bgi_ref : (L, 1, 3*Hp)        b_ih with b_hh(r,z) folded in
    # bgh_ref : (L, 1, 3*Hp)        [0, 0, b_hh_n]
    # out_ref : ((T+1)*Bp, Hp)      last layer hidden sequence
    seq_scr[...] = x_ref[...]
    unroll = seq_len <= 16

    for layer in range(num_layers):            # static unroll over layers
        # Hoisted input-to-hidden projection over the WHOLE sequence (one big
        # lane-dense MXU matmul instead of one tiny matmul per timestep).
        gi_scr[...] = (
            jnp.dot(seq_scr[...], wih_ref[layer],
                    preferred_element_type=jnp.float32)
            + bgi_ref[layer])

        h_scr[...] = jnp.zeros_like(h_scr)
        w_hh = whh_ref[layer]                  # (Hp, 3Hp) loaded once per layer
        b_gh = bgh_ref[layer]                  # (1, 3Hp)
        is_last = layer == num_layers - 1

        def step(t, carry, w_hh=w_hh, b_gh=b_gh, is_last=is_last):
            h = h_scr[...]                                           # (Bp, Hp)
            gh = jnp.dot(h, w_hh, preferred_element_type=jnp.float32) + b_gh
            row = pl.multiple_of(t * Bp, Bp)
            gi = gi_scr[pl.ds(row, Bp), :]                           # (Bp, 3Hp)
            # Gate slices are 128-lane aligned (Hp % 128 == 0) -> free views.
            r = jax.nn.sigmoid(gi[:, 0:Hp] + gh[:, 0:Hp])
            z = jax.nn.sigmoid(gi[:, Hp:2 * Hp] + gh[:, Hp:2 * Hp])
            n = jnp.tanh(gi[:, 2 * Hp:3 * Hp] + r * gh[:, 2 * Hp:3 * Hp])
            h_new = (1.0 - z) * n + z * h
            h_scr[...] = h_new
            if is_last:
                out_ref[pl.ds(row, Bp), :] = h_new                   # lane-dense
            else:
                seq_scr[pl.ds(row, Bp), 0:Hp] = h_new                # next layer's input
            return carry

        jax.lax.fori_loop(0, seq_len, step, 0, unroll=unroll)


def gru_stack(x2d, wih_stack, whh_stack, bgi_stack, bgh_stack,
              *, num_layers, seq_len, Bp, Hp, Dp):
    n_rows = seq_len * Bp
    kernel = functools.partial(_gru_stack_kernel, num_layers=num_layers,
                               seq_len=seq_len, Bp=Bp, Hp=Hp)
    return pl.pallas_call(
        kernel,
        out_shape=jax.ShapeDtypeStruct((n_rows, Hp), jnp.float32),
        scratch_shapes=[
            pltpu.VMEM((n_rows, Dp), jnp.float32),      # current layer's input seq
            pltpu.VMEM((n_rows, 3 * Hp), jnp.float32),  # hoisted gi for all t
            pltpu.VMEM((Bp, Hp), jnp.float32),          # recurrent hidden state
        ],
    )(x2d, wih_stack, whh_stack, bgi_stack, bgh_stack)


# ---------------------------------------------------------------------------
# Final Linear projection, tiled over the vocab dimension (lane-dense blocks).
# ---------------------------------------------------------------------------
def _linear_kernel(h_ref, w_ref, b_ref, out_ref):
    out_ref[...] = (
        jnp.dot(h_ref[...], w_ref[...], preferred_element_type=jnp.float32)
        + b_ref[...])


def linear_vocab(h2d, w_p, b_p, *, block_v=512):
    n_rows, Hp = h2d.shape
    Vp = w_p.shape[1]
    bv = min(block_v, Vp)
    nv = pl.cdiv(Vp, bv)
    return pl.pallas_call(
        _linear_kernel,
        out_shape=jax.ShapeDtypeStruct((n_rows, Vp), jnp.float32),
        grid=(nv,),
        in_specs=[
            pl.BlockSpec((n_rows, Hp), lambda j: (0, 0)),   # activations resident
            pl.BlockSpec((Hp, bv), lambda j: (0, j)),        # vocab-tiled weight
            pl.BlockSpec((1, bv), lambda j: (0, j)),
        ],
        out_specs=pl.BlockSpec((n_rows, bv), lambda j: (0, j)),
        compiler_params=pltpu.CompilerParams(
            dimension_semantics=("parallel",)),
    )(h2d, w_p, b_p)


# ---------------------------------------------------------------------------
# One-time parameter preparation: transpose + pad to lane/sublane-dense layout.
# ---------------------------------------------------------------------------
def prepare_params(params, embed_size, hidden_size, vocab_size):
    H = hidden_size
    Hp = _round_up(H, 128)
    Ep = _round_up(embed_size, 128)
    Dp = max(Ep, Hp)
    Vp = _round_up(vocab_size, 128)

    def pad_gate_w(w, in_p):
        # w: (3H, in) PyTorch layout -> (in_p, 3*Hp), transposed, gate blocks
        # aligned to Hp lane boundaries, zero padding elsewhere.
        in_dim = w.shape[1]
        out = jnp.zeros((in_p, 3 * Hp), jnp.float32)
        for g in range(3):
            out = out.at[:in_dim, g * Hp:g * Hp + H].set(w[g * H:(g + 1) * H, :].T)
        return out

    def pad_gate_b(b):
        out = jnp.zeros((3 * Hp,), jnp.float32)
        for g in range(3):
            out = out.at[g * Hp:g * Hp + H].set(b[g * H:(g + 1) * H])
        return out

    wih_l, whh_l, bgi_l, bgh_l = [], [], [], []
    for (w_ih, w_hh, b_ih, b_hh) in params["gru"]:
        wih_l.append(pad_gate_w(w_ih, Dp))
        whh_l.append(pad_gate_w(w_hh, Hp))
        # Fold b_hh's r/z parts into the hoisted input bias; only the n-gate
        # hidden bias must stay inside the recurrence (it is gated by r).
        bgi = jnp.concatenate([b_ih[:H] + b_hh[:H],
                               b_ih[H:2 * H] + b_hh[H:2 * H],
                               b_ih[2 * H:]])
        bgh = jnp.concatenate([jnp.zeros((2 * H,), jnp.float32), b_hh[2 * H:]])
        bgi_l.append(pad_gate_b(bgi).reshape(1, 3 * Hp))
        bgh_l.append(pad_gate_b(bgh).reshape(1, 3 * Hp))

    embed_p = jnp.zeros((vocab_size, Dp), jnp.float32)
    embed_p = embed_p.at[:, :embed_size].set(params["embed"])

    lin_w_p = jnp.zeros((Hp, Vp), jnp.float32)
    lin_w_p = lin_w_p.at[:H, :vocab_size].set(params["lin_w"].T)
    lin_b_p = jnp.zeros((1, Vp), jnp.float32)
    lin_b_p = lin_b_p.at[0, :vocab_size].set(params["lin_b"])

    return {
        "embed_p": embed_p,
        "wih": jnp.stack(wih_l), "whh": jnp.stack(whh_l),
        "bgi": jnp.stack(bgi_l), "bgh": jnp.stack(bgh_l),
        "lin_w": lin_w_p, "lin_b": lin_b_p,
        "Dp": Dp, "Hp": Hp, "Vp": Vp,
        "E": embed_size, "H": H, "V": vocab_size,
        "num_layers": len(params["gru"]),
    }


# ---------------------------------------------------------------------------
# Full DecoderRNN forward.
# ---------------------------------------------------------------------------
def decoder_rnn_forward(features, captions, prep):
    """features: (B, E) f32; captions: (T, B) i32 -> (T+1, B, vocab) f32."""
    T, B = captions.shape
    Dp, Hp, Vp = prep["Dp"], prep["Hp"], prep["Vp"]
    Bp = _round_up(B, 8)
    T1 = T + 1

    # Embedding gather + Dropout(0.5)->identity (eval mode); glue ops in XLA.
    emb = jnp.take(prep["embed_p"], captions, axis=0)                # (T, B, Dp)
    feat = jnp.zeros((1, B, Dp), jnp.float32).at[0, :, :prep["E"]].set(features)
    x = jnp.concatenate([feat, emb], axis=0)                         # (T+1, B, Dp)
    x = jnp.pad(x, ((0, 0), (0, Bp - B), (0, 0)))                    # sublane-pad batch
    x2d = x.reshape(T1 * Bp, Dp)

    h2d = gru_stack(x2d, prep["wih"], prep["whh"], prep["bgi"], prep["bgh"],
                    num_layers=prep["num_layers"], seq_len=T1,
                    Bp=Bp, Hp=Hp, Dp=Dp)                             # (T1*Bp, Hp)

    out = linear_vocab(h2d, prep["lin_w"], prep["lin_b"])            # (T1*Bp, Vp)
    return out.reshape(T1, Bp, Vp)[:, :B, :prep["V"]]


# ---------------------------------------------------------------------------
# Pure-JAX reference (unpadded) for sanity check.
# ---------------------------------------------------------------------------
def decoder_rnn_ref(features, captions, params):
    x = jnp.take(params["embed"], captions, axis=0)
    x = jnp.concatenate([features[None, :, :], x], axis=0)
    for (w_ih, w_hh, b_ih, b_hh) in params["gru"]:
        H = w_hh.shape[1]

        def step(h, x_t):
            gi = x_t @ w_ih.T + b_ih
            gh = h @ w_hh.T + b_hh
            r = jax.nn.sigmoid(gi[:, :H] + gh[:, :H])
            z = jax.nn.sigmoid(gi[:, H:2 * H] + gh[:, H:2 * H])
            n = jnp.tanh(gi[:, 2 * H:] + r * gh[:, 2 * H:])
            h_new = (1.0 - z) * n + z * h
            return h_new, h_new

        h0 = jnp.zeros((x.shape[1], H), jnp.float32)
        _, x = jax.lax.scan(step, h0, x)
    return x @ params["lin_w"].T + params["lin_b"]


# ---------------------------------------------------------------------------
# Deterministic parameter init (PyTorch-style shapes / scales).
# ---------------------------------------------------------------------------
def init_params(key, embed_size, hidden_size, vocab_size, num_layers):
    keys = jax.random.split(key, 2 + 4 * num_layers + 2)
    k = 1.0 / jnp.sqrt(hidden_size)
    params = {"embed": jax.random.normal(keys[0], (vocab_size, embed_size),
                                         jnp.float32)}
    gru, idx = [], 1
    for l in range(num_layers):
        in_sz = embed_size if l == 0 else hidden_size
        w_ih = jax.random.uniform(keys[idx + 0], (3 * hidden_size, in_sz),
                                  jnp.float32, -k, k)
        w_hh = jax.random.uniform(keys[idx + 1], (3 * hidden_size, hidden_size),
                                  jnp.float32, -k, k)
        b_ih = jax.random.uniform(keys[idx + 2], (3 * hidden_size,),
                                  jnp.float32, -k, k)
        b_hh = jax.random.uniform(keys[idx + 3], (3 * hidden_size,),
                                  jnp.float32, -k, k)
        gru.append((w_ih, w_hh, b_ih, b_hh))
        idx += 4
    params["gru"] = gru
    params["lin_w"] = jax.random.uniform(keys[idx], (vocab_size, hidden_size),
                                         jnp.float32, -k, k)
    params["lin_b"] = jax.random.uniform(keys[idx + 1], (vocab_size,),
                                         jnp.float32, -k, k)
    return params


if __name__ == "__main__":
    embed_size, hidden_size, vocab_size, num_layers = 32, 32, 40, 2
    seq_len, batch = 8, 2

    key = jax.random.PRNGKey(0)
    k_param, k_feat, k_cap = jax.random.split(key, 3)

    params = init_params(k_param, embed_size, hidden_size, vocab_size, num_layers)
    prep = prepare_params(params, embed_size, hidden_size, vocab_size)

    features = jax.random.normal(k_feat, (batch, embed_size), jnp.float32)
    captions = jax.random.randint(k_cap, (seq_len, batch), 0, vocab_size,
                                  dtype=jnp.int32)

    out = decoder_rnn_forward(features, captions, prep)
    out = jax.block_until_ready(out)

    ref = jax.block_until_ready(decoder_rnn_ref(features, captions, params))
    assert out.shape == (seq_len + 1, batch, vocab_size), out.shape
    err = float(jnp.max(jnp.abs(out - ref)))
    assert err < 1e-4, err

    print("KERNEL_OK")
</pallas_src>

<mosaic_0001>
module attributes {stable_mosaic.version = 11 : i64} {
  func.func @_gru_stack_kernel(%arg0: memref<72x128xf32, #tpu.memory_space<vmem>>, %arg1: memref<2x128x384xf32, #tpu.memory_space<vmem>>, %arg2: memref<2x128x384xf32, #tpu.memory_space<vmem>>, %arg3: memref<2x1x384xf32, #tpu.memory_space<vmem>>, %arg4: memref<2x1x384xf32, #tpu.memory_space<vmem>>, %arg5: memref<72x128xf32, #tpu.memory_space<vmem>>, %arg6: memref<72x128xf32, #tpu.memory_space<vmem>>, %arg7: memref<72x384xf32, #tpu.memory_space<vmem>>, %arg8: memref<8x128xf32, #tpu.memory_space<vmem>>) attributes {dimension_semantics = [], scalar_prefetch = 0 : i64, scratch_operands = 3 : i64, tpu.core_type = #tpu.core_type<tc>} {
    %c0 = arith.constant 0 : index
    %c0_0 = arith.constant 0 : index
    %0 = vector.load %arg0[%c0, %c0_0] : memref<72x128xf32, #tpu.memory_space<vmem>>, vector<72x128xf32>
    %c0_1 = arith.constant 0 : index
    %c0_2 = arith.constant 0 : index
    %1 = vector.load %arg6[%c0_1, %c0_2] : memref<72x128xf32, #tpu.memory_space<vmem>>, vector<72x128xf32>
    tpu.vector_store %arg6[%c0_1, %c0_2], %0 {strides = array<i32>} : memref<72x128xf32, #tpu.memory_space<vmem>>, vector<72x128xf32>,
    %c0_3 = arith.constant 0 : index
    %c0_4 = arith.constant 0 : index
    %2 = vector.load %arg6[%c0_3, %c0_4] : memref<72x128xf32, #tpu.memory_space<vmem>>, vector<72x128xf32>
    %c0_5 = arith.constant 0 : index
    %c0_6 = arith.constant 0 : index
    %c0_7 = arith.constant 0 : index
    %3 = vector.load %arg1[%c0_5, %c0_6, %c0_7] : memref<2x128x384xf32, #tpu.memory_space<vmem>>, vector<1x128x384xf32>
    %4 = vector.shape_cast %3 : vector<1x128x384xf32> to vector<128x384xf32>
    %cst = arith.constant dense<0.000000e+00> : vector<72x384xf32>
    %5 = tpu.matmul %2, %4, %cst {dimension_numbers = #tpu.dot_dimension_numbers<[1], [0], [0], [1], [0, 0, 1, 1], [], []>} : vector<72x128xf32>, vector<128x384xf32>, vector<72x384xf32> -> vector<72x384xf32>
    %c0_8 = arith.constant 0 : index
    %c0_9 = arith.constant 0 : index
    %c0_10 = arith.constant 0 : index
    %6 = vector.load %arg3[%c0_8, %c0_9, %c0_10] : memref<2x1x384xf32, #tpu.memory_space<vmem>>, vector<1x1x384xf32>
    %7 = vector.shape_cast %6 : vector<1x1x384xf32> to vector<1x384xf32>
    %8 = vector.broadcast %7 : vector<1x384xf32> to vector<72x384xf32>
    %9 = arith.addf %5, %8 : vector<72x384xf32>
    %c0_11 = arith.constant 0 : index
    %c0_12 = arith.constant 0 : index
    %10 = vector.load %arg7[%c0_11, %c0_12] : memref<72x384xf32, #tpu.memory_space<vmem>>, vector<72x384xf32>
    tpu.vector_store %arg7[%c0_11, %c0_12], %9 {strides = array<i32>} : memref<72x384xf32, #tpu.memory_space<vmem>>, vector<72x384xf32>,
    %cst_13 = arith.constant 0.000000e+00 : f32
    %11 = vector.broadcast %cst_13 : f32 to vector<8x128xf32>
    %c0_14 = arith.constant 0 : index
    %c0_15 = arith.constant 0 : index
    %12 = vector.load %arg8[%c0_14, %c0_15] : memref<8x128xf32, #tpu.memory_space<vmem>>, vector<8x128xf32>
    tpu.vector_store %arg8[%c0_14, %c0_15], %11 {strides = array<i32>} : memref<8x128xf32, #tpu.memory_space<vmem>>, vector<8x128xf32>,
    %c0_16 = arith.constant 0 : index
    %c0_17 = arith.constant 0 : index
    %c0_18 = arith.constant 0 : index
    %13 = vector.load %arg2[%c0_16, %c0_17, %c0_18] : memref<2x128x384xf32, #tpu.memory_space<vmem>>, vector<1x128x384xf32>
    %14 = vector.shape_cast %13 : vector<1x128x384xf32> to vector<128x384xf32>
    %c0_19 = arith.constant 0 : index
    %c0_20 = arith.constant 0 : index
    %c0_21 = arith.constant 0 : index
    %15 = vector.load %arg4[%c0_19, %c0_20, %c0_21] : memref<2x1x384xf32, #tpu.memory_space<vmem>>, vector<1x1x384xf32>
    %16 = vector.shape_cast %15 : vector<1x1x384xf32> to vector<1x384xf32>
    %c0_i32 = arith.constant 0 : i32
    %c0_22 = arith.constant 0 : index
    %c0_23 = arith.constant 0 : index
    %17 = vector.load %arg8[%c0_22, %c0_23] : memref<8x128xf32, #tpu.memory_space<vmem>>, vector<8x128xf32>
    %cst_24 = arith.constant dense<0.000000e+00> : vector<8x384xf32>
    %18 = tpu.matmul %17, %14, %cst_24 {dimension_numbers = #tpu.dot_dimension_numbers<[1], [0], [0], [1], [0, 0, 1, 1], [], []>} : vector<8x128xf32>, vector<128x384xf32>, vector<8x384xf32> -> vector<8x384xf32>
    %19 = vector.broadcast %16 : vector<1x384xf32> to vector<8x384xf32>
    %20 = arith.addf %18, %19 : vector<8x384xf32>
    %c8_i32 = arith.constant 8 : i32
    %21 = arith.muli %c0_i32, %c8_i32 : i32
    %22 = tpu.assume_multiple %21, 8 : i32
    %23 = arith.index_cast %22 : i32 to index
    %c0_25 = arith.constant 0 : index
    %24 = vector.load %arg7[%23, %c0_25] : memref<72x384xf32, #tpu.memory_space<vmem>>, vector<8x384xf32>
    %25 = vector.extract_strided_slice %24 {offsets = [0, 0], sizes = [8, 128], strides = [1, 1]} : vector<8x384xf32> to vector<8x128xf32>
    %26 = vector.extract_strided_slice %20 {offsets = [0, 0], sizes = [8, 128], strides = [1, 1]} : vector<8x384xf32> to vector<8x128xf32>
    %27 = arith.addf %25, %26 : vector<8x128xf32>
    %28 = arith.negf %27 : vector<8x128xf32>
    %29 = math.exp %28 : vector<8x128xf32>
    %cst_26 = arith.constant 1.000000e+00 : f32
    %30 = vector.broadcast %cst_26 : f32 to vector<8x128xf32>
    %31 = arith.addf %30, %29 : vector<8x128xf32>
    %32 = arith.divf %30, %31 : vector<8x128xf32>
    %33 = vector.extract_strided_slice %24 {offsets = [0, 128], sizes = [8, 128], strides = [1, 1]} : vector<8x384xf32> to vector<8x128xf32>
    %34 = vector.extract_strided_slice %20 {offsets = [0, 128], sizes = [8, 128], strides = [1, 1]} : vector<8x384xf32> to vector<8x128xf32>
    %35 = arith.addf %33, %34 : vector<8x128xf32>
    %36 = arith.negf %35 : vector<8x128xf32>
    %37 = math.exp %36 : vector<8x128xf32>
    %cst_27 = arith.constant 1.000000e+00 : f32
    %38 = vector.broadcast %cst_27 : f32 to vector<8x128xf32>
    %39 = arith.addf %38, %37 : vector<8x128xf32>
    %40 = arith.divf %38, %39 : vector<8x128xf32>
    %41 = vector.extract_strided_slice %24 {offsets = [0, 256], sizes = [8, 128], strides = [1, 1]} : vector<8x384xf32> to vector<8x128xf32>
    %42 = vector.extract_strided_slice %20 {offsets = [0, 256], sizes = [8, 128], strides = [1, 1]} : vector<8x384xf32> to vector<8x128xf32>
    %43 = arith.mulf %32, %42 : vector<8x128xf32>
    %44 = arith.addf %41, %43 : vector<8x128xf32>
    %45 = math.tanh %44 : vector<8x128xf32>
    %cst_28 = arith.constant 1.000000e+00 : f32
    %46 = vector.broadcast %cst_28 : f32 to vector<8x128xf32>
    %47 = arith.subf %46, %40 : vector<8x128xf32>
    %48 = arith.mulf %47, %45 : vector<8x128xf32>
    %49 = arith.mulf %40, %17 : vector<8x128xf32>
    %50 = arith.addf %48, %49 : vector<8x128xf32>
    %c0_29 = arith.constant 0 : index
    %c0_30 = arith.constant 0 : index
    %51 = vector.load %arg8[%c0_29, %c0_30] : memref<8x128xf32, #tpu.memory_space<vmem>>, vector<8x128xf32>
    tpu.vector_store %arg8[%c0_29, %c0_30], %50 {strides = array<i32>} : memref<8x128xf32, #tpu.memory_space<vmem>>, vector<8x128xf32>,
    %52 = arith.index_cast %22 : i32 to index
    %c0_31 = arith.constant 0 : index
    %53 = vector.load %arg6[%52, %c0_31] : memref<72x128xf32, #tpu.memory_space<vmem>>, vector<8x128xf32>
    tpu.vector_store %arg6[%52, %c0_31], %50 {strides = array<i32>} : memref<72x128xf32, #tpu.memory_space<vmem>>, vector<8x128xf32>,
    %c1_i32 = arith.constant 1 : i32
    %c0_32 = arith.constant 0 : index
    %c0_33 = arith.constant 0 : index
    %54 = vector.load %arg8[%c0_32, %c0_33] : memref<8x128xf32, #tpu.memory_space<vmem>>, vector<8x128xf32>
    %cst_34 = arith.constant dense<0.000000e+00> : vector<8x384xf32>
    %55 = tpu.matmul %54, %14, %cst_34 {dimension_numbers = #tpu.dot_dimension_numbers<[1], [0], [0], [1], [0, 0, 1, 1], [], []>} : vector<8x128xf32>, vector<128x384xf32>, vector<8x384xf32> -> vector<8x384xf32>
    %56 = vector.broadcast %16 : vector<1x384xf32> to vector<8x384xf32>
    %57 = arith.addf %55, %56 : vector<8x384xf32>
    %c8_i32_35 = arith.constant 8 : i32
    %58 = arith.muli %c1_i32, %c8_i32_35 : i32
    %59 = tpu.assume_multiple %58, 8 : i32
    %60 = arith.index_cast %59 : i32 to index
    %c0_36 = arith.constant 0 : index
    %61 = vector.load %arg7[%60, %c0_36] : memref<72x384xf32, #tpu.memory_space<vmem>>, vector<8x384xf32>
    %62 = vector.extract_strided_slice %61 {offsets = [0, 0], sizes = [8, 128], strides = [1, 1]} : vector<8x384xf32> to vector<8x128xf32>
    %63 = vector.extract_strided_slice %57 {offsets = [0, 0], sizes = [8, 128], strides = [1, 1]} : vector<8x384xf32> to vector<8x128xf32>
    %64 = arith.addf %62, %63 : vector<8x128xf32>
    %65 = arith.negf %64 : vector<8x128xf32>
    %66 = math.exp %65 : vector<8x128xf32>
    %cst_37 = arith.constant 1.000000e+00 : f32
    %67 = vector.broadcast %cst_37 : f32 to vector<8x128xf32>
    %68 = arith.addf %67, %66 : vector<8x128xf32>
    %69 = arith.divf %67, %68 : vector<8x128xf32>
    %70 = vector.extract_strided_slice %61 {offsets = [0, 128], sizes = [8, 128], strides = [1, 1]} : vector<8x384xf32> to vector<8x128xf32>
    %71 = vector.extract_strided_slice %57 {offsets = [0, 128], sizes = [8, 128], strides = [1, 1]} : vector<8x384xf32> to vector<8x128xf32>
    %72 = arith.addf %70, %71 : vector<8x128xf32>
    %73 = arith.negf %72 : vector<8x128xf32>
    %74 = math.exp %73 : vector<8x128xf32>
    %cst_38 = arith.constant 1.000000e+00 : f32
    %75 = vector.broadcast %cst_38 : f32 to vector<8x128xf32>
    %76 = arith.addf %75, %74 : vector<8x128xf32>
    %77 = arith.divf %75, %76 : vector<8x128xf32>
    %78 = vector.extract_strided_slice %61 {offsets = [0, 256], sizes = [8, 128], strides = [1, 1]} : vector<8x384xf32> to vector<8x128xf32>
    %79 = vector.extract_strided_slice %57 {offsets = [0, 256], sizes = [8, 128], strides = [1, 1]} : vector<8x384xf32> to vector<8x128xf32>
    %80 = arith.mulf %69, %79 : vector<8x128xf32>
    %81 = arith.addf %78, %80 : vector<8x128xf32>
    %82 = math.tanh %81 : vector<8x128xf32>
    %cst_39 = arith.constant 1.000000e+00 : f32
    %83 = vector.broadcast %cst_39 : f32 to vector<8x128xf32>
    %84 = arith.subf %83, %77 : vector<8x128xf32>
    %85 = arith.mulf %84, %82 : vector<8x128xf32>
    %86 = arith.mulf %77, %54 : vector<8x128xf32>
    %87 = arith.addf %85, %86 : vector<8x128xf32>
    %c0_40 = arith.constant 0 : index
    %c0_41 = arith.constant 0 : index
    %88 = vector.load %arg8[%c0_40, %c0_41] : memref<8x128xf32, #tpu.memory_space<vmem>>, vector<8x128xf32>
    tpu.vector_store %arg8[%c0_40, %c0_41], %87 {strides = array<i32>} : memref<8x128xf32, #tpu.memory_space<vmem>>, vector<8x128xf32>,
    %89 = arith.index_cast %59 : i32 to index
    %c0_42 = arith.constant 0 : index
    %90 = vector.load %arg6[%89, %c0_42] : memref<72x128xf32, #tpu.memory_space<vmem>>, vector<8x128xf32>
    tpu.vector_store %arg6[%89, %c0_42], %87 {strides = array<i32>} : memref<72x128xf32, #tpu.memory_space<vmem>>, vector<8x128xf32>,
    %c2_i32 = arith.constant 2 : i32
    %c0_43 = arith.constant 0 : index
    %c0_44 = arith.constant 0 : index
    %91 = vector.load %arg8[%c0_43, %c0_44] : memref<8x128xf32, #tpu.memory_space<vmem>>, vector<8x128xf32>
    %cst_45 = arith.constant dense<0.000000e+00> : vector<8x384xf32>
    %92 = tpu.matmul %91, %14, %cst_45 {dimension_numbers = #tpu.dot_dimension_numbers<[1], [0], [0], [1], [0, 0, 1, 1], [], []>} : vector<8x128xf32>, vector<128x384xf32>, vector<8x384xf32> -> vector<8x384xf32>
    %93 = vector.broadcast %16 : vector<1x384xf32> to vector<8x384xf32>
    %94 = arith.addf %92, %93 : vector<8x384xf32>
    %c8_i32_46 = arith.constant 8 : i32
    %95 = arith.muli %c2_i32, %c8_i32_46 : i32
    %96 = tpu.assume_multiple %95, 8 : i32
    %97 = arith.index_cast %96 : i32 to index
    %c0_47 = arith.constant 0 : index
    %98 = vector.load %arg7[%97, %c0_47] : memref<72x384xf32, #tpu.memory_space<vmem>>, vector<8x384xf32>
    %99 = vector.extract_strided_slice %98 {offsets = [0, 0], sizes = [8, 128], strides = [1, 1]} : vector<8x384xf32> to vector<8x128xf32>
    %100 = vector.extract_strided_slice %94 {offsets = [0, 0], sizes = [8, 128], strides = [1, 1]} : vector<8x384xf32> to vector<8x128xf32>
    %101 = arith.addf %99, %100 : vector<8x128xf32>
    %102 = arith.negf %101 : vector<8x128xf32>
    %103 = math.exp %102 : vector<8x128xf32>
    %cst_48 = arith.constant 1.000000e+00 : f32
    %104 = vector.broadcast %cst_48 : f32 to vector<8x128xf32>
    %105 = arith.addf %104, %103 : vector<8x128xf32>
    %106 = arith.divf %104, %105 : vector<8x128xf32>
    %107 = vector.extract_strided_slice %98 {offsets = [0, 128], sizes = [8, 128], strides = [1, 1]} : vector<8x384xf32> to vector<8x128xf32>
    %108 = vector.extract_strided_slice %94 {offsets = [0, 128], sizes = [8, 128], strides = [1, 1]} : vector<8x384xf32> to vector<8x128xf32>
    %109 = arith.addf %107, %108 : vector<8x128xf32>
    %110 = arith.negf %109 : vector<8x128xf32>
    %111 = math.exp %110 : vector<8x128xf32>
    %cst_49 = arith.constant 1.000000e+00 : f32
    %112 = vector.broadcast %cst_49 : f32 to vector<8x128xf32>
    %113 = arith.addf %112, %111 : vector<8x128xf32>
    %114 = arith.divf %112, %113 : vector<8x128xf32>
    %115 = vector.extract_strided_slice %98 {offsets = [0, 256], sizes = [8, 128], strides = [1, 1]} : vector<8x384xf32> to vector<8x128xf32>
    %116 = vector.extract_strided_slice %94 {offsets = [0, 256], sizes = [8, 128], strides = [1, 1]} : vector<8x384xf32> to vector<8x128xf32>
    %117 = arith.mulf %106, %116 : vector<8x128xf32>
    %118 = arith.addf %115, %117 : vector<8x128xf32>
    %119 = math.tanh %118 : vector<8x128xf32>
    %cst_50 = arith.constant 1.000000e+00 : f32
    %120 = vector.broadcast %cst_50 : f32 to vector<8x128xf32>
    %121 = arith.subf %120, %114 : vector<8x128xf32>
    %122 = arith.mulf %121, %119 : vector<8x128xf32>
    %123 = arith.mulf %114, %91 : vector<8x128xf32>
    %124 = arith.addf %122, %123 : vector<8x128xf32>
    %c0_51 = arith.constant 0 : index
    %c0_52 = arith.constant 0 : index
    %125 = vector.load %arg8[%c0_51, %c0_52] : memref<8x128xf32, #tpu.memory_space<vmem>>, vector<8x128xf32>
    tpu.vector_store %arg8[%c0_51, %c0_52], %124 {strides = array<i32>} : memref<8x128xf32, #tpu.memory_space<vmem>>, vector<8x128xf32>,
    %126 = arith.index_cast %96 : i32 to index
    %c0_53 = arith.constant 0 : index
    %127 = vector.load %arg6[%126, %c0_53] : memref<72x128xf32, #tpu.memory_space<vmem>>, vector<8x128xf32>
    tpu.vector_store %arg6[%126, %c0_53], %124 {strides = array<i32>} : memref<72x128xf32, #tpu.memory_space<vmem>>, vector<8x128xf32>,
    %c3_i32 = arith.constant 3 : i32
    %c0_54 = arith.constant 0 : index
    %c0_55 = arith.constant 0 : index
    %128 = vector.load %arg8[%c0_54, %c0_55] : memref<8x128xf32, #tpu.memory_space<vmem>>, vector<8x128xf32>
    %cst_56 = arith.constant dense<0.000000e+00> : vector<8x384xf32>
    %129 = tpu.matmul %128, %14, %cst_56 {dimension_numbers = #tpu.dot_dimension_numbers<[1], [0], [0], [1], [0, 0, 1, 1], [], []>} : vector<8x128xf32>, vector<128x384xf32>, vector<8x384xf32> -> vector<8x384xf32>
    %130 = vector.broadcast %16 : vector<1x384xf32> to vector<8x384xf32>
    %131 = arith.addf %129, %130 : vector<8x384xf32>
    %c8_i32_57 = arith.constant 8 : i32
    %132 = arith.muli %c3_i32, %c8_i32_57 : i32
    %133 = tpu.assume_multiple %132, 8 : i32
    %134 = arith.index_cast %133 : i32 to index
    %c0_58 = arith.constant 0 : index
    %135 = vector.load %arg7[%134, %c0_58] : memref<72x384xf32, #tpu.memory_space<vmem>>, vector<8x384xf32>
    %136 = vector.extract_strided_slice %135 {offsets = [0, 0], sizes = [8, 128], strides = [1, 1]} : vector<8x384xf32> to vector<8x128xf32>
    %137 = vector.extract_strided_slice %131 {offsets = [0, 0], sizes = [8, 128], strides = [1, 1]} : vector<8x384xf32> to vector<8x128xf32>
    %138 = arith.addf %136, %137 : vector<8x128xf32>
    %139 = arith.negf %138 : vector<8x128xf32>
    %140 = math.exp %139 : vector<8x128xf32>
    %cst_59 = arith.constant 1.000000e+00 : f32
    %141 = vector.broadcast %cst_59 : f32 to vector<8x128xf32>
    %142 = arith.addf %141, %140 : vector<8x128xf32>
    %143 = arith.divf %141, %142 : vector<8x128xf32>
    %144 = vector.extract_strided_slice %135 {offsets = [0, 128], sizes = [8, 128], strides = [1, 1]} : vector<8x384xf32> to vector<8x128xf32>
    %145 = vector.extract_strided_slice %131 {offsets = [0, 128], sizes = [8, 128], strides = [1, 1]} : vector<8x384xf32> to vector<8x128xf32>
    %146 = arith.addf %144, %145 : vector<8x128xf32>
    %147 = arith.negf %146 : vector<8x128xf32>
    %148 = math.exp %147 : vector<8x128xf32>
    %cst_60 = arith.constant 1.000000e+00 : f32
    %149 = vector.broadcast %cst_60 : f32 to vector<8x128xf32>
    %150 = arith.addf %149, %148 : vector<8x128xf32>
    %151 = arith.divf %149, %150 : vector<8x128xf32>
    %152 = vector.extract_strided_slice %135 {offsets = [0, 256], sizes = [8, 128], strides = [1, 1]} : vector<8x384xf32> to vector<8x128xf32>
    %153 = vector.extract_strided_slice %131 {offsets = [0, 256], sizes = [8, 128], strides = [1, 1]} : vector<8x384xf32> to vector<8x128xf32>
    %154 = arith.mulf %143, %153 : vector<8x128xf32>
    %155 = arith.addf %152, %154 : vector<8x128xf32>
    %156 = math.tanh %155 : vector<8x128xf32>
    %cst_61 = arith.constant 1.000000e+00 : f32
    %157 = vector.broadcast %cst_61 : f32 to vector<8x128xf32>
    %158 = arith.subf %157, %151 : vector<8x128xf32>
    %159 = arith.mulf %158, %156 : vector<8x128xf32>
    %160 = arith.mulf %151, %128 : vector<8x128xf32>
    %161 = arith.addf %159, %160 : vector<8x128xf32>
    %c0_62 = arith.constant 0 : index
    %c0_63 = arith.constant 0 : index
    %162 = vector.load %arg8[%c0_62, %c0_63] : memref<8x128xf32, #tpu.memory_space<vmem>>, vector<8x128xf32>
    tpu.vector_store %arg8[%c0_62, %c0_63], %161 {strides = array<i32>} : memref<8x128xf32, #tpu.memory_space<vmem>>, vector<8x128xf32>,
    %163 = arith.index_cast %133 : i32 to index
    %c0_64 = arith.constant 0 : index
    %164 = vector.load %arg6[%163, %c0_64] : memref<72x128xf32, #tpu.memory_space<vmem>>, vector<8x128xf32>
    tpu.vector_store %arg6[%163, %c0_64], %161 {strides = array<i32>} : memref<72x128xf32, #tpu.memory_space<vmem>>, vector<8x128xf32>,
    %c4_i32 = arith.constant 4 : i32
    %c0_65 = arith.constant 0 : index
    %c0_66 = arith.constant 0 : index
    %165 = vector.load %arg8[%c0_65, %c0_66] : memref<8x128xf32, #tpu.memory_space<vmem>>, vector<8x128xf32>
    %cst_67 = arith.constant dense<0.000000e+00> : vector<8x384xf32>
    %166 = tpu.matmul %165, %14, %cst_67 {dimension_numbers = #tpu.dot_dimension_numbers<[1], [0], [0], [1], [0, 0, 1, 1], [], []>} : vector<8x128xf32>, vector<128x384xf32>, vector<8x384xf32> -> vector<8x384xf32>
    %167 = vector.broadcast %16 : vector<1x384xf32> to vector<8x384xf32>
    %168 = arith.addf %166, %167 : vector<8x384xf32>
    %c8_i32_68 = arith.constant 8 : i32
    %169 = arith.muli %c4_i32, %c8_i32_68 : i32
    %170 = tpu.assume_multiple %169, 8 : i32
    %171 = arith.index_cast %170 : i32 to index
    %c0_69 = arith.constant 0 : index
    %172 = vector.load %arg7[%171, %c0_69] : memref<72x384xf32, #tpu.memory_space<vmem>>, vector<8x384xf32>
    %173 = vector.extract_strided_slice %172 {offsets = [0, 0], sizes = [8, 128], strides = [1, 1]} : vector<8x384xf32> to vector<8x128xf32>
    %174 = vector.extract_strided_slice %168 {offsets = [0, 0], sizes = [8, 128], strides = [1, 1]} : vector<8x384xf32> to vector<8x128xf32>
    %175 = arith.addf %173, %174 : vector<8x128xf32>
    %176 = arith.negf %175 : vector<8x128xf32>
    %177 = math.exp %176 : vector<8x128xf32>
    %cst_70 = arith.constant 1.000000e+00 : f32
    %178 = vector.broadcast %cst_70 : f32 to vector<8x128xf32>
    %179 = arith.addf %178, %177 : vector<8x128xf32>
    %180 = arith.divf %178, %179 : vector<8x128xf32>
    %181 = vector.extract_strided_slice %172 {offsets = [0, 128], sizes = [8, 128], strides = [1, 1]} : vector<8x384xf32> to vector<8x128xf32>
    %182 = vector.extract_strided_slice %168 {offsets = [0, 128], sizes = [8, 128], strides = [1, 1]} : vector<8x384xf32> to vector<8x128xf32>
    %183 = arith.addf %181, %182 : vector<8x128xf32>
    %184 = arith.negf %183 : vector<8x128xf32>
    %185 = math.exp %184 : vector<8x128xf32>
    %cst_71 = arith.constant 1.000000e+00 : f32
    %186 = vector.broadcast %cst_71 : f32 to vector<8x128xf32>
    %187 = arith.addf %186, %185 : vector<8x128xf32>
    %188 = arith.divf %186, %187 : vector<8x128xf32>
    %189 = vector.extract_strided_slice %172 {offsets = [0, 256], sizes = [8, 128], strides = [1, 1]} : vector<8x384xf32> to vector<8x128xf32>
    %190 = vector.extract_strided_slice %168 {offsets = [0, 256], sizes = [8, 128], strides = [1, 1]} : vector<8x384xf32> to vector<8x128xf32>
    %191 = arith.mulf %180, %190 : vector<8x128xf32>
    %192 = arith.addf %189, %191 : vector<8x128xf32>
    %193 = math.tanh %192 : vector<8x128xf32>
    %cst_72 = arith.constant 1.000000e+00 : f32
    %194 = vector.broadcast %cst_72 : f32 to vector<8x128xf32>
    %195 = arith.subf %194, %188 : vector<8x128xf32>
    %196 = arith.mulf %195, %193 : vector<8x128xf32>
    %197 = arith.mulf %188, %165 : vector<8x128xf32>
    %198 = arith.addf %196, %197 : vector<8x128xf32>
    %c0_73 = arith.constant 0 : index
    %c0_74 = arith.constant 0 : index
    %199 = vector.load %arg8[%c0_73, %c0_74] : memref<8x128xf32, #tpu.memory_space<vmem>>, vector<8x128xf32>
    tpu.vector_store %arg8[%c0_73, %c0_74], %198 {strides = array<i32>} : memref<8x128xf32, #tpu.memory_space<vmem>>, vector<8x128xf32>,
    %200 = arith.index_cast %170 : i32 to index
    %c0_75 = arith.constant 0 : index
    %201 = vector.load %arg6[%200, %c0_75] : memref<72x128xf32, #tpu.memory_space<vmem>>, vector<8x128xf32>
    tpu.vector_store %arg6[%200, %c0_75], %198 {strides = array<i32>} : memref<72x128xf32, #tpu.memory_space<vmem>>, vector<8x128xf32>,
    %c5_i32 = arith.constant 5 : i32
    %c0_76 = arith.constant 0 : index
    %c0_77 = arith.constant 0 : index
    %202 = vector.load %arg8[%c0_76, %c0_77] : memref<8x128xf32, #tpu.memory_space<vmem>>, vector<8x128xf32>
    %cst_78 = arith.constant dense<0.000000e+00> : vector<8x384xf32>
    %203 = tpu.matmul %202, %14, %cst_78 {dimension_numbers = #tpu.dot_dimension_numbers<[1], [0], [0], [1], [0, 0, 1, 1], [], []>} : vector<8x128xf32>, vector<128x384xf32>, vector<8x384xf32> -> vector<8x384xf32>
    %204 = vector.broadcast %16 : vector<1x384xf32> to vector<8x384xf32>
    %205 = arith.addf %203, %204 : vector<8x384xf32>
    %c8_i32_79 = arith.constant 8 : i32
    %206 = arith.muli %c5_i32, %c8_i32_79 : i32
    %207 = tpu.assume_multiple %206, 8 : i32
    %208 = arith.index_cast %207 : i32 to index
    %c0_80 = arith.constant 0 : index
    %209 = vector.load %arg7[%208, %c0_80] : memref<72x384xf32, #tpu.memory_space<vmem>>, vector<8x384xf32>
    %210 = vector.extract_strided_slice %209 {offsets = [0, 0], sizes = [8, 128], strides = [1, 1]} : vector<8x384xf32> to vector<8x128xf32>
    %211 = vector.extract_strided_slice %205 {offsets = [0, 0], sizes = [8, 128], strides = [1, 1]} : vector<8x384xf32> to vector<8x128xf32>
    %212 = arith.addf %210, %211 : vector<8x128xf32>
    %213 = arith.negf %212 : vector<8x128xf32>
    %214 = math.exp %213 : vector<8x128xf32>
    %cst_81 = arith.constant 1.000000e+00 : f32
    %215 = vector.broadcast %cst_81 : f32 to vector<8x128xf32>
    %216 = arith.addf %215, %214 : vector<8x128xf32>
    %217 = arith.divf %215, %216 : vector<8x128xf32>
    %218 = vector.extract_strided_slice %209 {offsets = [0, 128], sizes = [8, 128], strides = [1, 1]} : vector<8x384xf32> to vector<8x128xf32>
    %219 = vector.extract_strided_slice %205 {offsets = [0, 128], sizes = [8, 128], strides = [1, 1]} : vector<8x384xf32> to vector<8x128xf32>
    %220 = arith.addf %218, %219 : vector<8x128xf32>
    %221 = arith.negf %220 : vector<8x128xf32>
    %222 = math.exp %221 : vector<8x128xf32>
    %cst_82 = arith.constant 1.000000e+00 : f32
    %223 = vector.broadcast %cst_82 : f32 to vector<8x128xf32>
    %224 = arith.addf %223, %222 : vector<8x128xf32>
    %225 = arith.divf %223, %224 : vector<8x128xf32>
    %226 = vector.extract_strided_slice %209 {offsets = [0, 256], sizes = [8, 128], strides = [1, 1]} : vector<8x384xf32> to vector<8x128xf32>
    %227 = vector.extract_strided_slice %205 {offsets = [0, 256], sizes = [8, 128], strides = [1, 1]} : vector<8x384xf32> to vector<8x128xf32>
    %228 = arith.mulf %217, %227 : vector<8x128xf32>
    %229 = arith.addf %226, %228 : vector<8x128xf32>
    %230 = math.tanh %229 : vector<8x128xf32>
    %cst_83 = arith.constant 1.000000e+00 : f32
    %231 = vector.broadcast %cst_83 : f32 to vector<8x128xf32>
    %232 = arith.subf %231, %225 : vector<8x128xf32>
    %233 = arith.mulf %232, %230 : vector<8x128xf32>
    %234 = arith.mulf %225, %202 : vector<8x128xf32>
    %235 = arith.addf %233, %234 : vector<8x128xf32>
    %c0_84 = arith.constant 0 : index
    %c0_85 = arith.constant 0 : index
    %236 = vector.load %arg8[%c0_84, %c0_85] : memref<8x128xf32, #tpu.memory_space<vmem>>, vector<8x128xf32>
    tpu.vector_store %arg8[%c0_84, %c0_85], %235 {strides = array<i32>} : memref<8x128xf32, #tpu.memory_space<vmem>>, vector<8x128xf32>,
    %237 = arith.index_cast %207 : i32 to index
    %c0_86 = arith.constant 0 : index
    %238 = vector.load %arg6[%237, %c0_86] : memref<72x128xf32, #tpu.memory_space<vmem>>, vector<8x128xf32>
    tpu.vector_store %arg6[%237, %c0_86], %235 {strides = array<i32>} : memref<72x128xf32, #tpu.memory_space<vmem>>, vector<8x128xf32>,
    %c6_i32 = arith.constant 6 : i32
    %c0_87 = arith.constant 0 : index
    %c0_88 = arith.constant 0 : index
    %239 = vector.load %arg8[%c0_87, %c0_88] : memref<8x128xf32, #tpu.memory_space<vmem>>, vector<8x128xf32>
    %cst_89 = arith.constant dense<0.000000e+00> : vector<8x384xf32>
    %240 = tpu.matmul %239, %14, %cst_89 {dimension_numbers = #tpu.dot_dimension_numbers<[1], [0], [0], [1], [0, 0, 1, 1], [], []>} : vector<8x128xf32>, vector<128x384xf32>, vector<8x384xf32> -> vector<8x384xf32>
    %241 = vector.broadcast %16 : vector<1x384xf32> to vector<8x384xf32>
    %242 = arith.addf %240, %241 : vector<8x384xf32>
    %c8_i32_90 = arith.constant 8 : i32
    %243 = arith.muli %c6_i32, %c8_i32_90 : i32
    %244 = tpu.assume_multiple %243, 8 : i32
    %245 = arith.index_cast %244 : i32 to index
    %c0_91 = arith.constant 0 : index
    %246 = vector.load %arg7[%245, %c0_91] : memref<72x384xf32, #tpu.memory_space<vmem>>, vector<8x384xf32>
    %247 = vector.extract_strided_slice %246 {offsets = [0, 0], sizes = [8, 128], strides = [1, 1]} : vector<8x384xf32> to vector<8x128xf32>
    %248 = vector.extract_strided_slice %242 {offsets = [0, 0], sizes = [8, 128], strides = [1, 1]} : vector<8x384xf32> to vector<8x128xf32>
    %249 = arith.addf %247, %248 : vector<8x128xf32>
    %250 = arith.negf %249 : vector<8x128xf32>
    %251 = math.exp %250 : vector<8x128xf32>
    %cst_92 = arith.constant 1.000000e+00 : f32
    %252 = vector.broadcast %cst_92 : f32 to vector<8x128xf32>
    %253 = arith.addf %252, %251 : vector<8x128xf32>
    %254 = arith.divf %252, %253 : vector<8x128xf32>
    %255 = vector.extract_strided_slice %246 {offsets = [0, 128], sizes = [8, 128], strides = [1, 1]} : vector<8x384xf32> to vector<8x128xf32>
    %256 = vector.extract_strided_slice %242 {offsets = [0, 128], sizes = [8, 128], strides = [1, 1]} : vector<8x384xf32> to vector<8x128xf32>
    %257 = arith.addf %255, %256 : vector<8x128xf32>
    %258 = arith.negf %257 : vector<8x128xf32>
    %259 = math.exp %258 : vector<8x128xf32>
    %cst_93 = arith.constant 1.000000e+00 : f32
    %260 = vector.broadcast %cst_93 : f32 to vector<8x128xf32>
    %261 = arith.addf %260, %259 : vector<8x128xf32>
    %262 = arith.divf %260, %261 : vector<8x128xf32>
    %263 = vector.extract_strided_slice %246 {offsets = [0, 256], sizes = [8, 128], strides = [1, 1]} : vector<8x384xf32> to vector<8x128xf32>
    %264 = vector.extract_strided_slice %242 {offsets = [0, 256], sizes = [8, 128], strides = [1, 1]} : vector<8x384xf32> to vector<8x128xf32>
    %265 = arith.mulf %254, %264 : vector<8x128xf32>
    %266 = arith.addf %263, %265 : vector<8x128xf32>
    %267 = math.tanh %266 : vector<8x128xf32>
    %cst_94 = arith.constant 1.000000e+00 : f32
    %268 = vector.broadcast %cst_94 : f32 to vector<8x128xf32>
    %269 = arith.subf %268, %262 : vector<8x128xf32>
    %270 = arith.mulf %269, %267 : vector<8x128xf32>
    %271 = arith.mulf %262, %239 : vector<8x128xf32>
    %272 = arith.addf %270, %271 : vector<8x128xf32>
    %c0_95 = arith.constant 0 : index
    %c0_96 = arith.constant 0 : index
    %273 = vector.load %arg8[%c0_95, %c0_96] : memref<8x128xf32, #tpu.memory_space<vmem>>, vector<8x128xf32>
    tpu.vector_store %arg8[%c0_95, %c0_96], %272 {strides = array<i32>} : memref<8x128xf32, #tpu.memory_space<vmem>>, vector<8x128xf32>,
    %274 = arith.index_cast %244 : i32 to index
    %c0_97 = arith.constant 0 : index
    %275 = vector.load %arg6[%274, %c0_97] : memref<72x128xf32, #tpu.memory_space<vmem>>, vector<8x128xf32>
    tpu.vector_store %arg6[%274, %c0_97], %272 {strides = array<i32>} : memref<72x128xf32, #tpu.memory_space<vmem>>, vector<8x128xf32>,
    %c7_i32 = arith.constant 7 : i32
    %c0_98 = arith.constant 0 : index
    %c0_99 = arith.constant 0 : index
    %276 = vector.load %arg8[%c0_98, %c0_99] : memref<8x128xf32, #tpu.memory_space<vmem>>, vector<8x128xf32>
    %cst_100 = arith.constant dense<0.000000e+00> : vector<8x384xf32>
    %277 = tpu.matmul %276, %14, %cst_100 {dimension_numbers = #tpu.dot_dimension_numbers<[1], [0], [0], [1], [0, 0, 1, 1], [], []>} : vector<8x128xf32>, vector<128x384xf32>, vector<8x384xf32> -> vector<8x384xf32>
    %278 = vector.broadcast %16 : vector<1x384xf32> to vector<8x384xf32>
    %279 = arith.addf %277, %278 : vector<8x384xf32>
    %c8_i32_101 = arith.constant 8 : i32
    %280 = arith.muli %c7_i32, %c8_i32_101 : i32
    %281 = tpu.assume_multiple %280, 8 : i32
    %282 = arith.index_cast %281 : i32 to index
    %c0_102 = arith.constant 0 : index
    %283 = vector.load %arg7[%282, %c0_102] : memref<72x384xf32, #tpu.memory_space<vmem>>, vector<8x384xf32>
    %284 = vector.extract_strided_slice %283 {offsets = [0, 0], sizes = [8, 128], strides = [1, 1]} : vector<8x384xf32> to vector<8x128xf32>
    %285 = vector.extract_strided_slice %279 {offsets = [0, 0], sizes = [8, 128], strides = [1, 1]} : vector<8x384xf32> to vector<8x128xf32>
    %286 = arith.addf %284, %285 : vector<8x128xf32>
    %287 = arith.negf %286 : vector<8x128xf32>
    %288 = math.exp %287 : vector<8x128xf32>
    %cst_103 = arith.constant 1.000000e+00 : f32
    %289 = vector.broadcast %cst_103 : f32 to vector<8x128xf32>
    %290 = arith.addf %289, %288 : vector<8x128xf32>
    %291 = arith.divf %289, %290 : vector<8x128xf32>
    %292 = vector.extract_strided_slice %283 {offsets = [0, 128], sizes = [8, 128], strides = [1, 1]} : vector<8x384xf32> to vector<8x128xf32>
    %293 = vector.extract_strided_slice %279 {offsets = [0, 128], sizes = [8, 128], strides = [1, 1]} : vector<8x384xf32> to vector<8x128xf32>
    %294 = arith.addf %292, %293 : vector<8x128xf32>
    %295 = arith.negf %294 : vector<8x128xf32>
    %296 = math.exp %295 : vector<8x128xf32>
    %cst_104 = arith.constant 1.000000e+00 : f32
    %297 = vector.broadcast %cst_104 : f32 to vector<8x128xf32>
    %298 = arith.addf %297, %296 : vector<8x128xf32>
    %299 = arith.divf %297, %298 : vector<8x128xf32>
    %300 = vector.extract_strided_slice %283 {offsets = [0, 256], sizes = [8, 128], strides = [1, 1]} : vector<8x384xf32> to vector<8x128xf32>
    %301 = vector.extract_strided_slice %279 {offsets = [0, 256], sizes = [8, 128], strides = [1, 1]} : vector<8x384xf32> to vector<8x128xf32>
    %302 = arith.mulf %291, %301 : vector<8x128xf32>
    %303 = arith.addf %300, %302 : vector<8x128xf32>
    %304 = math.tanh %303 : vector<8x128xf32>
    %cst_105 = arith.constant 1.000000e+00 : f32
    %305 = vector.broadcast %cst_105 : f32 to vector<8x128xf32>
    %306 = arith.subf %305, %299 : vector<8x128xf32>
    %307 = arith.mulf %306, %304 : vector<8x128xf32>
    %308 = arith.mulf %299, %276 : vector<8x128xf32>
    %309 = arith.addf %307, %308 : vector<8x128xf32>
    %c0_106 = arith.constant 0 : index
    %c0_107 = arith.constant 0 : index
    %310 = vector.load %arg8[%c0_106, %c0_107] : memref<8x128xf32, #tpu.memory_space<vmem>>, vector<8x128xf32>
    tpu.vector_store %arg8[%c0_106, %c0_107], %309 {strides = array<i32>} : memref<8x128xf32, #tpu.memory_space<vmem>>, vector<8x128xf32>,
    %311 = arith.index_cast %281 : i32 to index
    %c0_108 = arith.constant 0 : index
    %312 = vector.load %arg6[%311, %c0_108] : memref<72x128xf32, #tpu.memory_space<vmem>>, vector<8x128xf32>
    tpu.vector_store %arg6[%311, %c0_108], %309 {strides = array<i32>} : memref<72x128xf32, #tpu.memory_space<vmem>>, vector<8x128xf32>,
    %c8_i32_109 = arith.constant 8 : i32
    %c0_110 = arith.constant 0 : index
    %c0_111 = arith.constant 0 : index
    %313 = vector.load %arg8[%c0_110, %c0_111] : memref<8x128xf32, #tpu.memory_space<vmem>>, vector<8x128xf32>
    %cst_112 = arith.constant dense<0.000000e+00> : vector<8x384xf32>
    %314 = tpu.matmul %313, %14, %cst_112 {dimension_numbers = #tpu.dot_dimension_numbers<[1], [0], [0], [1], [0, 0, 1, 1], [], []>} : vector<8x128xf32>, vector<128x384xf32>, vector<8x384xf32> -> vector<8x384xf32>
    %315 = vector.broadcast %16 : vector<1x384xf32> to vector<8x384xf32>
    %316 = arith.addf %314, %315 : vector<8x384xf32>
    %c8_i32_113 = arith.constant 8 : i32
    %317 = arith.muli %c8_i32_109, %c8_i32_113 : i32
    %318 = tpu.assume_multiple %317, 8 : i32
    %319 = arith.index_cast %318 : i32 to index
    %c0_114 = arith.constant 0 : index
    %320 = vector.load %arg7[%319, %c0_114] : memref<72x384xf32, #tpu.memory_space<vmem>>, vector<8x384xf32>
    %321 = vector.extract_strided_slice %320 {offsets = [0, 0], sizes = [8, 128], strides = [1, 1]} : vector<8x384xf32> to vector<8x128xf32>
    %322 = vector.extract_strided_slice %316 {offsets = [0, 0], sizes = [8, 128], strides = [1, 1]} : vector<8x384xf32> to vector<8x128xf32>
    %323 = arith.addf %321, %322 : vector<8x128xf32>
    %324 = arith.negf %323 : vector<8x128xf32>
    %325 = math.exp %324 : vector<8x128xf32>
    %cst_115 = arith.constant 1.000000e+00 : f32
    %326 = vector.broadcast %cst_115 : f32 to vector<8x128xf32>
    %327 = arith.addf %326, %325 : vector<8x128xf32>
    %328 = arith.divf %326, %327 : vector<8x128xf32>
    %329 = vector.extract_strided_slice %320 {offsets = [0, 128], sizes = [8, 128], strides = [1, 1]} : vector<8x384xf32> to vector<8x128xf32>
    %330 = vector.extract_strided_slice %316 {offsets = [0, 128], sizes = [8, 128], strides = [1, 1]} : vector<8x384xf32> to vector<8x128xf32>
    %331 = arith.addf %329, %330 : vector<8x128xf32>
    %332 = arith.negf %331 : vector<8x128xf32>
    %333 = math.exp %332 : vector<8x128xf32>
    %cst_116 = arith.constant 1.000000e+00 : f32
    %334 = vector.broadcast %cst_116 : f32 to vector<8x128xf32>
    %335 = arith.addf %334, %333 : vector<8x128xf32>
    %336 = arith.divf %334, %335 : vector<8x128xf32>
    %337 = vector.extract_strided_slice %320 {offsets = [0, 256], sizes = [8, 128], strides = [1, 1]} : vector<8x384xf32> to vector<8x128xf32>
    %338 = vector.extract_strided_slice %316 {offsets = [0, 256], sizes = [8, 128], strides = [1, 1]} : vector<8x384xf32> to vector<8x128xf32>
    %339 = arith.mulf %328, %338 : vector<8x128xf32>
    %340 = arith.addf %337, %339 : vector<8x128xf32>
    %341 = math.tanh %340 : vector<8x128xf32>
    %cst_117 = arith.constant 1.000000e+00 : f32
    %342 = vector.broadcast %cst_117 : f32 to vector<8x128xf32>
    %343 = arith.subf %342, %336 : vector<8x128xf32>
    %344 = arith.mulf %343, %341 : vector<8x128xf32>
    %345 = arith.mulf %336, %313 : vector<8x128xf32>
    %346 = arith.addf %344, %345 : vector<8x128xf32>
    %c0_118 = arith.constant 0 : index
    %c0_119 = arith.constant 0 : index
    %347 = vector.load %arg8[%c0_118, %c0_119] : memref<8x128xf32, #tpu.memory_space<vmem>>, vector<8x128xf32>
    tpu.vector_store %arg8[%c0_118, %c0_119], %346 {strides = array<i32>} : memref<8x128xf32, #tpu.memory_space<vmem>>, vector<8x128xf32>,
    %348 = arith.index_cast %318 : i32 to index
    %c0_120 = arith.constant 0 : index
    %349 = vector.load %arg6[%348, %c0_120] : memref<72x128xf32, #tpu.memory_space<vmem>>, vector<8x128xf32>
    tpu.vector_store %arg6[%348, %c0_120], %346 {strides = array<i32>} : memref<72x128xf32, #tpu.memory_space<vmem>>, vector<8x128xf32>,
    %c9_i32 = arith.constant 9 : i32
    %c0_121 = arith.constant 0 : index
    %c0_122 = arith.constant 0 : index
    %350 = vector.load %arg6[%c0_121, %c0_122] : memref<72x128xf32, #tpu.memory_space<vmem>>, vector<72x128xf32>
    %c1 = arith.constant 1 : index
    %c0_123 = arith.constant 0 : index
    %c0_124 = arith.constant 0 : index
    %351 = vector.load %arg1[%c1, %c0_123, %c0_124] : memref<2x128x384xf32, #tpu.memory_space<vmem>>, vector<1x128x384xf32>
    %352 = vector.shape_cast %351 : vector<1x128x384xf32> to vector<128x384xf32>
    %cst_125 = arith.constant dense<0.000000e+00> : vector<72x384xf32>
    %353 = tpu.matmul %350, %352, %cst_125 {dimension_numbers = #tpu.dot_dimension_numbers<[1], [0], [0], [1], [0, 0, 1, 1], [], []>} : vector<72x128xf32>, vector<128x384xf32>, vector<72x384xf32> -> vector<72x384xf32>
    %c1_126 = arith.constant 1 : index
    %c0_127 = arith.constant 0 : index
    %c0_128 = arith.constant 0 : index
    %354 = vector.load %arg3[%c1_126, %c0_127, %c0_128] : memref<2x1x384xf32, #tpu.memory_space<vmem>>, vector<1x1x384xf32>
    %355 = vector.shape_cast %354 : vector<1x1x384xf32> to vector<1x384xf32>
    %356 = vector.broadcast %355 : vector<1x384xf32> to vector<72x384xf32>
    %357 = arith.addf %353, %356 : vector<72x384xf32>
    %c0_129 = arith.constant 0 : index
    %c0_130 = arith.constant 0 : index
    %358 = vector.load %arg7[%c0_129, %c0_130] : memref<72x384xf32, #tpu.memory_space<vmem>>, vector<72x384xf32>
    tpu.vector_store %arg7[%c0_129, %c0_130], %357 {strides = array<i32>} : memref<72x384xf32, #tpu.memory_space<vmem>>, vector<72x384xf32>,
    %cst_131 = arith.constant 0.000000e+00 : f32
    %359 = vector.broadcast %cst_131 : f32 to vector<8x128xf32>
    %c0_132 = arith.constant 0 : index
    %c0_133 = arith.constant 0 : index
    %360 = vector.load %arg8[%c0_132, %c0_133] : memref<8x128xf32, #tpu.memory_space<vmem>>, vector<8x128xf32>
    tpu.vector_store %arg8[%c0_132, %c0_133], %359 {strides = array<i32>} : memref<8x128xf32, #tpu.memory_space<vmem>>, vector<8x128xf32>,
    %c1_134 = arith.constant 1 : index
    %c0_135 = arith.constant 0 : index
    %c0_136 = arith.constant 0 : index
    %361 = vector.load %arg2[%c1_134, %c0_135, %c0_136] : memref<2x128x384xf32, #tpu.memory_space<vmem>>, vector<1x128x384xf32>
    %362 = vector.shape_cast %361 : vector<1x128x384xf32> to vector<128x384xf32>
    %c1_137 = arith.constant 1 : index
    %c0_138 = arith.constant 0 : index
    %c0_139 = arith.constant 0 : index
    %363 = vector.load %arg4[%c1_137, %c0_138, %c0_139] : memref<2x1x384xf32, #tpu.memory_space<vmem>>, vector<1x1x384xf32>
    %364 = vector.shape_cast %363 : vector<1x1x384xf32> to vector<1x384xf32>
    %c0_i32_140 = arith.constant 0 : i32
    %c0_141 = arith.constant 0 : index
    %c0_142 = arith.constant 0 : index
    %365 = vector.load %arg8[%c0_141, %c0_142] : memref<8x128xf32, #tpu.memory_space<vmem>>, vector<8x128xf32>
    %cst_143 = arith.constant dense<0.000000e+00> : vector<8x384xf32>
    %366 = tpu.matmul %365, %362, %cst_143 {dimension_numbers = #tpu.dot_dimension_numbers<[1], [0], [0], [1], [0, 0, 1, 1], [], []>} : vector<8x128xf32>, vector<128x384xf32>, vector<8x384xf32> -> vector<8x384xf32>
    %367 = vector.broadcast %364 : vector<1x384xf32> to vector<8x384xf32>
    %368 = arith.addf %366, %367 : vector<8x384xf32>
    %c8_i32_144 = arith.constant 8 : i32
    %369 = arith.muli %c0_i32_140, %c8_i32_144 : i32
    %370 = tpu.assume_multiple %369, 8 : i32
    %371 = arith.index_cast %370 : i32 to index
    %c0_145 = arith.constant 0 : index
    %372 = vector.load %arg7[%371, %c0_145] : memref<72x384xf32, #tpu.memory_space<vmem>>, vector<8x384xf32>
    %373 = vector.extract_strided_slice %372 {offsets = [0, 0], sizes = [8, 128], strides = [1, 1]} : vector<8x384xf32> to vector<8x128xf32>
    %374 = vector.extract_strided_slice %368 {offsets = [0, 0], sizes = [8, 128], strides = [1, 1]} : vector<8x384xf32> to vector<8x128xf32>
    %375 = arith.addf %373, %374 : vector<8x128xf32>
    %376 = arith.negf %375 : vector<8x128xf32>
    %377 = math.exp %376 : vector<8x128xf32>
    %cst_146 = arith.constant 1.000000e+00 : f32
    %378 = vector.broadcast %cst_146 : f32 to vector<8x128xf32>
    %379 = arith.addf %378, %377 : vector<8x128xf32>
    %380 = arith.divf %378, %379 : vector<8x128xf32>
    %381 = vector.extract_strided_slice %372 {offsets = [0, 128], sizes = [8, 128], strides = [1, 1]} : vector<8x384xf32> to vector<8x128xf32>
    %382 = vector.extract_strided_slice %368 {offsets = [0, 128], sizes = [8, 128], strides = [1, 1]} : vector<8x384xf32> to vector<8x128xf32>
    %383 = arith.addf %381, %382 : vector<8x128xf32>
    %384 = arith.negf %383 : vector<8x128xf32>
    %385 = math.exp %384 : vector<8x128xf32>
    %cst_147 = arith.constant 1.000000e+00 : f32
    %386 = vector.broadcast %cst_147 : f32 to vector<8x128xf32>
    %387 = arith.addf %386, %385 : vector<8x128xf32>
    %388 = arith.divf %386, %387 : vector<8x128xf32>
    %389 = vector.extract_strided_slice %372 {offsets = [0, 256], sizes = [8, 128], strides = [1, 1]} : vector<8x384xf32> to vector<8x128xf32>
    %390 = vector.extract_strided_slice %368 {offsets = [0, 256], sizes = [8, 128], strides = [1, 1]} : vector<8x384xf32> to vector<8x128xf32>
    %391 = arith.mulf %380, %390 : vector<8x128xf32>
    %392 = arith.addf %389, %391 : vector<8x128xf32>
    %393 = math.tanh %392 : vector<8x128xf32>
    %cst_148 = arith.constant 1.000000e+00 : f32
    %394 = vector.broadcast %cst_148 : f32 to vector<8x128xf32>
    %395 = arith.subf %394, %388 : vector<8x128xf32>
    %396 = arith.mulf %395, %393 : vector<8x128xf32>
    %397 = arith.mulf %388, %365 : vector<8x128xf32>
    %398 = arith.addf %396, %397 : vector<8x128xf32>
    %c0_149 = arith.constant 0 : index
    %c0_150 = arith.constant 0 : index
    %399 = vector.load %arg8[%c0_149, %c0_150] : memref<8x128xf32, #tpu.memory_space<vmem>>, vector<8x128xf32>
    tpu.vector_store %arg8[%c0_149, %c0_150], %398 {strides = array<i32>} : memref<8x128xf32, #tpu.memory_space<vmem>>, vector<8x128xf32>,
    %400 = arith.index_cast %370 : i32 to index
    %c0_151 = arith.constant 0 : index
    %401 = vector.load %arg5[%400, %c0_151] : memref<72x128xf32, #tpu.memory_space<vmem>>, vector<8x128xf32>
    tpu.vector_store %arg5[%400, %c0_151], %398 {strides = array<i32>} : memref<72x128xf32, #tpu.memory_space<vmem>>, vector<8x128xf32>,
    %c1_i32_152 = arith.constant 1 : i32
    %c0_153 = arith.constant 0 : index
    %c0_154 = arith.constant 0 : index
    %402 = vector.load %arg8[%c0_153, %c0_154] : memref<8x128xf32, #tpu.memory_space<vmem>>, vector<8x128xf32>
    %cst_155 = arith.constant dense<0.000000e+00> : vector<8x384xf32>
    %403 = tpu.matmul %402, %362, %cst_155 {dimension_numbers = #tpu.dot_dimension_numbers<[1], [0], [0], [1], [0, 0, 1, 1], [], []>} : vector<8x128xf32>, vector<128x384xf32>, vector<8x384xf32> -> vector<8x384xf32>
    %404 = vector.broadcast %364 : vector<1x384xf32> to vector<8x384xf32>
    %405 = arith.addf %403, %404 : vector<8x384xf32>
    %c8_i32_156 = arith.constant 8 : i32
    %406 = arith.muli %c1_i32_152, %c8_i32_156 : i32
    %407 = tpu.assume_multiple %406, 8 : i32
    %408 = arith.index_cast %407 : i32 to index
    %c0_157 = arith.constant 0 : index
    %409 = vector.load %arg7[%408, %c0_157] : memref<72x384xf32, #tpu.memory_space<vmem>>, vector<8x384xf32>
    %410 = vector.extract_strided_slice %409 {offsets = [0, 0], sizes = [8, 128], strides = [1, 1]} : vector<8x384xf32> to vector<8x128xf32>
    %411 = vector.extract_strided_slice %405 {offsets = [0, 0], sizes = [8, 128], strides = [1, 1]} : vector<8x384xf32> to vector<8x128xf32>
    %412 = arith.addf %410, %411 : vector<8x128xf32>
    %413 = arith.negf %412 : vector<8x128xf32>
    %414 = math.exp %413 : vector<8x128xf32>
    %cst_158 = arith.constant 1.000000e+00 : f32
    %415 = vector.broadcast %cst_158 : f32 to vector<8x128xf32>
    %416 = arith.addf %415, %414 : vector<8x128xf32>
    %417 = arith.divf %415, %416 : vector<8x128xf32>
    %418 = vector.extract_strided_slice %409 {offsets = [0, 128], sizes = [8, 128], strides = [1, 1]} : vector<8x384xf32> to vector<8x128xf32>
    %419 = vector.extract_strided_slice %405 {offsets = [0, 128], sizes = [8, 128], strides = [1, 1]} : vector<8x384xf32> to vector<8x128xf32>
    %420 = arith.addf %418, %419 : vector<8x128xf32>
    %421 = arith.negf %420 : vector<8x128xf32>
    %422 = math.exp %421 : vector<8x128xf32>
    %cst_159 = arith.constant 1.000000e+00 : f32
    %423 = vector.broadcast %cst_159 : f32 to vector<8x128xf32>
    %424 = arith.addf %423, %422 : vector<8x128xf32>
    %425 = arith.divf %423, %424 : vector<8x128xf32>
    %426 = vector.extract_strided_slice %409 {offsets = [0, 256], sizes = [8, 128], strides = [1, 1]} : vector<8x384xf32> to vector<8x128xf32>
    %427 = vector.extract_strided_slice %405 {offsets = [0, 256], sizes = [8, 128], strides = [1, 1]} : vector<8x384xf32> to vector<8x128xf32>
    %428 = arith.mulf %417, %427 : vector<8x128xf32>
    %429 = arith.addf %426, %428 : vector<8x128xf32>
    %430 = math.tanh %429 : vector<8x128xf32>
    %cst_160 = arith.constant 1.000000e+00 : f32
    %431 = vector.broadcast %cst_160 : f32 to vector<8x128xf32>
    %432 = arith.subf %431, %425 : vector<8x128xf32>
    %433 = arith.mulf %432, %430 : vector<8x128xf32>
    %434 = arith.mulf %425, %402 : vector<8x128xf32>
    %435 = arith.addf %433, %434 : vector<8x128xf32>
    %c0_161 = arith.constant 0 : index
    %c0_162 = arith.constant 0 : index
    %436 = vector.load %arg8[%c0_161, %c0_162] : memref<8x128xf32, #tpu.memory_space<vmem>>, vector<8x128xf32>
    tpu.vector_store %arg8[%c0_161, %c0_162], %435 {strides = array<i32>} : memref<8x128xf32, #tpu.memory_space<vmem>>, vector<8x128xf32>,
    %437 = arith.index_cast %407 : i32 to index
    %c0_163 = arith.constant 0 : index
    %438 = vector.load %arg5[%437, %c0_163] : memref<72x128xf32, #tpu.memory_space<vmem>>, vector<8x128xf32>
    tpu.vector_store %arg5[%437, %c0_163], %435 {strides = array<i32>} : memref<72x128xf32, #tpu.memory_space<vmem>>, vector<8x128xf32>,
    %c2_i32_164 = arith.constant 2 : i32
    %c0_165 = arith.constant 0 : index
    %c0_166 = arith.constant 0 : index
    %439 = vector.load %arg8[%c0_165, %c0_166] : memref<8x128xf32, #tpu.memory_space<vmem>>, vector<8x128xf32>
    %cst_167 = arith.constant dense<0.000000e+00> : vector<8x384xf32>
    %440 = tpu.matmul %439, %362, %cst_167 {dimension_numbers = #tpu.dot_dimension_numbers<[1], [0], [0], [1], [0, 0, 1, 1], [], []>} : vector<8x128xf32>, vector<128x384xf32>, vector<8x384xf32> -> vector<8x384xf32>
    %441 = vector.broadcast %364 : vector<1x384xf32> to vector<8x384xf32>
    %442 = arith.addf %440, %441 : vector<8x384xf32>
    %c8_i32_168 = arith.constant 8 : i32
    %443 = arith.muli %c2_i32_164, %c8_i32_168 : i32
    %444 = tpu.assume_multiple %443, 8 : i32
    %445 = arith.index_cast %444 : i32 to index
    %c0_169 = arith.constant 0 : index
    %446 = vector.load %arg7[%445, %c0_169] : memref<72x384xf32, #tpu.memory_space<vmem>>, vector<8x384xf32>
    %447 = vector.extract_strided_slice %446 {offsets = [0, 0], sizes = [8, 128], strides = [1, 1]} : vector<8x384xf32> to vector<8x128xf32>
    %448 = vector.extract_strided_slice %442 {offsets = [0, 0], sizes = [8, 128], strides = [1, 1]} : vector<8x384xf32> to vector<8x128xf32>
    %449 = arith.addf %447, %448 : vector<8x128xf32>
    %450 = arith.negf %449 : vector<8x128xf32>
    %451 = math.exp %450 : vector<8x128xf32>
    %cst_170 = arith.constant 1.000000e+00 : f32
    %452 = vector.broadcast %cst_170 : f32 to vector<8x128xf32>
    %453 = arith.addf %452, %451 : vector<8x128xf32>
    %454 = arith.divf %452, %453 : vector<8x128xf32>
    %455 = vector.extract_strided_slice %446 {offsets = [0, 128], sizes = [8, 128], strides = [1, 1]} : vector<8x384xf32> to vector<8x128xf32>
    %456 = vector.extract_strided_slice %442 {offsets = [0, 128], sizes = [8, 128], strides = [1, 1]} : vector<8x384xf32> to vector<8x128xf32>
    %457 = arith.addf %455, %456 : vector<8x128xf32>
    %458 = arith.negf %457 : vector<8x128xf32>
    %459 = math.exp %458 : vector<8x128xf32>
    %cst_171 = arith.constant 1.000000e+00 : f32
    %460 = vector.broadcast %cst_171 : f32 to vector<8x128xf32>
    %461 = arith.addf %460, %459 : vector<8x128xf32>
    %462 = arith.divf %460, %461 : vector<8x128xf32>
    %463 = vector.extract_strided_slice %446 {offsets = [0, 256], sizes = [8, 128], strides = [1, 1]} : vector<8x384xf32> to vector<8x128xf32>
    %464 = vector.extract_strided_slice %442 {offsets = [0, 256], sizes = [8, 128], strides = [1, 1]} : vector<8x384xf32> to vector<8x128xf32>
    %465 = arith.mulf %454, %464 : vector<8x128xf32>
    %466 = arith.addf %463, %465 : vector<8x128xf32>
    %467 = math.tanh %466 : vector<8x128xf32>
    %cst_172 = arith.constant 1.000000e+00 : f32
    %468 = vector.broadcast %cst_172 : f32 to vector<8x128xf32>
    %469 = arith.subf %468, %462 : vector<8x128xf32>
    %470 = arith.mulf %469, %467 : vector<8x128xf32>
    %471 = arith.mulf %462, %439 : vector<8x128xf32>
    %472 = arith.addf %470, %471 : vector<8x128xf32>
    %c0_173 = arith.constant 0 : index
    %c0_174 = arith.constant 0 : index
    %473 = vector.load %arg8[%c0_173, %c0_174] : memref<8x128xf32, #tpu.memory_space<vmem>>, vector<8x128xf32>
    tpu.vector_store %arg8[%c0_173, %c0_174], %472 {strides = array<i32>} : memref<8x128xf32, #tpu.memory_space<vmem>>, vector<8x128xf32>,
    %474 = arith.index_cast %444 : i32 to index
    %c0_175 = arith.constant 0 : index
    %475 = vector.load %arg5[%474, %c0_175] : memref<72x128xf32, #tpu.memory_space<vmem>>, vector<8x128xf32>
    tpu.vector_store %arg5[%474, %c0_175], %472 {strides = array<i32>} : memref<72x128xf32, #tpu.memory_space<vmem>>, vector<8x128xf32>,
    %c3_i32_176 = arith.constant 3 : i32
    %c0_177 = arith.constant 0 : index
    %c0_178 = arith.constant 0 : index
    %476 = vector.load %arg8[%c0_177, %c0_178] : memref<8x128xf32, #tpu.memory_space<vmem>>, vector<8x128xf32>
    %cst_179 = arith.constant dense<0.000000e+00> : vector<8x384xf32>
    %477 = tpu.matmul %476, %362, %cst_179 {dimension_numbers = #tpu.dot_dimension_numbers<[1], [0], [0], [1], [0, 0, 1, 1], [], []>} : vector<8x128xf32>, vector<128x384xf32>, vector<8x384xf32> -> vector<8x384xf32>
    %478 = vector.broadcast %364 : vector<1x384xf32> to vector<8x384xf32>
    %479 = arith.addf %477, %478 : vector<8x384xf32>
    %c8_i32_180 = arith.constant 8 : i32
    %480 = arith.muli %c3_i32_176, %c8_i32_180 : i32
    %481 = tpu.assume_multiple %480, 8 : i32
    %482 = arith.index_cast %481 : i32 to index
    %c0_181 = arith.constant 0 : index
    %483 = vector.load %arg7[%482, %c0_181] : memref<72x384xf32, #tpu.memory_space<vmem>>, vector<8x384xf32>
    %484 = vector.extract_strided_slice %483 {offsets = [0, 0], sizes = [8, 128], strides = [1, 1]} : vector<8x384xf32> to vector<8x128xf32>
    %485 = vector.extract_strided_slice %479 {offsets = [0, 0], sizes = [8, 128], strides = [1, 1]} : vector<8x384xf32> to vector<8x128xf32>
    %486 = arith.addf %484, %485 : vector<8x128xf32>
    %487 = arith.negf %486 : vector<8x128xf32>
    %488 = math.exp %487 : vector<8x128xf32>
    %cst_182 = arith.constant 1.000000e+00 : f32
    %489 = vector.broadcast %cst_182 : f32 to vector<8x128xf32>
    %490 = arith.addf %489, %488 : vector<8x128xf32>
    %491 = arith.divf %489, %490 : vector<8x128xf32>
    %492 = vector.extract_strided_slice %483 {offsets = [0, 128], sizes = [8, 128], strides = [1, 1]} : vector<8x384xf32> to vector<8x128xf32>
    %493 = vector.extract_strided_slice %479 {offsets = [0, 128], sizes = [8, 128], strides = [1, 1]} : vector<8x384xf32> to vector<8x128xf32>
    %494 = arith.addf %492, %493 : vector<8x128xf32>
    %495 = arith.negf %494 : vector<8x128xf32>
    %496 = math.exp %495 : vector<8x128xf32>
    %cst_183 = arith.constant 1.000000e+00 : f32
    %497 = vector.broadcast %cst_183 : f32 to vector<8x128xf32>
    %498 = arith.addf %497, %496 : vector<8x128xf32>
    %499 = arith.divf %497, %498 : vector<8x128xf32>
    %500 = vector.extract_strided_slice %483 {offsets = [0, 256], sizes = [8, 128], strides = [1, 1]} : vector<8x384xf32> to vector<8x128xf32>
    %501 = vector.extract_strided_slice %479 {offsets = [0, 256], sizes = [8, 128], strides = [1, 1]} : vector<8x384xf32> to vector<8x128xf32>
    %502 = arith.mulf %491, %501 : vector<8x128xf32>
    %503 = arith.addf %500, %502 : vector<8x128xf32>
    %504 = math.tanh %503 : vector<8x128xf32>
    %cst_184 = arith.constant 1.000000e+00 : f32
    %505 = vector.broadcast %cst_184 : f32 to vector<8x128xf32>
    %506 = arith.subf %505, %499 : vector<8x128xf32>
    %507 = arith.mulf %506, %504 : vector<8x128xf32>
    %508 = arith.mulf %499, %476 : vector<8x128xf32>
    %509 = arith.addf %507, %508 : vector<8x128xf32>
    %c0_185 = arith.constant 0 : index
    %c0_186 = arith.constant 0 : index
    %510 = vector.load %arg8[%c0_185, %c0_186] : memref<8x128xf32, #tpu.memory_space<vmem>>, vector<8x128xf32>
    tpu.vector_store %arg8[%c0_185, %c0_186], %509 {strides = array<i32>} : memref<8x128xf32, #tpu.memory_space<vmem>>, vector<8x128xf32>,
    %511 = arith.index_cast %481 : i32 to index
    %c0_187 = arith.constant 0 : index
    %512 = vector.load %arg5[%511, %c0_187] : memref<72x128xf32, #tpu.memory_space<vmem>>, vector<8x128xf32>
    tpu.vector_store %arg5[%511, %c0_187], %509 {strides = array<i32>} : memref<72x128xf32, #tpu.memory_space<vmem>>, vector<8x128xf32>,
    %c4_i32_188 = arith.constant 4 : i32
    %c0_189 = arith.constant 0 : index
    %c0_190 = arith.constant 0 : index
    %513 = vector.load %arg8[%c0_189, %c0_190] : memref<8x128xf32, #tpu.memory_space<vmem>>, vector<8x128xf32>
    %cst_191 = arith.constant dense<0.000000e+00> : vector<8x384xf32>
    %514 = tpu.matmul %513, %362, %cst_191 {dimension_numbers = #tpu.dot_dimension_numbers<[1], [0], [0], [1], [0, 0, 1, 1], [], []>} : vector<8x128xf32>, vector<128x384xf32>, vector<8x384xf32> -> vector<8x384xf32>
    %515 = vector.broadcast %364 : vector<1x384xf32> to vector<8x384xf32>
    %516 = arith.addf %514, %515 : vector<8x384xf32>
    %c8_i32_192 = arith.constant 8 : i32
    %517 = arith.muli %c4_i32_188, %c8_i32_192 : i32
    %518 = tpu.assume_multiple %517, 8 : i32
    %519 = arith.index_cast %518 : i32 to index
    %c0_193 = arith.constant 0 : index
    %520 = vector.load %arg7[%519, %c0_193] : memref<72x384xf32, #tpu.memory_space<vmem>>, vector<8x384xf32>
    %521 = vector.extract_strided_slice %520 {offsets = [0, 0], sizes = [8, 128], strides = [1, 1]} : vector<8x384xf32> to vector<8x128xf32>
    %522 = vector.extract_strided_slice %516 {offsets = [0, 0], sizes = [8, 128], strides = [1, 1]} : vector<8x384xf32> to vector<8x128xf32>
    %523 = arith.addf %521, %522 : vector<8x128xf32>
    %524 = arith.negf %523 : vector<8x128xf32>
    %525 = math.exp %524 : vector<8x128xf32>
    %cst_194 = arith.constant 1.000000e+00 : f32
    %526 = vector.broadcast %cst_194 : f32 to vector<8x128xf32>
    %527 = arith.addf %526, %525 : vector<8x128xf32>
    %528 = arith.divf %526, %527 : vector<8x128xf32>
    %529 = vector.extract_strided_slice %520 {offsets = [0, 128], sizes = [8, 128], strides = [1, 1]} : vector<8x384xf32> to vector<8x128xf32>
    %530 = vector.extract_strided_slice %516 {offsets = [0, 128], sizes = [8, 128], strides = [1, 1]} : vector<8x384xf32> to vector<8x128xf32>
    %531 = arith.addf %529, %530 : vector<8x128xf32>
    %532 = arith.negf %531 : vector<8x128xf32>
    %533 = math.exp %532 : vector<8x128xf32>
    %cst_195 = arith.constant 1.000000e+00 : f32
    %534 = vector.broadcast %cst_195 : f32 to vector<8x128xf32>
    %535 = arith.addf %534, %533 : vector<8x128xf32>
    %536 = arith.divf %534, %535 : vector<8x128xf32>
    %537 = vector.extract_strided_slice %520 {offsets = [0, 256], sizes = [8, 128], strides = [1, 1]} : vector<8x384xf32> to vector<8x128xf32>
    %538 = vector.extract_strided_slice %516 {offsets = [0, 256], sizes = [8, 128], strides = [1, 1]} : vector<8x384xf32> to vector<8x128xf32>
    %539 = arith.mulf %528, %538 : vector<8x128xf32>
    %540 = arith.addf %537, %539 : vector<8x128xf32>
    %541 = math.tanh %540 : vector<8x128xf32>
    %cst_196 = arith.constant 1.000000e+00 : f32
    %542 = vector.broadcast %cst_196 : f32 to vector<8x128xf32>
    %543 = arith.subf %542, %536 : vector<8x128xf32>
    %544 = arith.mulf %543, %541 : vector<8x128xf32>
    %545 = arith.mulf %536, %513 : vector<8x128xf32>
    %546 = arith.addf %544, %545 : vector<8x128xf32>
    %c0_197 = arith.constant 0 : index
    %c0_198 = arith.constant 0 : index
    %547 = vector.load %arg8[%c0_197, %c0_198] : memref<8x128xf32, #tpu.memory_space<vmem>>, vector<8x128xf32>
    tpu.vector_store %arg8[%c0_197, %c0_198], %546 {strides = array<i32>} : memref<8x128xf32, #tpu.memory_space<vmem>>, vector<8x128xf32>,
    %548 = arith.index_cast %518 : i32 to index
    %c0_199 = arith.constant 0 : index
    %549 = vector.load %arg5[%548, %c0_199] : memref<72x128xf32, #tpu.memory_space<vmem>>, vector<8x128xf32>
    tpu.vector_store %arg5[%548, %c0_199], %546 {strides = array<i32>} : memref<72x128xf32, #tpu.memory_space<vmem>>, vector<8x128xf32>,
    %c5_i32_200 = arith.constant 5 : i32
    %c0_201 = arith.constant 0 : index
    %c0_202 = arith.constant 0 : index
    %550 = vector.load %arg8[%c0_201, %c0_202] : memref<8x128xf32, #tpu.memory_space<vmem>>, vector<8x128xf32>
    %cst_203 = arith.constant dense<0.000000e+00> : vector<8x384xf32>
    %551 = tpu.matmul %550, %362, %cst_203 {dimension_numbers = #tpu.dot_dimension_numbers<[1], [0], [0], [1], [0, 0, 1, 1], [], []>} : vector<8x128xf32>, vector<128x384xf32>, vector<8x384xf32> -> vector<8x384xf32>
    %552 = vector.broadcast %364 : vector<1x384xf32> to vector<8x384xf32>
    %553 = arith.addf %551, %552 : vector<8x384xf32>
    %c8_i32_204 = arith.constant 8 : i32
    %554 = arith.muli %c5_i32_200, %c8_i32_204 : i32
    %555 = tpu.assume_multiple %554, 8 : i32
    %556 = arith.index_cast %555 : i32 to index
    %c0_205 = arith.constant 0 : index
    %557 = vector.load %arg7[%556, %c0_205] : memref<72x384xf32, #tpu.memory_space<vmem>>, vector<8x384xf32>
    %558 = vector.extract_strided_slice %557 {offsets = [0, 0], sizes = [8, 128], strides = [1, 1]} : vector<8x384xf32> to vector<8x128xf32>
    %559 = vector.extract_strided_slice %553 {offsets = [0, 0], sizes = [8, 128], strides = [1, 1]} : vector<8x384xf32> to vector<8x128xf32>
    %560 = arith.addf %558, %559 : vector<8x128xf32>
    %561 = arith.negf %560 : vector<8x128xf32>
    %562 = math.exp %561 : vector<8x128xf32>
    %cst_206 = arith.constant 1.000000e+00 : f32
    %563 = vector.broadcast %cst_206 : f32 to vector<8x128xf32>
    %564 = arith.addf %563, %562 : vector<8x128xf32>
    %565 = arith.divf %563, %564 : vector<8x128xf32>
    %566 = vector.extract_strided_slice %557 {offsets = [0, 128], sizes = [8, 128], strides = [1, 1]} : vector<8x384xf32> to vector<8x128xf32>
    %567 = vector.extract_strided_slice %553 {offsets = [0, 128], sizes = [8, 128], strides = [1, 1]} : vector<8x384xf32> to vector<8x128xf32>
    %568 = arith.addf %566, %567 : vector<8x128xf32>
    %569 = arith.negf %568 : vector<8x128xf32>
    %570 = math.exp %569 : vector<8x128xf32>
    %cst_207 = arith.constant 1.000000e+00 : f32
    %571 = vector.broadcast %cst_207 : f32 to vector<8x128xf32>
    %572 = arith.addf %571, %570 : vector<8x128xf32>
    %573 = arith.divf %571, %572 : vector<8x128xf32>
    %574 = vector.extract_strided_slice %557 {offsets = [0, 256], sizes = [8, 128], strides = [1, 1]} : vector<8x384xf32> to vector<8x128xf32>
    %575 = vector.extract_strided_slice %553 {offsets = [0, 256], sizes = [8, 128], strides = [1, 1]} : vector<8x384xf32> to vector<8x128xf32>
    %576 = arith.mulf %565, %575 : vector<8x128xf32>
    %577 = arith.addf %574, %576 : vector<8x128xf32>
    %578 = math.tanh %577 : vector<8x128xf32>
    %cst_208 = arith.constant 1.000000e+00 : f32
    %579 = vector.broadcast %cst_208 : f32 to vector<8x128xf32>
    %580 = arith.subf %579, %573 : vector<8x128xf32>
    %581 = arith.mulf %580, %578 : vector<8x128xf32>
    %582 = arith.mulf %573, %550 : vector<8x128xf32>
    %583 = arith.addf %581, %582 : vector<8x128xf32>
    %c0_209 = arith.constant 0 : index
    %c0_210 = arith.constant 0 : index
    %584 = vector.load %arg8[%c0_209, %c0_210] : memref<8x128xf32, #tpu.memory_space<vmem>>, vector<8x128xf32>
    tpu.vector_store %arg8[%c0_209, %c0_210], %583 {strides = array<i32>} : memref<8x128xf32, #tpu.memory_space<vmem>>, vector<8x128xf32>,
    %585 = arith.index_cast %555 : i32 to index
    %c0_211 = arith.constant 0 : index
    %586 = vector.load %arg5[%585, %c0_211] : memref<72x128xf32, #tpu.memory_space<vmem>>, vector<8x128xf32>
    tpu.vector_store %arg5[%585, %c0_211], %583 {strides = array<i32>} : memref<72x128xf32, #tpu.memory_space<vmem>>, vector<8x128xf32>,
    %c6_i32_212 = arith.constant 6 : i32
    %c0_213 = arith.constant 0 : index
    %c0_214 = arith.constant 0 : index
    %587 = vector.load %arg8[%c0_213, %c0_214] : memref<8x128xf32, #tpu.memory_space<vmem>>, vector<8x128xf32>
    %cst_215 = arith.constant dense<0.000000e+00> : vector<8x384xf32>
    %588 = tpu.matmul %587, %362, %cst_215 {dimension_numbers = #tpu.dot_dimension_numbers<[1], [0], [0], [1], [0, 0, 1, 1], [], []>} : vector<8x128xf32>, vector<128x384xf32>, vector<8x384xf32> -> vector<8x384xf32>
    %589 = vector.broadcast %364 : vector<1x384xf32> to vector<8x384xf32>
    %590 = arith.addf %588, %589 : vector<8x384xf32>
    %c8_i32_216 = arith.constant 8 : i32
    %591 = arith.muli %c6_i32_212, %c8_i32_216 : i32
    %592 = tpu.assume_multiple %591, 8 : i32
    %593 = arith.index_cast %592 : i32 to index
    %c0_217 = arith.constant 0 : index
    %594 = vector.load %arg7[%593, %c0_217] : memref<72x384xf32, #tpu.memory_space<vmem>>, vector<8x384xf32>
    %595 = vector.extract_strided_slice %594 {offsets = [0, 0], sizes = [8, 128], strides = [1, 1]} : vector<8x384xf32> to vector<8x128xf32>
    %596 = vector.extract_strided_slice %590 {offsets = [0, 0], sizes = [8, 128], strides = [1, 1]} : vector<8x384xf32> to vector<8x128xf32>
    %597 = arith.addf %595, %596 : vector<8x128xf32>
    %598 = arith.negf %597 : vector<8x128xf32>
    %599 = math.exp %598 : vector<8x128xf32>
    %cst_218 = arith.constant 1.000000e+00 : f32
    %600 = vector.broadcast %cst_218 : f32 to vector<8x128xf32>
    %601 = arith.addf %600, %599 : vector<8x128xf32>
    %602 = arith.divf %600, %601 : vector<8x128xf32>
    %603 = vector.extract_strided_slice %594 {offsets = [0, 128], sizes = [8, 128], strides = [1, 1]} : vector<8x384xf32> to vector<8x128xf32>
    %604 = vector.extract_strided_slice %590 {offsets = [0, 128], sizes = [8, 128], strides = [1, 1]} : vector<8x384xf32> to vector<8x128xf32>
    %605 = arith.addf %603, %604 : vector<8x128xf32>
    %606 = arith.negf %605 : vector<8x128xf32>
    %607 = math.exp %606 : vector<8x128xf32>
    %cst_219 = arith.constant 1.000000e+00 : f32
    %608 = vector.broadcast %cst_219 : f32 to vector<8x128xf32>
    %609 = arith.addf %608, %607 : vector<8x128xf32>
    %610 = arith.divf %608, %609 : vector<8x128xf32>
    %611 = vector.extract_strided_slice %594 {offsets = [0, 256], sizes = [8, 128], strides = [1, 1]} : vector<8x384xf32> to vector<8x128xf32>
    %612 = vector.extract_strided_slice %590 {offsets = [0, 256], sizes = [8, 128], strides = [1, 1]} : vector<8x384xf32> to vector<8x128xf32>
    %613 = arith.mulf %602, %612 : vector<8x128xf32>
    %614 = arith.addf %611, %613 : vector<8x128xf32>
    %615 = math.tanh %614 : vector<8x128xf32>
    %cst_220 = arith.constant 1.000000e+00 : f32
    %616 = vector.broadcast %cst_220 : f32 to vector<8x128xf32>
    %617 = arith.subf %616, %610 : vector<8x128xf32>
    %618 = arith.mulf %617, %615 : vector<8x128xf32>
    %619 = arith.mulf %610, %587 : vector<8x128xf32>
    %620 = arith.addf %618, %619 : vector<8x128xf32>
    %c0_221 = arith.constant 0 : index
    %c0_222 = arith.constant 0 : index
    %621 = vector.load %arg8[%c0_221, %c0_222] : memref<8x128xf32, #tpu.memory_space<vmem>>, vector<8x128xf32>
    tpu.vector_store %arg8[%c0_221, %c0_222], %620 {strides = array<i32>} : memref<8x128xf32, #tpu.memory_space<vmem>>, vector<8x128xf32>,
    %622 = arith.index_cast %592 : i32 to index
    %c0_223 = arith.constant 0 : index
    %623 = vector.load %arg5[%622, %c0_223] : memref<72x128xf32, #tpu.memory_space<vmem>>, vector<8x128xf32>
    tpu.vector_store %arg5[%622, %c0_223], %620 {strides = array<i32>} : memref<72x128xf32, #tpu.memory_space<vmem>>, vector<8x128xf32>,
    %c7_i32_224 = arith.constant 7 : i32
    %c0_225 = arith.constant 0 : index
    %c0_226 = arith.constant 0 : index
    %624 = vector.load %arg8[%c0_225, %c0_226] : memref<8x128xf32, #tpu.memory_space<vmem>>, vector<8x128xf32>
    %cst_227 = arith.constant dense<0.000000e+00> : vector<8x384xf32>
    %625 = tpu.matmul %624, %362, %cst_227 {dimension_numbers = #tpu.dot_dimension_numbers<[1], [0], [0], [1], [0, 0, 1, 1], [], []>} : vector<8x128xf32>, vector<128x384xf32>, vector<8x384xf32> -> vector<8x384xf32>
    %626 = vector.broadcast %364 : vector<1x384xf32> to vector<8x384xf32>
    %627 = arith.addf %625, %626 : vector<8x384xf32>
    %c8_i32_228 = arith.constant 8 : i32
    %628 = arith.muli %c7_i32_224, %c8_i32_228 : i32
    %629 = tpu.assume_multiple %628, 8 : i32
    %630 = arith.index_cast %629 : i32 to index
    %c0_229 = arith.constant 0 : index
    %631 = vector.load %arg7[%630, %c0_229] : memref<72x384xf32, #tpu.memory_space<vmem>>, vector<8x384xf32>
    %632 = vector.extract_strided_slice %631 {offsets = [0, 0], sizes = [8, 128], strides = [1, 1]} : vector<8x384xf32> to vector<8x128xf32>
    %633 = vector.extract_strided_slice %627 {offsets = [0, 0], sizes = [8, 128], strides = [1, 1]} : vector<8x384xf32> to vector<8x128xf32>
    %634 = arith.addf %632, %633 : vector<8x128xf32>
    %635 = arith.negf %634 : vector<8x128xf32>
    %636 = math.exp %635 : vector<8x128xf32>
    %cst_230 = arith.constant 1.000000e+00 : f32
    %637 = vector.broadcast %cst_230 : f32 to vector<8x128xf32>
    %638 = arith.addf %637, %636 : vector<8x128xf32>
    %639 = arith.divf %637, %638 : vector<8x128xf32>
    %640 = vector.extract_strided_slice %631 {offsets = [0, 128], sizes = [8, 128], strides = [1, 1]} : vector<8x384xf32> to vector<8x128xf32>
    %641 = vector.extract_strided_slice %627 {offsets = [0, 128], sizes = [8, 128], strides = [1, 1]} : vector<8x384xf32> to vector<8x128xf32>
    %642 = arith.addf %640, %641 : vector<8x128xf32>
    %643 = arith.negf %642 : vector<8x128xf32>
    %644 = math.exp %643 : vector<8x128xf32>
    %cst_231 = arith.constant 1.000000e+00 : f32
    %645 = vector.broadcast %cst_231 : f32 to vector<8x128xf32>
    %646 = arith.addf %645, %644 : vector<8x128xf32>
    %647 = arith.divf %645, %646 : vector<8x128xf32>
    %648 = vector.extract_strided_slice %631 {offsets = [0, 256], sizes = [8, 128], strides = [1, 1]} : vector<8x384xf32> to vector<8x128xf32>
    %649 = vector.extract_strided_slice %627 {offsets = [0, 256], sizes = [8, 128], strides = [1, 1]} : vector<8x384xf32> to vector<8x128xf32>
    %650 = arith.mulf %639, %649 : vector<8x128xf32>
    %651 = arith.addf %648, %650 : vector<8x128xf32>
    %652 = math.tanh %651 : vector<8x128xf32>
    %cst_232 = arith.constant 1.000000e+00 : f32
    %653 = vector.broadcast %cst_232 : f32 to vector<8x128xf32>
    %654 = arith.subf %653, %647 : vector<8x128xf32>
    %655 = arith.mulf %654, %652 : vector<8x128xf32>
    %656 = arith.mulf %647, %624 : vector<8x128xf32>
    %657 = arith.addf %655, %656 : vector<8x128xf32>
    %c0_233 = arith.constant 0 : index
    %c0_234 = arith.constant 0 : index
    %658 = vector.load %arg8[%c0_233, %c0_234] : memref<8x128xf32, #tpu.memory_space<vmem>>, vector<8x128xf32>
    tpu.vector_store %arg8[%c0_233, %c0_234], %657 {strides = array<i32>} : memref<8x128xf32, #tpu.memory_space<vmem>>, vector<8x128xf32>,
    %659 = arith.index_cast %629 : i32 to index
    %c0_235 = arith.constant 0 : index
    %660 = vector.load %arg5[%659, %c0_235] : memref<72x128xf32, #tpu.memory_space<vmem>>, vector<8x128xf32>
    tpu.vector_store %arg5[%659, %c0_235], %657 {strides = array<i32>} : memref<72x128xf32, #tpu.memory_space<vmem>>, vector<8x128xf32>,
    %c8_i32_236 = arith.constant 8 : i32
    %c0_237 = arith.constant 0 : index
    %c0_238 = arith.constant 0 : index
    %661 = vector.load %arg8[%c0_237, %c0_238] : memref<8x128xf32, #tpu.memory_space<vmem>>, vector<8x128xf32>
    %cst_239 = arith.constant dense<0.000000e+00> : vector<8x384xf32>
    %662 = tpu.matmul %661, %362, %cst_239 {dimension_numbers = #tpu.dot_dimension_numbers<[1], [0], [0], [1], [0, 0, 1, 1], [], []>} : vector<8x128xf32>, vector<128x384xf32>, vector<8x384xf32> -> vector<8x384xf32>
    %663 = vector.broadcast %364 : vector<1x384xf32> to vector<8x384xf32>
    %664 = arith.addf %662, %663 : vector<8x384xf32>
    %c8_i32_240 = arith.constant 8 : i32
    %665 = arith.muli %c8_i32_236, %c8_i32_240 : i32
    %666 = tpu.assume_multiple %665, 8 : i32
    %667 = arith.index_cast %666 : i32 to index
    %c0_241 = arith.constant 0 : index
    %668 = vector.load %arg7[%667, %c0_241] : memref<72x384xf32, #tpu.memory_space<vmem>>, vector<8x384xf32>
    %669 = vector.extract_strided_slice %668 {offsets = [0, 0], sizes = [8, 128], strides = [1, 1]} : vector<8x384xf32> to vector<8x128xf32>
    %670 = vector.extract_strided_slice %664 {offsets = [0, 0], sizes = [8, 128], strides = [1, 1]} : vector<8x384xf32> to vector<8x128xf32>
    %671 = arith.addf %669, %670 : vector<8x128xf32>
    %672 = arith.negf %671 : vector<8x128xf32>
    %673 = math.exp %672 : vector<8x128xf32>
    %cst_242 = arith.constant 1.000000e+00 : f32
    %674 = vector.broadcast %cst_242 : f32 to vector<8x128xf32>
    %675 = arith.addf %674, %673 : vector<8x128xf32>
    %676 = arith.divf %674, %675 : vector<8x128xf32>
    %677 = vector.extract_strided_slice %668 {offsets = [0, 128], sizes = [8, 128], strides = [1, 1]} : vector<8x384xf32> to vector<8x128xf32>
    %678 = vector.extract_strided_slice %664 {offsets = [0, 128], sizes = [8, 128], strides = [1, 1]} : vector<8x384xf32> to vector<8x128xf32>
    %679 = arith.addf %677, %678 : vector<8x128xf32>
    %680 = arith.negf %679 : vector<8x128xf32>
    %681 = math.exp %680 : vector<8x128xf32>
    %cst_243 = arith.constant 1.000000e+00 : f32
    %682 = vector.broadcast %cst_243 : f32 to vector<8x128xf32>
    %683 = arith.addf %682, %681 : vector<8x128xf32>
    %684 = arith.divf %682, %683 : vector<8x128xf32>
    %685 = vector.extract_strided_slice %668 {offsets = [0, 256], sizes = [8, 128], strides = [1, 1]} : vector<8x384xf32> to vector<8x128xf32>
    %686 = vector.extract_strided_slice %664 {offsets = [0, 256], sizes = [8, 128], strides = [1, 1]} : vector<8x384xf32> to vector<8x128xf32>
    %687 = arith.mulf %676, %686 : vector<8x128xf32>
    %688 = arith.addf %685, %687 : vector<8x128xf32>
    %689 = math.tanh %688 : vector<8x128xf32>
    %cst_244 = arith.constant 1.000000e+00 : f32
    %690 = vector.broadcast %cst_244 : f32 to vector<8x128xf32>
    %691 = arith.subf %690, %684 : vector<8x128xf32>
    %692 = arith.mulf %691, %689 : vector<8x128xf32>
    %693 = arith.mulf %684, %661 : vector<8x128xf32>
    %694 = arith.addf %692, %693 : vector<8x128xf32>
    %c0_245 = arith.constant 0 : index
    %c0_246 = arith.constant 0 : index
    %695 = vector.load %arg8[%c0_245, %c0_246] : memref<8x128xf32, #tpu.memory_space<vmem>>, vector<8x128xf32>
    tpu.vector_store %arg8[%c0_245, %c0_246], %694 {strides = array<i32>} : memref<8x128xf32, #tpu.memory_space<vmem>>, vector<8x128xf32>,
    %696 = arith.index_cast %666 : i32 to index
    %c0_247 = arith.constant 0 : index
    %697 = vector.load %arg5[%696, %c0_247] : memref<72x128xf32, #tpu.memory_space<vmem>>, vector<8x128xf32>
    tpu.vector_store %arg5[%696, %c0_247], %694 {strides = array<i32>} : memref<72x128xf32, #tpu.memory_space<vmem>>, vector<8x128xf32>,
    %c9_i32_248 = arith.constant 9 : i32
    return
  }
}

</mosaic_0001>

<bundles_post_ra>
// kernel: tpu_custom_call.1
= control target key start
LH: loop header
LB: loop body
LE: loop exit
PB: predicated region body
PF: predicated region fallthrough
CT: control target
= control target key end

     0   :  { %10 = vsyncpa [#allocation6], 0  ;;  %s7775_s0 = inlined_call_operand.hbm [shape: f32[72,128], index: 0, kind: input, shape index: {}]   ;;  %s7776_s1 = inlined_call_operand.hbm [shape: f32[2,128,384], index: 1, kind: input, shape index: {}]   ;;  %s7777_s2 = inlined_call_operand.hbm [shape: f32[2,128,384], index: 2, kind: input, shape index: {}]   ;;  %s7778_s3 = inlined_call_operand.vmem [shape: f32[2,1,384], index: 3, kind: input, shape index: {}]   ;;  %s7779_s4 = inlined_call_operand.vmem [shape: f32[2,1,384], index: 4, kind: input, shape index: {}]   ;;  %s7780_s5 = inlined_call_operand.hbm [shape: f32[72,128], index: 5, kind: output, shape index: {}]  }
   0x1   :  { %11 = vsyncpa [#allocation9], 0 }
   0x2   :  { %12 = vsyncpa [#allocation7], 0  ;;  %s6624_s18 = smov [#allocation8]   ;;  %s6530_s22 = scalar_lea.hbm %s7776_s1, 12288 }
   0x3   :  { %s30_s19 = sshll.u32 %s6624_s18, 4  ;;  %p6531_p0 = scmp.ne.s32.totalorder %s7776_s1, %s6530_s22  ;;  %s31_s19 = int_to_ptr.vmem [resolvable:$true] %s30_s19 }
   0x4   :  { %p6534_p1 = scmp.lt.u32.totalorder %s6530_s22, %s7776_s1 }
   0x6   :  { %p6536_p2 = pnand %p6534_p1, %p6531_p0 }
   0x8   :  { %6539 = shalt.err (!%p6536_p2)
}
   0x9   :  { %s6540_s27 = scalar_lea.vmem %s31_s19, 12288  ;;  %p6545_p4 = scmp.lt.s32.totalorder %s31_s19, %s31_s19 }
   0xa   :  { %p6541_p3 = scmp.ne.s32.totalorder %s31_s19, %s6540_s27  ;;  %p6546_p5 = scmp.lt.s32.totalorder %s6540_s27, %s6540_s27 }
   0xc   :  { %p6547_p6 = por %p6546_p5, %p6545_p4 }
   0xe   :  { %p6548_p7 = pnand %p6547_p6, %p6541_p3 }
  0x10   :  { %6551 = shalt.err (!%p6548_p7)
}
  0x11   :  { %s6625_s28 = smov 384   ;;  %s6626_s29 = smov 24  }
  0x12   :  { %36 = dma.hbm_to_vmem [thread:$0]  %s7776_s1, 12288, %s31_s19, [#allocation9], %s6625_s28, %s6625_s28, %s6626_s29  }
  0x13   :  { %s6627_s7 = smov [#allocation5]   ;;  %s6552_s11 = scalar_lea.hbm %s7775_s0, 1152 }
  0x14   :  { %s18_s8 = sshll.u32 %s6627_s7, 4  ;;  %p6553_p8 = scmp.ne.s32.totalorder %s7775_s0, %s6552_s11  ;;  %s19_s8 = int_to_ptr.vmem [resolvable:$true] %s18_s8 }
  0x15   :  { %p6556_p9 = scmp.lt.u32.totalorder %s6552_s11, %s7775_s0 }
  0x17   :  { %p6558_p10 = pnand %p6556_p9, %p6553_p8 }
  0x19   :  { %6561 = shalt.err (!%p6558_p10)
}
  0x1a   :  { %s6562_s16 = scalar_lea.vmem %s19_s8, 1152  ;;  %p6567_p12 = scmp.lt.s32.totalorder %s19_s8, %s19_s8 }
  0x1b   :  { %p6563_p11 = scmp.ne.s32.totalorder %s19_s8, %s6562_s16  ;;  %p6568_p13 = scmp.lt.s32.totalorder %s6562_s16, %s6562_s16 }
  0x1d   :  { %p6569_p0 = por %p6568_p13, %p6567_p12 }
  0x1f   :  { %p6570_p1 = pnand %p6569_p0, %p6563_p11 }
  0x21   :  { %6573 = shalt.err (!%p6570_p1)
}
  0x22   :  { %s6628_s1 = smov 128   ;;  %s6629_s17 = smov 8  }
  0x23   :  { %24 = dma.hbm_to_vmem [thread:$0]  %s7775_s0, 1152, %s19_s8, [#allocation6], %s6628_s1, %s6628_s1, %s6629_s17  }
  0x24   :  { %s6630_s20 = smov [#allocation10]   ;;  %s6574_s24 = scalar_lea.hbm %s7777_s2, 12288 }
  0x25   :  { %s42_s21 = sshll.u32 %s6630_s20, 4  ;;  %p6575_p2 = scmp.ne.s32.totalorder %s7777_s2, %s6574_s24  ;;  %s43_s21 = int_to_ptr.vmem [resolvable:$true] %s42_s21 }
  0x26   :  { %p6578_p3 = scmp.lt.u32.totalorder %s6574_s24, %s7777_s2 }
  0x28   :  { %p6580_p4 = pnand %p6578_p3, %p6575_p2 }
  0x2a   :  { %6583 = shalt.err (!%p6580_p4)
}
  0x2b   :  { %s6584_s6 = scalar_lea.vmem %s43_s21, 12288  ;;  %p6589_p6 = scmp.lt.s32.totalorder %s43_s21, %s43_s21 }
  0x2c   :  { %p6585_p5 = scmp.ne.s32.totalorder %s43_s21, %s6584_s6  ;;  %p6590_p7 = scmp.lt.s32.totalorder %s6584_s6, %s6584_s6 }
  0x2e   :  { %p6591_p8 = por %p6590_p7, %p6589_p6 }
  0x30   :  { %p6592_p9 = pnand %p6591_p8, %p6585_p5 }
  0x32   :  { %6595 = shalt.err (!%p6592_p9)
}
  0x33   :  { %48 = dma.hbm_to_vmem [thread:$0]  %s7777_s2, 12288, %s43_s21, [#allocation9], %s6625_s28, %s6625_s28, %s6626_s29  }
  0x34   :  { %6618 = dma.done.wait [#allocation6], 1152  }
  0x35   :  { %6619 = vsyncadd [#allocation6], 4294966144 }
  0x36   :  { %6620 = dma.done.wait [#allocation9], 24576  }
  0x37   :  { %6621 = vsyncadd [#allocation9], 4294942720  ;;  %v6631_v0 = vmov 0.0|0.0   ;;  %v6632_v1 = vmov 0.0   ;;  %vm6633_vm0 = vmmov 0   ;;  %v90_v2 = vld [vmem:[#allocation8 + $0x8] sm:$0xff] }
  0x38   :  { %5143 = vmatprep.subr.bf16.mxu1 %v6631_v0  ;;  %218 = vmatprep.mubr.f32.mxu0 %v6632_v1  ;;  %v93_v3 = vld [vmem:[#allocation8 + $0x20] sm:$0xff]  ;;  %v92_v6 = vld [vmem:[#allocation8 + $0x18] sm:$0xff]  ;;  %v99_v8 = vld [vmem:[#allocation8 + $0x50] sm:$0xff] }
  0x39   :  { %4395 = vmatprep.mubr.msk.f32.mxu1 %vm6633_vm0, %v6632_v1  ;;  %v89_v4 = vld [vmem:[#allocation8] sm:$0xff]  ;;  %v5111_v5 = vpack.c.bf16 %v93_v3, %v90_v2  ;;  %v96_v7 = vld [vmem:[#allocation8 + $0x38] sm:$0xff]  ;;  %v95_v11 = vld [vmem:[#allocation8 + $0x30] sm:$0xff] }
  0x3a   :  { %v5113_v9 = vpack.c.bf16 %v92_v6, %v89_v4  ;;  %v5115_v10 = vpack.c.bf16 %v99_v8, %v96_v7  ;;  %v98_v12 = vld [vmem:[#allocation8 + $0x48] sm:$0xff]  ;;  %v105_v14 = vld [vmem:[#allocation8 + $0x80] sm:$0xff]  ;;  %v104_v18 = vld [vmem:[#allocation8 + $0x78] sm:$0xff] }
  0x3b   :  { %v102_v13 = vld [vmem:[#allocation8 + $0x68] sm:$0xff]  ;;  %5112 = vmatprep.subr.bf16.mxu0 %v5111_v5  ;;  %v5117_v15 = vpack.c.bf16 %v98_v12, %v95_v11  ;;  %v101_v17 = vld [vmem:[#allocation8 + $0x60] sm:$0xff]  ;;  %v108_v19 = vld [vmem:[#allocation8 + $0x98] sm:$0xff] }
  0x3c   :  { %5114 = vmatpush1.bf16.msra.mxu0 %v5113_v9  ;;  %v5119_v16 = vpack.c.bf16 %v105_v14, %v102_v13  ;;  %v111_v20 = vld [vmem:[#allocation8 + $0xb0] sm:$0xff]  ;;  %v5121_v21 = vpack.c.bf16 %v104_v18, %v101_v17  ;;  %v110_v24 = vld [vmem:[#allocation8 + $0xa8] sm:$0xff]  ;;  %v117_v28 = vld [vmem:[#allocation8 + $0xe0] sm:$0xff] }
  0x3d   :  { %5116 = vmatprep.subr.bf16.mxu0 %v5115_v10  ;;  %v107_v22 = vld [vmem:[#allocation8 + $0x90] sm:$0xff]  ;;  %v5123_v23 = vpack.c.bf16 %v111_v20, %v108_v19  ;;  %v94_v26 = vld [vmem:[#allocation8 + $0x28] sm:$0xff]  ;;  %v97_v30 = vld [vmem:[#allocation8 + $0x40] sm:$0xff] }
  0x3e   :  { %v91_v25 = vld [vmem:[#allocation8 + $0x10] sm:$0xff]  ;;  %v114_v27 = vld [vmem:[#allocation8 + $0xc8] sm:$0xff]  ;;  %v100_v31 = vld [vmem:[#allocation8 + $0x58] sm:$0xff]  ;;  %v5125_v32 = vpack.c.bf16 %v110_v24, %v107_v22 }
  0x3f   :  { %v5144_v29 = vpack.c.bf16 %v94_v26, %v91_v25  ;;  %v5147_v33 = vpack.c.bf16 %v100_v31, %v97_v30  ;;  %v5127_v34 = vpack.c.bf16 %v117_v28, %v114_v27  ;;  %v113_v35 = vld [vmem:[#allocation8 + $0xc0] sm:$0xff]  ;;  %v116_v36 = vld [vmem:[#allocation8 + $0xd8] sm:$0xff]  ;;  %v103_v37 = vld [vmem:[#allocation8 + $0x70] sm:$0xff] }
  0x40   :  { %5118 = vmatpush1.bf16.msra.mxu0 %v5117_v15  ;;  %v120_v38 = vld [vmem:[#allocation8 + $0xf8] sm:$0xff]  ;;  %v123_v39 = vld [vmem:[#allocation8 + $0x110] sm:$0xff]  ;;  %v106_v40 = vld [vmem:[#allocation8 + $0x88] sm:$0xff]  ;;  %v5129_v41 = vpack.c.bf16 %v116_v36, %v113_v35 }
  0x41   :  { %5120 = vmatprep.subr.bf16.mxu0 %v5119_v16  ;;  %5145 = vmatpush3.bf16.msra.mxu1 %v5144_v29  ;;  %v119_v42 = vld [vmem:[#allocation8 + $0xf0] sm:$0xff]  ;;  %v5150_v43 = vpack.c.bf16 %v106_v40, %v103_v37  ;;  %v5131_v44 = vpack.c.bf16 %v123_v39, %v120_v38  ;;  %v122_v45 = vld [vmem:[#allocation8 + $0x108] sm:$0xff]  ;;  %v109_v46 = vld [vmem:[#allocation8 + $0xa0] sm:$0xff] }
  0x42   :  { %5146 = vmatprep.subr.bf16.mxu1 %v6631_v0  ;;  %v112_v47 = vld [vmem:[#allocation8 + $0xb8] sm:$0xff]  ;;  %v126_v48 = vld [vmem:[#allocation8 + $0x128] sm:$0xff]  ;;  %v129_v49 = vld [vmem:[#allocation8 + $0x140] sm:$0xff]  ;;  %v5133_v50 = vpack.c.bf16 %v122_v45, %v119_v42 }
  0x43   :  { %v125_v51 = vld [vmem:[#allocation8 + $0x120] sm:$0xff]  ;;  %v5153_v52 = vpack.c.bf16 %v112_v47, %v109_v46  ;;  %v5135_v53 = vpack.c.bf16 %v129_v49, %v126_v48  ;;  %v128_v54 = vld [vmem:[#allocation8 + $0x138] sm:$0xff]  ;;  %v115_v55 = vld [vmem:[#allocation8 + $0xd0] sm:$0xff] }
  0x44   :  { %5122 = vmatpush1.bf16.msra.mxu0 %v5121_v21  ;;  %v118_v56 = vld [vmem:[#allocation8 + $0xe8] sm:$0xff]  ;;  %v132_v57 = vld [vmem:[#allocation8 + $0x158] sm:$0xff]  ;;  %v135_v58 = vld [vmem:[#allocation8 + $0x170] sm:$0xff]  ;;  %v5137_v59 = vpack.c.bf16 %v128_v54, %v125_v51 }
  0x45   :  { %5124 = vmatprep.subr.bf16.mxu0 %v5123_v23  ;;  %5148 = vmatpush3.bf16.msra.mxu1 %v5147_v33  ;;  %v131_v60 = vld [vmem:[#allocation8 + $0x150] sm:$0xff]  ;;  %v5156_v61 = vpack.c.bf16 %v118_v56, %v115_v55  ;;  %v5139_v62 = vpack.c.bf16 %v135_v58, %v132_v57  ;;  %v134_v63 = vld [vmem:[#allocation8 + $0x168] sm:$0xff]  ;;  %v121_v2 = vld [vmem:[#allocation8 + $0x100] sm:$0xff] }
  0x46   :  { %5149 = vmatprep.subr.bf16.mxu1 %v6631_v0  ;;  %v124_v3 = vld [vmem:[#allocation8 + $0x118] sm:$0xff]  ;;  %v412_v4 = vld [vmem:[#allocation10 + $0x8] sm:$0xff]  ;;  %v415_v5 = vld [vmem:[#allocation10 + $0x20] sm:$0xff]  ;;  %v5141_v6 = vpack.c.bf16 %v134_v63, %v131_v60 }
  0x47   :  { %v5159_v7 = vpack.c.bf16 %v124_v3, %v121_v2  ;;  %v6718_v8 = vpack.c.bf16 %v415_v5, %v412_v4  ;;  %v411_v9 = vld [vmem:[#allocation10] sm:$0xff]  ;;  %v414_v10 = vld [vmem:[#allocation10 + $0x18] sm:$0xff]  ;;  %v421_v12 = vld [vmem:[#allocation10 + $0x50] sm:$0xff] }
  0x48   :  { %5126 = vmatpush1.bf16.msra.mxu0 %v5125_v32  ;;  %v418_v11 = vld [vmem:[#allocation10 + $0x38] sm:$0xff]  ;;  %v127_v13 = vld [vmem:[#allocation8 + $0x130] sm:$0xff]  ;;  %v130_v14 = vld [vmem:[#allocation8 + $0x148] sm:$0xff]  ;;  %v6721_v16 = vpack.c.bf16 %v414_v10, %v411_v9 }
  0x49   :  { %5128 = vmatprep.subr.bf16.mxu0 %v5127_v34  ;;  %5151 = vmatpush3.bf16.msra.mxu1 %v5150_v43  ;;  %v62_v15 = vld [vmem:[#allocation5] sm:$0xff]  ;;  %v6724_v17 = vpack.c.bf16 %v421_v12, %v418_v11  ;;  %v417_v18 = vld [vmem:[#allocation10 + $0x30] sm:$0xff]  ;;  %v420_v19 = vld [vmem:[#allocation10 + $0x48] sm:$0xff]  ;;  %v5162_v21 = vpack.c.bf16 %v130_v14, %v127_v13 }
  0x4a   :  { %5152 = vmatprep.subr.bf16.mxu1 %v6631_v0  ;;  %v424_v20 = vld [vmem:[#allocation10 + $0x68] sm:$0xff]  ;;  %v427_v22 = vld [vmem:[#allocation10 + $0x80] sm:$0xff]  ;;  %v136_v24 = vld [vmem:[#allocation8 + $0x178] sm:$0xff]  ;;  %v6729_v26 = vpack.c.bf16 %v420_v19, %v417_v18 }
  0x4b   :  { %v133_v23 = vld [vmem:[#allocation8 + $0x160] sm:$0xff]  ;;  %v6732_v27 = vpack.c.bf16 %v427_v22, %v424_v20  ;;  %v426_v29 = vld [vmem:[#allocation10 + $0x78] sm:$0xff]  ;;  %v433_v32 = vld [vmem:[#allocation10 + $0xb0] sm:$0xff] }
  0x4c   :  { %5130 = vmatpush1.bf16.msra.mxu0 %v5129_v41  ;;  %v63_v25 = vld [vmem:[#allocation5 + $0x8] sm:$0xff]  ;;  %v5165_v30 = vpack.c.bf16 %v136_v24, %v133_v23  ;;  %v430_v31 = vld [vmem:[#allocation10 + $0x98] sm:$0xff]  ;;  %v413_v33 = vld [vmem:[#allocation10 + $0x10] sm:$0xff] }
  0x4d   :  { %5132 = vmatprep.subr.bf16.mxu0 %v5131_v44  ;;  %5154 = vmatpush3.bf16.msra.mxu1 %v5153_v52  ;;  %v423_v28 = vld [vmem:[#allocation10 + $0x60] sm:$0xff]  ;;  %v416_v34 = vld [vmem:[#allocation10 + $0x28] sm:$0xff]  ;;  %v6740_v37 = vpack.c.bf16 %v433_v32, %v430_v31  ;;  %v429_v38 = vld [vmem:[#allocation10 + $0x90] sm:$0xff] }
  0x4e   :  { %5155 = vmatprep.subr.bf16.mxu1 %v6631_v0  ;;  %v64_v35 = vld [vmem:[#allocation5 + $0x10] sm:$0xff]  ;;  %v6737_v36 = vpack.c.bf16 %v426_v29, %v423_v28  ;;  %v439_v41 = vld [vmem:[#allocation10 + $0xe0] sm:$0xff]  ;;  %v6743_v42 = vpack.c.bf16 %v416_v34, %v413_v33  ;;  %v422_v44 = vld [vmem:[#allocation10 + $0x58] sm:$0xff] }
  0x4f   :  { %v432_v39 = vld [vmem:[#allocation10 + $0xa8] sm:$0xff]  ;;  %v419_v43 = vld [vmem:[#allocation10 + $0x40] sm:$0xff]  ;;  %v65_v45 = vld [vmem:[#allocation5 + $0x18] sm:$0xff] }
  0x50   :  { %5134 = vmatpush1.bf16.msra.mxu0 %v5133_v50  ;;  %v436_v40 = vld [vmem:[#allocation10 + $0xc8] sm:$0xff]  ;;  %v6747_v46 = vpack.c.bf16 %v432_v39, %v429_v38  ;;  %v435_v48 = vld [vmem:[#allocation10 + $0xc0] sm:$0xff]  ;;  %v438_v49 = vld [vmem:[#allocation10 + $0xd8] sm:$0xff]  ;;  %v6755_v52 = vpack.c.bf16 %v422_v44, %v419_v43  ;;  %v139_v38 = vlaneseq }
  0x51   :  { %5136 = vmatprep.subr.bf16.mxu0 %v5135_v53  ;;  %5157 = vmatpush3.bf16.msra.mxu1 %v5156_v61  ;;  %v6750_v47 = vpack.c.bf16 %v439_v41, %v436_v40  ;;  %v442_v50 = vld [vmem:[#allocation10 + $0xf8] sm:$0xff]  ;;  %v445_v51 = vld [vmem:[#allocation10 + $0x110] sm:$0xff]  ;;  %v428_v54 = vld [vmem:[#allocation10 + $0x88] sm:$0xff]  ;;  %v6760_v56 = vpack.c.bf16 %v438_v49, %v435_v48 }
  0x52   :  { %5158 = vmatprep.subr.bf16.mxu1 %v6631_v0  ;;  %v425_v53 = vld [vmem:[#allocation10 + $0x70] sm:$0xff]  ;;  %v66_v55 = vld [vmem:[#allocation5 + $0x20] sm:$0xff]  ;;  %v6763_v57 = vpack.c.bf16 %v445_v51, %v442_v50  ;;  %v448_v60 = vld [vmem:[#allocation10 + $0x128] sm:$0xff]  ;;  %v140_v39 = vshrl.u32 %v139_v38, 7 }
  0x53   :  { %v441_v58 = vld [vmem:[#allocation10 + $0xf0] sm:$0xff]  ;;  %v451_v61 = vld [vmem:[#allocation10 + $0x140] sm:$0xff]  ;;  %v434_v2 = vld [vmem:[#allocation10 + $0xb8] sm:$0xff] }
  0x54   :  { %5138 = vmatpush1.bf16.msra.mxu0 %v5137_v59  ;;  %v444_v59 = vld [vmem:[#allocation10 + $0x108] sm:$0xff]  ;;  %v431_v63 = vld [vmem:[#allocation10 + $0xa0] sm:$0xff]  ;;  %v6776_v5 = vpack.c.bf16 %v451_v61, %v448_v60  ;;  %v454_v9 = vld [vmem:[#allocation10 + $0x158] sm:$0xff]  ;;  %v6867_v40 = vsub.s32 2, %v140_v39  ;;  %v6879_v60 = vsub.s32 0, %v140_v39 }
  0x55   :  { %5140 = vmatprep.subr.bf16.mxu0 %v5139_v62  ;;  %5160 = vmatpush3.bf16.msra.mxu1 %v5159_v7  ;;  %v6768_v62 = vpack.c.bf16 %v428_v54, %v425_v53  ;;  %v67_v3 = vld [vmem:[#allocation5 + $0x28] sm:$0xff]  ;;  %v6773_v4 = vpack.c.bf16 %v444_v59, %v441_v58  ;;  %v450_v7 = vld [vmem:[#allocation10 + $0x138] sm:$0xff]  ;;  %v457_v10 = vld [vmem:[#allocation10 + $0x170] sm:$0xff]  ;;  %v6781_v11 = vpack.c.bf16 %v434_v2, %v431_v63 }
  0x56   :  { %5161 = vmatprep.subr.bf16.mxu1 %v6631_v0  ;;  %v437_v12 = vld [vmem:[#allocation10 + $0xd0] sm:$0xff]  ;;  %v440_v13 = vld [vmem:[#allocation10 + $0xe8] sm:$0xff]  ;;  %v6789_v18 = vpack.c.bf16 %v457_v10, %v454_v9  ;;  %v443_v22 = vld [vmem:[#allocation10 + $0x100] sm:$0xff] }
  0x57   :  { %v68_v14 = vld [vmem:[#allocation5 + $0x30] sm:$0xff]  ;;  %v453_v19 = vld [vmem:[#allocation10 + $0x150] sm:$0xff]  ;;  %v446_v23 = vld [vmem:[#allocation10 + $0x118] sm:$0xff] }
  0x58   :  { %5142 = vmatpush1.bf16.msra.mxu0 %v5141_v6  ;;  %v447_v6 = vld [vmem:[#allocation10 + $0x120] sm:$0xff]  ;;  %v456_v20 = vld [vmem:[#allocation10 + $0x168] sm:$0xff]  ;;  %v69_v24 = vld [vmem:[#allocation5 + $0x38] sm:$0xff]  ;;  %v6805_v28 = vpack.c.bf16 %v446_v23, %v443_v22 }
  0x59   :  { %5168 = vmatprep.subr.bf16.mxu0 %v6718_v8  ;;  %5163 = vmatpush3.bf16.msra.mxu1 %v5162_v21  ;;  %v6794_v21 = vpack.c.bf16 %v440_v13, %v437_v12  ;;  %v449_v29 = vld [vmem:[#allocation10 + $0x130] sm:$0xff]  ;;  %v70_v31 = vld [vmem:[#allocation5 + $0x40] sm:$0xff]  ;;  %v455_v33 = vld [vmem:[#allocation10 + $0x160] sm:$0xff] }
  0x5a   :  { %5164 = vmatprep.subr.bf16.mxu1 %v6631_v0  ;;  %v458_v34 = vld [vmem:[#allocation10 + $0x178] sm:$0xff] }
  0x5b   :  { %219 = vmatmul.mubr.f32.vlgmr.msra.gmra.mrb[0].mxu0 %v62_v15  ;;  %v137_v41 = vld [vmem:[%s7778_s3] sm:$0x7] }
  0x5c   :  { %5170 = vmatpush1.bf16.msra.mxu0 %v6721_v16  ;;  %224 = vmatprep.mubr.f32.mxu0 %v6632_v1  ;;  %v459_v61 = vld [vmem:[%s7779_s4] sm:$0x7] }
  0x5d   :  { %5172 = vmatprep.subr.bf16.mxu0 %v6724_v17  ;;  %5166 = vmatpush3.bf16.msra.mxu1 %v5165_v30  ;;  %v452_v30 = vld [vmem:[#allocation10 + $0x148] sm:$0xff]  ;;  %v465_v9 = vrot.slane %v459_v61, %v6879_v60 }
  0x5e   :  { %5199 = vmatprep.subr.bf16.mxu1 %v6631_v0  ;;  %v6814_v32 = vpack.c.bf16 %v452_v30, %v449_v29 }
  0x5f   :  { %225 = vmatmul.mubr.f32.gmra.mrb[2].mxu0 %v63_v25 }
  0x60   :  { %5174 = vmatpush1.bf16.msra.mxu0 %v6729_v26  ;;  %230 = vmatprep.mubr.f32.mxu0 %v6632_v1 }
  0x61   :  { %5176 = vmatprep.subr.bf16.mxu0 %v6732_v27  ;;  %4396 = vmatmul.mubr.f32.vlgmr.msra.gmra.mrb[0].mxu1 %v62_v15  ;;  %v6786_v15 = vpack.c.bf16 %v450_v7, %v447_v6  ;;  %v6886_v6 = vsub.s32 1, %v140_v39  ;;  %v142_v7 = vrot.slane %v137_v41, %v6879_v60 }
  0x62   :  { %5201 = vmatpush3.bf16.msra.mxu1 %v6743_v42  ;;  %4398 = vmatprep.mubr.msk.f32.mxu1 %vm6633_vm0, %v6632_v1 }
  0x63   :  { %231 = vmatmul.mubr.f32.gmra.mrb[4].mxu0 %v64_v35  ;;  %5202 = vmatprep.subr.bf16.mxu1 %v6631_v0 }
  0x64   :  { %5178 = vmatpush1.bf16.msra.mxu0 %v6737_v36  ;;  %236 = vmatprep.mubr.f32.mxu0 %v6632_v1 }
  0x65   :  { %5180 = vmatprep.subr.bf16.mxu0 %v6740_v37  ;;  %4399 = vmatmul.mubr.f32.gmra.mrb[2].mxu1 %v63_v25  ;;  %v6799_v25 = vpack.c.bf16 %v456_v20, %v453_v19  ;;  %v469_v19 = vrot.slane %v459_v61, %v6886_v6  ;;  %v6894_v20 = vadd.f32 %v465_v9, %v142_v7 }
  0x66   :  { %5204 = vmatpush3.bf16.msra.mxu1 %v6755_v52  ;;  %4401 = vmatprep.mubr.msk.f32.mxu1 %vm6633_vm0, %v6632_v1  ;;  %v6907_v7 = vrot.slane %v459_v61, %v6867_v40 }
  0x67   :  { %237 = vmatmul.mubr.f32.gmra.mrb[6].mxu0 %v65_v45  ;;  %5205 = vmatprep.subr.bf16.mxu1 %v6631_v0 }
  0x68   :  { %242 = vmatprep.mubr.f32.mxu0 %v6632_v1  ;;  %5182 = vmatpush1.bf16.msra.mxu0 %v6747_v46 }
  0x69   :  { %5184 = vmatprep.subr.bf16.mxu0 %v6750_v47  ;;  %4402 = vmatmul.mubr.f32.gmra.mrb[4].mxu1 %v64_v35  ;;  %v6821_v35 = vpack.c.bf16 %v458_v34, %v455_v33 }
  0x6a   :  { %5207 = vmatpush3.bf16.msra.mxu1 %v6768_v62  ;;  %4404 = vmatprep.mubr.msk.f32.mxu1 %vm6633_vm0, %v6632_v1 }
  0x6b   :  { %243 = vmatmul.mubr.f32.gmra.mrb[8].mxu0 %v66_v55  ;;  %5208 = vmatprep.subr.bf16.mxu1 %v6631_v0 }
  0x6c   :  { %248 = vmatprep.mubr.f32.mxu0 %v6632_v1  ;;  %5186 = vmatpush1.bf16.msra.mxu0 %v6760_v56 }
  0x6d   :  { %5188 = vmatprep.subr.bf16.mxu0 %v6763_v57  ;;  %4405 = vmatmul.mubr.f32.gmra.mrb[6].mxu1 %v65_v45  ;;  %v150_v45 = vrot.slane %v137_v41, %v6867_v40 }
  0x6e   :  { %4407 = vmatprep.mubr.msk.f32.mxu1 %vm6633_vm0, %v6632_v1  ;;  %5210 = vmatpush3.bf16.msra.mxu1 %v6781_v11 }
  0x6f   :  { %249 = vmatmul.mubr.f32.gmra.mrb[10].mxu0 %v67_v3  ;;  %5211 = vmatprep.subr.bf16.mxu1 %v6631_v0 }
  0x70   :  { %254 = vmatprep.mubr.f32.mxu0 %v6632_v1  ;;  %5190 = vmatpush1.bf16.msra.mxu0 %v6773_v4 }
  0x71   :  { %5192 = vmatprep.subr.bf16.mxu0 %v6776_v5  ;;  %4408 = vmatmul.mubr.f32.gmra.mrb[8].mxu1 %v66_v55 }
  0x72   :  { %4410 = vmatprep.mubr.msk.f32.mxu1 %vm6633_vm0, %v6632_v1  ;;  %5213 = vmatpush3.bf16.msra.mxu1 %v6794_v21 }
  0x73   :  { %255 = vmatmul.mubr.f32.gmra.mrb[12].mxu0 %v68_v14  ;;  %5214 = vmatprep.subr.bf16.mxu1 %v6631_v0 }
  0x74   :  { %260 = vmatprep.mubr.f32.mxu0 %v6632_v1  ;;  %5194 = vmatpush1.bf16.msra.mxu0 %v6786_v15 }
  0x75   :  { %5196 = vmatprep.subr.bf16.mxu0 %v6789_v18  ;;  %4411 = vmatmul.mubr.f32.gmra.mrb[10].mxu1 %v67_v3 }
  0x76   :  { %4413 = vmatprep.mubr.msk.f32.mxu1 %vm6633_vm0, %v6632_v1  ;;  %5216 = vmatpush3.bf16.msra.mxu1 %v6805_v28 }
  0x77   :  { %261 = vmatmul.mubr.f32.gmra.mrb[14].mxu0 %v69_v24  ;;  %5217 = vmatprep.subr.bf16.mxu1 %v6631_v0 }
  0x78   :  { %266 = vmatprep.mubr.f32.mxu0 %v6632_v1  ;;  %5198 = vmatpush1.bf16.msra.mxu0 %v6799_v25 }
  0x79   :  { %5224 = vmatprep.subr.bf16.mxu0 %v6718_v8  ;;  %4414 = vmatmul.mubr.f32.gmra.mrb[12].mxu1 %v68_v14  ;;  %v146_v14 = vrot.slane %v137_v41, %v6886_v6 }
  0x7a   :  { %4416 = vmatprep.mubr.msk.f32.mxu1 %vm6633_vm0, %v6632_v1  ;;  %5219 = vmatpush3.bf16.msra.mxu1 %v6814_v32 }
  0x7b   :  { %267 = vmatmul.mubr.f32.gmra.mrb[16].mxu0 %v70_v31  ;;  %5220 = vmatprep.subr.bf16.mxu1 %v6631_v0  ;;  %v6898_v30 = vadd.f32 %v469_v19, %v146_v14 }
  0x7c   :  { %541 = vmatprep.mubr.f32.mxu0 %v6632_v1 }
  0x7d   :  { %4417 = vmatmul.mubr.f32.gmra.mrb[14].mxu1 %v69_v24 }
  0x7e   :  { %4419 = vmatprep.mubr.msk.f32.mxu1 %vm6633_vm0, %v6632_v1  ;;  %5222 = vmatpush3.bf16.msra.mxu1 %v6821_v35 }
  0x7f   :  { %542 = vmatmul.mubr.f32.vlgmr.msra.gmra.mrb[0].mxu0 %v6632_v1  ;;  %5255 = vmatprep.subr.bf16.mxu1 %v6631_v0 }
  0x80   :  { %5226 = vmatpush1.bf16.msra.mxu0 %v6721_v16  ;;  %712 = vmatprep.mubr.f32.mxu0 %v6632_v1 }
  0x81   :  { %5228 = vmatprep.subr.bf16.mxu0 %v6724_v17  ;;  %4420 = vmatmul.mubr.f32.gmra.mrb[16].mxu1 %v70_v31 }
  0x82   :  { %4454 = vmatprep.mubr.msk.f32.mxu1 %vm6633_vm0, %v6632_v1 }
  0x84   :  { %5230 = vmatpush1.bf16.msra.mxu0 %v6729_v26 }
  0x85   :  { %5232 = vmatprep.subr.bf16.mxu0 %v6732_v27  ;;  %4455 = vmatmul.mubr.f32.vlgmr.msra.gmra.mrb[18].mxu1 %v6632_v1 }
  0x86   :  { %5257 = vmatpush3.bf16.msra.mxu1 %v6743_v42  ;;  %4489 = vmatprep.mubr.msk.f32.mxu1 %vm6633_vm0, %v6632_v1 }
  0x87   :  { %5258 = vmatprep.subr.bf16.mxu1 %v6631_v0 }
  0x88   :  { %5234 = vmatpush1.bf16.msra.mxu0 %v6737_v36 }
  0x89   :  { %5236 = vmatprep.subr.bf16.mxu0 %v6740_v37 }
  0x8a   :  { %5260 = vmatpush3.bf16.msra.mxu1 %v6755_v52 }
  0x8b   :  { %5261 = vmatprep.subr.bf16.mxu1 %v6631_v0 }
  0x8c   :  { %5238 = vmatpush1.bf16.msra.mxu0 %v6747_v46 }
  0x8d   :  { %5240 = vmatprep.subr.bf16.mxu0 %v6750_v47 }
  0x8e   :  { %5263 = vmatpush3.bf16.msra.mxu1 %v6768_v62 }
  0x8f   :  { %5264 = vmatprep.subr.bf16.mxu1 %v6631_v0 }
  0x90   :  { %5242 = vmatpush1.bf16.msra.mxu0 %v6760_v56 }
  0x91   :  { %5244 = vmatprep.subr.bf16.mxu0 %v6763_v57 }
  0x92   :  { %5266 = vmatpush3.bf16.msra.mxu1 %v6781_v11 }
  0x93   :  { %5267 = vmatprep.subr.bf16.mxu1 %v6631_v0 }
  0x94   :  { %5246 = vmatpush1.bf16.msra.mxu0 %v6773_v4 }
  0x95   :  { %5248 = vmatprep.subr.bf16.mxu0 %v6776_v5 }
  0x96   :  { %5269 = vmatpush3.bf16.msra.mxu1 %v6794_v21 }
  0x97   :  { %5270 = vmatprep.subr.bf16.mxu1 %v6631_v0 }
  0x98   :  { %5250 = vmatpush1.bf16.msra.mxu0 %v6786_v15 }
  0x99   :  { %5252 = vmatprep.subr.bf16.mxu0 %v6789_v18 }
  0x9a   :  { %5272 = vmatpush3.bf16.msra.mxu1 %v6805_v28 }
  0x9b   :  { %5273 = vmatprep.subr.bf16.mxu1 %v6631_v0 }
  0x9c   :  { %5254 = vmatpush1.bf16.msra.mxu0 %v6799_v25 }
  0x9d   :  { %5280 = vmatprep.subr.bf16.mxu0 %v6718_v8 }
  0x9e   :  { %5275 = vmatpush3.bf16.msra.mxu1 %v6814_v32 }
  0x9f   :  { %5276 = vmatprep.subr.bf16.mxu1 %v6631_v0 }
  0xa2   :  { %5278 = vmatpush3.bf16.msra.mxu1 %v6821_v35 }
  0xa3   :  { %5311 = vmatprep.subr.bf16.mxu1 %v6631_v0 }
 0x134   :  { %v339_v43 = vpop.f32.mrb[0].mxu1 }
 0x135   :  { %v4397_v44 = vpop.f32.mrb[1].mxu1  ;;  %v340_v19 = vadd.f32 %v339_v43, %v150_v45 }
 0x138   :  { %v344_v48 = vpop.f32.mrb[2].mxu1 }
 0x139   :  { %v6873_v49 = vadd.f32 %v344_v48, %v150_v45  ;;  %v4400_v50 = vpop.f32.mrb[3].mxu1 }
 0x13c   :  { %v349_v51 = vpop.f32.mrb[4].mxu1 }
 0x13d   :  { %v6875_v53 = vadd.f32 %v349_v51, %v150_v45  ;;  %v4403_v54 = vpop.f32.mrb[5].mxu1 }
 0x140   :  { %v354_v55 = vpop.f32.mrb[6].mxu1 }
 0x141   :  { %v6877_v58 = vadd.f32 %v354_v55, %v150_v45  ;;  %v4406_v59 = vpop.f32.mrb[7].mxu1 }
 0x144   :  { %v359_v63 = vpop.f32.mrb[8].mxu1 }
 0x145   :  { %v6884_v2 = vadd.f32 %v359_v63, %v150_v45  ;;  %v4409_v3 = vpop.f32.mrb[9].mxu1 }
 0x148   :  { %v364_v10 = vpop.f32.mrb[10].mxu1 }
 0x149   :  { %v6890_v12 = vadd.f32 %v364_v10, %v150_v45  ;;  %v4412_v13 = vpop.f32.mrb[11].mxu1 }
 0x14c   :  { %v369_v22 = vpop.f32.mrb[12].mxu1 }
 0x14d   :  { %v6896_v23 = vadd.f32 %v369_v22, %v150_v45  ;;  %v4415_v24 = vpop.f32.mrb[13].mxu1 }
 0x150   :  { %v374_v34 = vpop.f32.mrb[14].mxu1 }
 0x151   :  { %v6901_v39 = vadd.f32 %v374_v34, %v150_v45  ;;  %v4418_v44 = vpop.f32.mrb[15].mxu1 }
 0x152   :  { %v543_v29 = vpop.f32.mrb[0].mxu0 }
 0x153   :  { %v6232_v31 = vadd.f32 %v6894_v20, %v543_v29  ;;  %v545_v33 = vpop.f32.mrb[1].mxu0 }
 0x154   :  { %v6234_v41 = vadd.f32 %v6898_v30, %v545_v33  ;;  %v379_v48 = vpop.f32.mrb[16].mxu1 }
 0x155   :  { %v3969_v38 = vmul.f32 -1.442695, %v6232_v31  ;;  %v6904_v50 = vadd.f32 %v379_v48, %v150_v45  ;;  %v4421_v51 = vpop.f32.mrb[17].mxu1 }
 0x156   :  { %v3970_v54 = vmul.f32 -1.442695, %v6234_v41 }
 0x157   :  { %6350 = vpow2.f32 %v3969_v38 }
 0x158   :  { %v614_v55 = vpop.f32.mrb[18].mxu1  ;;  %6352 = vpow2.f32 %v3970_v54 }
 0x159   :  { %v4456_v59 = vpop.f32.mrb[19].mxu1  ;;  %v615_v13 = vadd.f32 %v614_v55, %v6907_v7 }
 0x161   :  { %v6351_v63 = vpop.eup %6350 }
 0x162   :  { %v628_v3 = vadd.f32 1.0, %v6351_v63  ;;  %v6353_v9 = vpop.eup %6352 }
 0x163   :  { %v635_v10 = vadd.f32 1.0, %v6353_v9 }
 0x164   :  { %6354 = vrcp.f32 %v628_v3 }
 0x165   :  { %6356 = vrcp.f32 %v635_v10 }
 0x16e   :  { %v6355_v14 = vpop.eup %6354 }
 0x16f   :  { %v638_v22 = vmul.f32 %v6355_v14, %v615_v13  ;;  %v6357_v29 = vpop.eup %6356 }
 0x170   :  { %v641_v31 = vsub.f32 1.0, %v6357_v29  ;;  %v643_v38 = vmul.f32 0.0, %v6357_v29 }
 0x171   :  { %v639_v24 = vadd.f32 %v638_v22, %v340_v19 }
 0x173   :  { %6358 = vtanh.f32 %v639_v24 }
 0x17d   :  { %v6359_v33 = vpop.eup %6358 }
 0x17e   :  { %v642_v34 = vmul.f32 %v6359_v33, %v641_v31 }
 0x180   :  { %v6910_v44 = vadd.f32 %v643_v38, %v642_v34 }
 0x182   :  { %713 = vmatmul.mubr.f32.vlgmr.msra.gmra.mrb[2].mxu0 %v6910_v44  ;;  %4490 = vmatmul.mubr.f32.vlgmr.msra.gmra.mrb[20].mxu1 %v6910_v44 }
 0x183   :  { %5282 = vmatpush1.bf16.msra.mxu0 %v6721_v16  ;;  %5313 = vmatpush3.bf16.msra.mxu1 %v6743_v42 }
 0x184   :  { %5284 = vmatprep.subr.bf16.mxu0 %v6724_v17  ;;  %5314 = vmatprep.subr.bf16.mxu1 %v6631_v0 }
 0x185   :  { %884 = vmatprep.mubr.f32.mxu0 %v6632_v1  ;;  %4524 = vmatprep.mubr.msk.f32.mxu1 %vm6633_vm0, %v6632_v1 }
 0x187   :  { %5286 = vmatpush1.bf16.msra.mxu0 %v6729_v26  ;;  %5316 = vmatpush3.bf16.msra.mxu1 %v6755_v52 }
 0x188   :  { %5288 = vmatprep.subr.bf16.mxu0 %v6732_v27  ;;  %5317 = vmatprep.subr.bf16.mxu1 %v6631_v0 }
 0x18b   :  { %5290 = vmatpush1.bf16.msra.mxu0 %v6737_v36  ;;  %5319 = vmatpush3.bf16.msra.mxu1 %v6768_v62 }
 0x18c   :  { %5292 = vmatprep.subr.bf16.mxu0 %v6740_v37  ;;  %5320 = vmatprep.subr.bf16.mxu1 %v6631_v0 }
 0x18f   :  { %5294 = vmatpush1.bf16.msra.mxu0 %v6747_v46  ;;  %5322 = vmatpush3.bf16.msra.mxu1 %v6781_v11 }
 0x190   :  { %5296 = vmatprep.subr.bf16.mxu0 %v6750_v47  ;;  %5323 = vmatprep.subr.bf16.mxu1 %v6631_v0 }
 0x193   :  { %5298 = vmatpush1.bf16.msra.mxu0 %v6760_v56  ;;  %5325 = vmatpush3.bf16.msra.mxu1 %v6794_v21 }
 0x194   :  { %5300 = vmatprep.subr.bf16.mxu0 %v6763_v57  ;;  %5326 = vmatprep.subr.bf16.mxu1 %v6631_v0 }
 0x197   :  { %5302 = vmatpush1.bf16.msra.mxu0 %v6773_v4  ;;  %5328 = vmatpush3.bf16.msra.mxu1 %v6805_v28 }
 0x198   :  { %5304 = vmatprep.subr.bf16.mxu0 %v6776_v5  ;;  %5329 = vmatprep.subr.bf16.mxu1 %v6631_v0 }
 0x19b   :  { %5306 = vmatpush1.bf16.msra.mxu0 %v6786_v15  ;;  %5331 = vmatpush3.bf16.msra.mxu1 %v6814_v32 }
 0x19c   :  { %5308 = vmatprep.subr.bf16.mxu0 %v6789_v18  ;;  %5332 = vmatprep.subr.bf16.mxu1 %v6631_v0 }
 0x19f   :  { %5310 = vmatpush1.bf16.msra.mxu0 %v6799_v25  ;;  %5334 = vmatpush3.bf16.msra.mxu1 %v6821_v35 }
 0x1a0   :  { %5336 = vmatprep.subr.bf16.mxu0 %v6718_v8  ;;  %5367 = vmatprep.subr.bf16.mxu1 %v6631_v0 }
 0x255   :  { %v714_v43 = vpop.f32.mrb[2].mxu0  ;;  %v785_v45 = vpop.f32.mrb[20].mxu1 }
 0x256   :  { %v6236_v61 = vadd.f32 %v6894_v20, %v714_v43  ;;  %v716_v41 = vpop.f32.mrb[3].mxu0  ;;  %v4491_v48 = vpop.f32.mrb[21].mxu1  ;;  %v786_v10 = vadd.f32 %v785_v45, %v6907_v7 }
 0x257   :  { %v6238_v54 = vadd.f32 %v6898_v30, %v716_v41 }
 0x258   :  { %v3971_v51 = vmul.f32 -1.442695, %v6236_v61 }
 0x259   :  { %v3972_v55 = vmul.f32 -1.442695, %v6238_v54 }
 0x25a   :  { %6360 = vpow2.f32 %v3971_v51 }
 0x25b   :  { %6362 = vpow2.f32 %v3972_v55 }
 0x264   :  { %v6361_v59 = vpop.eup %6360 }
 0x265   :  { %v799_v63 = vadd.f32 1.0, %v6361_v59  ;;  %v6363_v3 = vpop.eup %6362 }
 0x266   :  { %v806_v9 = vadd.f32 1.0, %v6363_v3 }
 0x267   :  { %6364 = vrcp.f32 %v799_v63 }
 0x268   :  { %6366 = vrcp.f32 %v806_v9 }
 0x271   :  { %v6365_v13 = vpop.eup %6364 }
 0x272   :  { %v809_v14 = vmul.f32 %v6365_v13, %v786_v10  ;;  %v6367_v22 = vpop.eup %6366 }
 0x273   :  { %v812_v24 = vsub.f32 1.0, %v6367_v22  ;;  %v814_v33 = vmul.f32 %v6367_v22, %v6910_v44 }
 0x274   :  { %v810_v19 = vadd.f32 %v809_v14, %v6873_v49 }
 0x276   :  { %6368 = vtanh.f32 %v810_v19 }
 0x280   :  { %v6369_v29 = vpop.eup %6368 }
 0x281   :  { %v813_v31 = vmul.f32 %v6369_v29, %v812_v24 }
 0x283   :  { %v6954_v34 = vadd.f32 %v814_v33, %v813_v31 }
 0x285   :  { %885 = vmatmul.mubr.f32.vlgmr.msra.gmra.mrb[4].mxu0 %v6954_v34  ;;  %4525 = vmatmul.mubr.f32.vlgmr.msra.gmra.mrb[22].mxu1 %v6954_v34 }
 0x286   :  { %5338 = vmatpush1.bf16.msra.mxu0 %v6721_v16  ;;  %5369 = vmatpush3.bf16.msra.mxu1 %v6743_v42 }
 0x287   :  { %5340 = vmatprep.subr.bf16.mxu0 %v6724_v17  ;;  %5370 = vmatprep.subr.bf16.mxu1 %v6631_v0 }
 0x288   :  { %1056 = vmatprep.mubr.f32.mxu0 %v6632_v1  ;;  %4559 = vmatprep.mubr.msk.f32.mxu1 %vm6633_vm0, %v6632_v1 }
 0x28a   :  { %5342 = vmatpush1.bf16.msra.mxu0 %v6729_v26  ;;  %5372 = vmatpush3.bf16.msra.mxu1 %v6755_v52 }
 0x28b   :  { %5344 = vmatprep.subr.bf16.mxu0 %v6732_v27  ;;  %5373 = vmatprep.subr.bf16.mxu1 %v6631_v0 }
 0x28e   :  { %5346 = vmatpush1.bf16.msra.mxu0 %v6737_v36  ;;  %5375 = vmatpush3.bf16.msra.mxu1 %v6768_v62 }
 0x28f   :  { %5348 = vmatprep.subr.bf16.mxu0 %v6740_v37  ;;  %5376 = vmatprep.subr.bf16.mxu1 %v6631_v0 }
 0x292   :  { %5350 = vmatpush1.bf16.msra.mxu0 %v6747_v46  ;;  %5378 = vmatpush3.bf16.msra.mxu1 %v6781_v11 }
 0x293   :  { %5352 = vmatprep.subr.bf16.mxu0 %v6750_v47  ;;  %5379 = vmatprep.subr.bf16.mxu1 %v6631_v0 }
 0x296   :  { %5354 = vmatpush1.bf16.msra.mxu0 %v6760_v56  ;;  %5381 = vmatpush3.bf16.msra.mxu1 %v6794_v21 }
 0x297   :  { %5356 = vmatprep.subr.bf16.mxu0 %v6763_v57  ;;  %5382 = vmatprep.subr.bf16.mxu1 %v6631_v0 }
 0x29a   :  { %5358 = vmatpush1.bf16.msra.mxu0 %v6773_v4  ;;  %5384 = vmatpush3.bf16.msra.mxu1 %v6805_v28 }
 0x29b   :  { %5360 = vmatprep.subr.bf16.mxu0 %v6776_v5  ;;  %5385 = vmatprep.subr.bf16.mxu1 %v6631_v0 }
 0x29e   :  { %5362 = vmatpush1.bf16.msra.mxu0 %v6786_v15  ;;  %5387 = vmatpush3.bf16.msra.mxu1 %v6814_v32 }
 0x29f   :  { %5364 = vmatprep.subr.bf16.mxu0 %v6789_v18  ;;  %5388 = vmatprep.subr.bf16.mxu1 %v6631_v0 }
 0x2a2   :  { %5366 = vmatpush1.bf16.msra.mxu0 %v6799_v25  ;;  %5390 = vmatpush3.bf16.msra.mxu1 %v6821_v35 }
 0x2a3   :  { %5392 = vmatprep.subr.bf16.mxu0 %v6718_v8  ;;  %5423 = vmatprep.subr.bf16.mxu1 %v6631_v0 }
 0x358   :  { %v886_v49 = vpop.f32.mrb[4].mxu0  ;;  %v957_v38 = vpop.f32.mrb[22].mxu1 }
 0x359   :  { %v6240_v43 = vadd.f32 %v6894_v20, %v886_v49  ;;  %v888_v45 = vpop.f32.mrb[5].mxu0  ;;  %v4526_v61 = vpop.f32.mrb[23].mxu1  ;;  %v958_v3 = vadd.f32 %v957_v38, %v6907_v7 }
 0x35a   :  { %v6242_v48 = vadd.f32 %v6898_v30, %v888_v45 }
 0x35b   :  { %v3973_v41 = vmul.f32 -1.442695, %v6240_v43 }
 0x35c   :  { %v3974_v51 = vmul.f32 -1.442695, %v6242_v48 }
 0x35d   :  { %6370 = vpow2.f32 %v3973_v41 }
 0x35e   :  { %6372 = vpow2.f32 %v3974_v51 }
 0x367   :  { %v6371_v54 = vpop.eup %6370 }
 0x368   :  { %v971_v55 = vadd.f32 1.0, %v6371_v54  ;;  %v6373_v59 = vpop.eup %6372 }
 0x369   :  { %v978_v63 = vadd.f32 1.0, %v6373_v59 }
 0x36a   :  { %6374 = vrcp.f32 %v971_v55 }
 0x36b   :  { %6376 = vrcp.f32 %v978_v63 }
 0x374   :  { %v6375_v9 = vpop.eup %6374 }
 0x375   :  { %v981_v10 = vmul.f32 %v6375_v9, %v958_v3  ;;  %v6377_v14 = vpop.eup %6376 }
 0x376   :  { %v984_v19 = vsub.f32 1.0, %v6377_v14  ;;  %v986_v29 = vmul.f32 %v6377_v14, %v6954_v34 }
 0x377   :  { %v982_v13 = vadd.f32 %v981_v10, %v6875_v53 }
 0x379   :  { %6378 = vtanh.f32 %v982_v13 }
 0x383   :  { %v6379_v22 = vpop.eup %6378 }
 0x384   :  { %v985_v24 = vmul.f32 %v6379_v22, %v984_v19 }
 0x386   :  { %v6998_v31 = vadd.f32 %v986_v29, %v985_v24 }
 0x388   :  { %1057 = vmatmul.mubr.f32.vlgmr.msra.gmra.mrb[6].mxu0 %v6998_v31  ;;  %4560 = vmatmul.mubr.f32.vlgmr.msra.gmra.mrb[24].mxu1 %v6998_v31 }
 0x389   :  { %5394 = vmatpush1.bf16.msra.mxu0 %v6721_v16  ;;  %5425 = vmatpush3.bf16.msra.mxu1 %v6743_v42 }
 0x38a   :  { %5396 = vmatprep.subr.bf16.mxu0 %v6724_v17  ;;  %5426 = vmatprep.subr.bf16.mxu1 %v6631_v0 }
 0x38b   :  { %1228 = vmatprep.mubr.f32.mxu0 %v6632_v1  ;;  %4594 = vmatprep.mubr.msk.f32.mxu1 %vm6633_vm0, %v6632_v1 }
 0x38d   :  { %5398 = vmatpush1.bf16.msra.mxu0 %v6729_v26  ;;  %5428 = vmatpush3.bf16.msra.mxu1 %v6755_v52 }
 0x38e   :  { %5400 = vmatprep.subr.bf16.mxu0 %v6732_v27  ;;  %5429 = vmatprep.subr.bf16.mxu1 %v6631_v0 }
 0x391   :  { %5402 = vmatpush1.bf16.msra.mxu0 %v6737_v36  ;;  %5431 = vmatpush3.bf16.msra.mxu1 %v6768_v62 }
 0x392   :  { %5404 = vmatprep.subr.bf16.mxu0 %v6740_v37  ;;  %5432 = vmatprep.subr.bf16.mxu1 %v6631_v0 }
 0x395   :  { %5406 = vmatpush1.bf16.msra.mxu0 %v6747_v46  ;;  %5434 = vmatpush3.bf16.msra.mxu1 %v6781_v11 }
 0x396   :  { %5408 = vmatprep.subr.bf16.mxu0 %v6750_v47  ;;  %5435 = vmatprep.subr.bf16.mxu1 %v6631_v0 }
 0x399   :  { %5410 = vmatpush1.bf16.msra.mxu0 %v6760_v56  ;;  %5437 = vmatpush3.bf16.msra.mxu1 %v6794_v21 }
 0x39a   :  { %5412 = vmatprep.subr.bf16.mxu0 %v6763_v57  ;;  %5438 = vmatprep.subr.bf16.mxu1 %v6631_v0 }
 0x39d   :  { %5414 = vmatpush1.bf16.msra.mxu0 %v6773_v4  ;;  %5440 = vmatpush3.bf16.msra.mxu1 %v6805_v28 }
 0x39e   :  { %5416 = vmatprep.subr.bf16.mxu0 %v6776_v5  ;;  %5441 = vmatprep.subr.bf16.mxu1 %v6631_v0 }
 0x3a1   :  { %5418 = vmatpush1.bf16.msra.mxu0 %v6786_v15  ;;  %5443 = vmatpush3.bf16.msra.mxu1 %v6814_v32 }
 0x3a2   :  { %5420 = vmatprep.subr.bf16.mxu0 %v6789_v18  ;;  %5444 = vmatprep.subr.bf16.mxu1 %v6631_v0 }
 0x3a5   :  { %5422 = vmatpush1.bf16.msra.mxu0 %v6799_v25  ;;  %5446 = vmatpush3.bf16.msra.mxu1 %v6821_v35 }
 0x3a6   :  { %5448 = vmatprep.subr.bf16.mxu0 %v6718_v8  ;;  %5479 = vmatprep.subr.bf16.mxu1 %v6631_v0 }
 0x45b   :  { %v1058_v53 = vpop.f32.mrb[6].mxu0  ;;  %v1129_v33 = vpop.f32.mrb[24].mxu1 }
 0x45c   :  { %v6244_v49 = vadd.f32 %v6894_v20, %v1058_v53  ;;  %v1060_v38 = vpop.f32.mrb[7].mxu0  ;;  %v4561_v43 = vpop.f32.mrb[25].mxu1  ;;  %v1130_v59 = vadd.f32 %v1129_v33, %v6907_v7 }
 0x45d   :  { %v6246_v61 = vadd.f32 %v6898_v30, %v1060_v38 }
 0x45e   :  { %v3975_v45 = vmul.f32 -1.442695, %v6244_v49 }
 0x45f   :  { %v3976_v41 = vmul.f32 -1.442695, %v6246_v61 }
 0x460   :  { %6380 = vpow2.f32 %v3975_v45 }
 0x461   :  { %6382 = vpow2.f32 %v3976_v41 }
 0x46a   :  { %v6381_v48 = vpop.eup %6380 }
 0x46b   :  { %v1143_v51 = vadd.f32 1.0, %v6381_v48  ;;  %v6383_v54 = vpop.eup %6382 }
 0x46c   :  { %v1150_v55 = vadd.f32 1.0, %v6383_v54 }
 0x46d   :  { %6384 = vrcp.f32 %v1143_v51 }
 0x46e   :  { %6386 = vrcp.f32 %v1150_v55 }
 0x477   :  { %v6385_v63 = vpop.eup %6384 }
 0x478   :  { %v1153_v3 = vmul.f32 %v6385_v63, %v1130_v59  ;;  %v6387_v10 = vpop.eup %6386 }
 0x479   :  { %v1156_v13 = vsub.f32 1.0, %v6387_v10  ;;  %v1158_v22 = vmul.f32 %v6387_v10, %v6998_v31 }
 0x47a   :  { %v1154_v9 = vadd.f32 %v1153_v3, %v6877_v58 }
 0x47c   :  { %6388 = vtanh.f32 %v1154_v9 }
 0x486   :  { %v6389_v14 = vpop.eup %6388 }
 0x487   :  { %v1157_v19 = vmul.f32 %v6389_v14, %v1156_v13 }
 0x489   :  { %v7042_v24 = vadd.f32 %v1158_v22, %v1157_v19 }
 0x48b   :  { %1229 = vmatmul.mubr.f32.vlgmr.msra.gmra.mrb[8].mxu0 %v7042_v24  ;;  %4595 = vmatmul.mubr.f32.vlgmr.msra.gmra.mrb[26].mxu1 %v7042_v24 }
 0x48c   :  { %5450 = vmatpush1.bf16.msra.mxu0 %v6721_v16  ;;  %5481 = vmatpush3.bf16.msra.mxu1 %v6743_v42 }
 0x48d   :  { %5452 = vmatprep.subr.bf16.mxu0 %v6724_v17  ;;  %5482 = vmatprep.subr.bf16.mxu1 %v6631_v0 }
 0x48e   :  { %1400 = vmatprep.mubr.f32.mxu0 %v6632_v1  ;;  %4629 = vmatprep.mubr.msk.f32.mxu1 %vm6633_vm0, %v6632_v1 }
 0x490   :  { %5454 = vmatpush1.bf16.msra.mxu0 %v6729_v26  ;;  %5484 = vmatpush3.bf16.msra.mxu1 %v6755_v52 }
 0x491   :  { %5456 = vmatprep.subr.bf16.mxu0 %v6732_v27  ;;  %5485 = vmatprep.subr.bf16.mxu1 %v6631_v0 }
 0x494   :  { %5458 = vmatpush1.bf16.msra.mxu0 %v6737_v36  ;;  %5487 = vmatpush3.bf16.msra.mxu1 %v6768_v62 }
 0x495   :  { %5460 = vmatprep.subr.bf16.mxu0 %v6740_v37  ;;  %5488 = vmatprep.subr.bf16.mxu1 %v6631_v0 }
 0x498   :  { %5462 = vmatpush1.bf16.msra.mxu0 %v6747_v46  ;;  %5490 = vmatpush3.bf16.msra.mxu1 %v6781_v11 }
 0x499   :  { %5464 = vmatprep.subr.bf16.mxu0 %v6750_v47  ;;  %5491 = vmatprep.subr.bf16.mxu1 %v6631_v0 }
 0x49c   :  { %5466 = vmatpush1.bf16.msra.mxu0 %v6760_v56  ;;  %5493 = vmatpush3.bf16.msra.mxu1 %v6794_v21 }
 0x49d   :  { %5468 = vmatprep.subr.bf16.mxu0 %v6763_v57  ;;  %5494 = vmatprep.subr.bf16.mxu1 %v6631_v0 }
 0x4a0   :  { %5470 = vmatpush1.bf16.msra.mxu0 %v6773_v4  ;;  %5496 = vmatpush3.bf16.msra.mxu1 %v6805_v28 }
 0x4a1   :  { %5472 = vmatprep.subr.bf16.mxu0 %v6776_v5  ;;  %5497 = vmatprep.subr.bf16.mxu1 %v6631_v0 }
 0x4a4   :  { %5474 = vmatpush1.bf16.msra.mxu0 %v6786_v15  ;;  %5499 = vmatpush3.bf16.msra.mxu1 %v6814_v32 }
 0x4a5   :  { %5476 = vmatprep.subr.bf16.mxu0 %v6789_v18  ;;  %5500 = vmatprep.subr.bf16.mxu1 %v6631_v0 }
 0x4a8   :  { %5478 = vmatpush1.bf16.msra.mxu0 %v6799_v25  ;;  %5502 = vmatpush3.bf16.msra.mxu1 %v6821_v35 }
 0x4a9   :  { %5504 = vmatprep.subr.bf16.mxu0 %v6718_v8  ;;  %5535 = vmatprep.subr.bf16.mxu1 %v6631_v0 }
 0x55e   :  { %v1230_v58 = vpop.f32.mrb[8].mxu0  ;;  %v1301_v29 = vpop.f32.mrb[26].mxu1 }
 0x55f   :  { %v6248_v53 = vadd.f32 %v6894_v20, %v1230_v58  ;;  %v1232_v33 = vpop.f32.mrb[9].mxu0  ;;  %v4596_v49 = vpop.f32.mrb[27].mxu1  ;;  %v1302_v54 = vadd.f32 %v1301_v29, %v6907_v7 }
 0x560   :  { %v6250_v43 = vadd.f32 %v6898_v30, %v1232_v33 }
 0x561   :  { %v3977_v38 = vmul.f32 -1.442695, %v6248_v53 }
 0x562   :  { %v3978_v45 = vmul.f32 -1.442695, %v6250_v43 }
 0x563   :  { %6390 = vpow2.f32 %v3977_v38 }
 0x564   :  { %6392 = vpow2.f32 %v3978_v45 }
 0x56d   :  { %v6391_v61 = vpop.eup %6390 }
 0x56e   :  { %v1315_v41 = vadd.f32 1.0, %v6391_v61  ;;  %v6393_v48 = vpop.eup %6392 }
 0x56f   :  { %v1322_v51 = vadd.f32 1.0, %v6393_v48 }
 0x570   :  { %6394 = vrcp.f32 %v1315_v41 }
 0x571   :  { %6396 = vrcp.f32 %v1322_v51 }
 0x57a   :  { %v6395_v55 = vpop.eup %6394 }
 0x57b   :  { %v1325_v59 = vmul.f32 %v6395_v55, %v1302_v54  ;;  %v6397_v3 = vpop.eup %6396 }
 0x57c   :  { %v1328_v9 = vsub.f32 1.0, %v6397_v3  ;;  %v1330_v14 = vmul.f32 %v6397_v3, %v7042_v24 }
 0x57d   :  { %v1326_v63 = vadd.f32 %v1325_v59, %v6884_v2 }
 0x57f   :  { %6398 = vtanh.f32 %v1326_v63 }
 0x589   :  { %v6399_v10 = vpop.eup %6398 }
 0x58a   :  { %v1329_v13 = vmul.f32 %v6399_v10, %v1328_v9 }
 0x58c   :  { %v7086_v19 = vadd.f32 %v1330_v14, %v1329_v13 }
 0x58e   :  { %1401 = vmatmul.mubr.f32.vlgmr.msra.gmra.mrb[10].mxu0 %v7086_v19  ;;  %4630 = vmatmul.mubr.f32.vlgmr.msra.gmra.mrb[28].mxu1 %v7086_v19 }
 0x58f   :  { %5506 = vmatpush1.bf16.msra.mxu0 %v6721_v16  ;;  %5537 = vmatpush3.bf16.msra.mxu1 %v6743_v42 }
 0x590   :  { %5508 = vmatprep.subr.bf16.mxu0 %v6724_v17  ;;  %5538 = vmatprep.subr.bf16.mxu1 %v6631_v0 }
 0x591   :  { %1572 = vmatprep.mubr.f32.mxu0 %v6632_v1  ;;  %4664 = vmatprep.mubr.msk.f32.mxu1 %vm6633_vm0, %v6632_v1 }
 0x593   :  { %5510 = vmatpush1.bf16.msra.mxu0 %v6729_v26  ;;  %5540 = vmatpush3.bf16.msra.mxu1 %v6755_v52 }
 0x594   :  { %5512 = vmatprep.subr.bf16.mxu0 %v6732_v27  ;;  %5541 = vmatprep.subr.bf16.mxu1 %v6631_v0 }
 0x597   :  { %5514 = vmatpush1.bf16.msra.mxu0 %v6737_v36  ;;  %5543 = vmatpush3.bf16.msra.mxu1 %v6768_v62 }
 0x598   :  { %5516 = vmatprep.subr.bf16.mxu0 %v6740_v37  ;;  %5544 = vmatprep.subr.bf16.mxu1 %v6631_v0 }
 0x59b   :  { %5518 = vmatpush1.bf16.msra.mxu0 %v6747_v46  ;;  %5546 = vmatpush3.bf16.msra.mxu1 %v6781_v11 }
 0x59c   :  { %5520 = vmatprep.subr.bf16.mxu0 %v6750_v47  ;;  %5547 = vmatprep.subr.bf16.mxu1 %v6631_v0 }
 0x59f   :  { %5522 = vmatpush1.bf16.msra.mxu0 %v6760_v56  ;;  %5549 = vmatpush3.bf16.msra.mxu1 %v6794_v21 }
 0x5a0   :  { %5524 = vmatprep.subr.bf16.mxu0 %v6763_v57  ;;  %5550 = vmatprep.subr.bf16.mxu1 %v6631_v0 }
 0x5a3   :  { %5526 = vmatpush1.bf16.msra.mxu0 %v6773_v4  ;;  %5552 = vmatpush3.bf16.msra.mxu1 %v6805_v28 }
 0x5a4   :  { %5528 = vmatprep.subr.bf16.mxu0 %v6776_v5  ;;  %5553 = vmatprep.subr.bf16.mxu1 %v6631_v0 }
 0x5a7   :  { %5530 = vmatpush1.bf16.msra.mxu0 %v6786_v15  ;;  %5555 = vmatpush3.bf16.msra.mxu1 %v6814_v32 }
 0x5a8   :  { %5532 = vmatprep.subr.bf16.mxu0 %v6789_v18  ;;  %5556 = vmatprep.subr.bf16.mxu1 %v6631_v0 }
 0x5ab   :  { %5534 = vmatpush1.bf16.msra.mxu0 %v6799_v25  ;;  %5558 = vmatpush3.bf16.msra.mxu1 %v6821_v35 }
 0x5ac   :  { %5560 = vmatprep.subr.bf16.mxu0 %v6718_v8  ;;  %5591 = vmatprep.subr.bf16.mxu1 %v6631_v0 }
 0x661   :  { %v1402_v2 = vpop.f32.mrb[10].mxu0  ;;  %v1473_v22 = vpop.f32.mrb[28].mxu1 }
 0x662   :  { %v6252_v58 = vadd.f32 %v6894_v20, %v1402_v2  ;;  %v1404_v29 = vpop.f32.mrb[11].mxu0  ;;  %v4631_v53 = vpop.f32.mrb[29].mxu1  ;;  %v1474_v48 = vadd.f32 %v1473_v22, %v6907_v7 }
 0x663   :  { %v6254_v49 = vadd.f32 %v6898_v30, %v1404_v29 }
 0x664   :  { %v3979_v33 = vmul.f32 -1.442695, %v6252_v58 }
 0x665   :  { %v3980_v38 = vmul.f32 -1.442695, %v6254_v49 }
 0x666   :  { %6400 = vpow2.f32 %v3979_v33 }
 0x667   :  { %6402 = vpow2.f32 %v3980_v38 }
 0x670   :  { %v6401_v43 = vpop.eup %6400 }
 0x671   :  { %v1487_v45 = vadd.f32 1.0, %v6401_v43  ;;  %v6403_v61 = vpop.eup %6402 }
 0x672   :  { %v1494_v41 = vadd.f32 1.0, %v6403_v61 }
 0x673   :  { %6404 = vrcp.f32 %v1487_v45 }
 0x674   :  { %6406 = vrcp.f32 %v1494_v41 }
 0x67d   :  { %v6405_v51 = vpop.eup %6404 }
 0x67e   :  { %v1497_v54 = vmul.f32 %v6405_v51, %v1474_v48  ;;  %v6407_v59 = vpop.eup %6406 }
 0x67f   :  { %v1500_v63 = vsub.f32 1.0, %v6407_v59  ;;  %v1502_v10 = vmul.f32 %v6407_v59, %v7086_v19 }
 0x680   :  { %v1498_v55 = vadd.f32 %v1497_v54, %v6890_v12 }
 0x682   :  { %6408 = vtanh.f32 %v1498_v55 }
 0x68c   :  { %v6409_v3 = vpop.eup %6408 }
 0x68d   :  { %v1501_v9 = vmul.f32 %v6409_v3, %v1500_v63 }
 0x68f   :  { %v7130_v13 = vadd.f32 %v1502_v10, %v1501_v9  ;;  %v2038_v9 = vld [vmem:[#allocation8 + $0x1a8] sm:$0xff] }
 0x691   :  { %1573 = vmatmul.mubr.f32.vlgmr.msra.gmra.mrb[12].mxu0 %v7130_v13  ;;  %4665 = vmatmul.mubr.f32.vlgmr.msra.gmra.mrb[30].mxu1 %v7130_v13 }
 0x692   :  { %5562 = vmatpush1.bf16.msra.mxu0 %v6721_v16  ;;  %5593 = vmatpush3.bf16.msra.mxu1 %v6743_v42 }
 0x693   :  { %5564 = vmatprep.subr.bf16.mxu0 %v6724_v17  ;;  %5594 = vmatprep.subr.bf16.mxu1 %v6631_v0 }
 0x694   :  { %1744 = vmatprep.mubr.f32.mxu0 %v6632_v1  ;;  %4699 = vmatprep.mubr.msk.f32.mxu1 %vm6633_vm0, %v6632_v1 }
 0x696   :  { %5566 = vmatpush1.bf16.msra.mxu0 %v6729_v26  ;;  %5596 = vmatpush3.bf16.msra.mxu1 %v6755_v52 }
 0x697   :  { %5568 = vmatprep.subr.bf16.mxu0 %v6732_v27  ;;  %5597 = vmatprep.subr.bf16.mxu1 %v6631_v0 }
 0x69a   :  { %5570 = vmatpush1.bf16.msra.mxu0 %v6737_v36  ;;  %5599 = vmatpush3.bf16.msra.mxu1 %v6768_v62 }
 0x69b   :  { %5572 = vmatprep.subr.bf16.mxu0 %v6740_v37  ;;  %5600 = vmatprep.subr.bf16.mxu1 %v6631_v0 }
 0x69e   :  { %5574 = vmatpush1.bf16.msra.mxu0 %v6747_v46  ;;  %5602 = vmatpush3.bf16.msra.mxu1 %v6781_v11 }
 0x69f   :  { %5576 = vmatprep.subr.bf16.mxu0 %v6750_v47  ;;  %5603 = vmatprep.subr.bf16.mxu1 %v6631_v0 }
 0x6a2   :  { %5578 = vmatpush1.bf16.msra.mxu0 %v6760_v56  ;;  %5605 = vmatpush3.bf16.msra.mxu1 %v6794_v21 }
 0x6a3   :  { %5580 = vmatprep.subr.bf16.mxu0 %v6763_v57  ;;  %5606 = vmatprep.subr.bf16.mxu1 %v6631_v0 }
 0x6a6   :  { %5582 = vmatpush1.bf16.msra.mxu0 %v6773_v4  ;;  %5608 = vmatpush3.bf16.msra.mxu1 %v6805_v28 }
 0x6a7   :  { %5584 = vmatprep.subr.bf16.mxu0 %v6776_v5  ;;  %5609 = vmatprep.subr.bf16.mxu1 %v6631_v0 }
 0x6aa   :  { %5586 = vmatpush1.bf16.msra.mxu0 %v6786_v15  ;;  %5611 = vmatpush3.bf16.msra.mxu1 %v6814_v32 }
 0x6ab   :  { %5588 = vmatprep.subr.bf16.mxu0 %v6789_v18  ;;  %5612 = vmatprep.subr.bf16.mxu1 %v6631_v0 }
 0x6ae   :  { %5590 = vmatpush1.bf16.msra.mxu0 %v6799_v25  ;;  %5614 = vmatpush3.bf16.msra.mxu1 %v6821_v35 }
 0x6af   :  { %5616 = vmatprep.subr.bf16.mxu0 %v6718_v8  ;;  %5647 = vmatprep.subr.bf16.mxu1 %v6631_v0 }
 0x764   :  { %v1574_v12 = vpop.f32.mrb[12].mxu0  ;;  %v1645_v14 = vpop.f32.mrb[30].mxu1 }
 0x765   :  { %v6256_v2 = vadd.f32 %v6894_v20, %v1574_v12  ;;  %v1576_v22 = vpop.f32.mrb[13].mxu0  ;;  %v4666_v58 = vpop.f32.mrb[31].mxu1  ;;  %v1646_v8 = vadd.f32 %v1645_v14, %v6907_v7  ;;  %v2040_v12 = vld [vmem:[#allocation8 + $0x1b8] sm:$0xff]  ;;  %v2043_v14 = vld [vmem:[#allocation8 + $0x1d0] sm:$0xff] }
 0x766   :  { %v6258_v53 = vadd.f32 %v6898_v30, %v1576_v22 }
 0x767   :  { %v3981_v29 = vmul.f32 -1.442695, %v6256_v2 }
 0x768   :  { %v3982_v33 = vmul.f32 -1.442695, %v6258_v53  ;;  %v2039_v53 = vld [vmem:[#allocation8 + $0x1b0] sm:$0xff] }
 0x769   :  { %6410 = vpow2.f32 %v3981_v29 }
 0x76a   :  { %6412 = vpow2.f32 %v3982_v33 }
 0x773   :  { %v6411_v49 = vpop.eup %6410 }
 0x774   :  { %v1659_v38 = vadd.f32 1.0, %v6411_v49  ;;  %v6413_v43 = vpop.eup %6412  ;;  %v5675_v49 = vpack.c.bf16 %v2043_v14, %v2040_v12  ;;  %v2070_v12 = vld [vmem:[#allocation8 + $0x2a8] sm:$0xff]  ;;  %v2073_v14 = vld [vmem:[#allocation8 + $0x2c0] sm:$0xff] }
 0x775   :  { %v1666_v45 = vadd.f32 1.0, %v6413_v43  ;;  %v2044_v43 = vld [vmem:[#allocation8 + $0x1d8] sm:$0xff] }
 0x776   :  { %6414 = vrcp.f32 %v1659_v38  ;;  %v2041_v38 = vld [vmem:[#allocation8 + $0x1c0] sm:$0xff] }
 0x777   :  { %6416 = vrcp.f32 %v1666_v45  ;;  %v2046_v45 = vld [vmem:[#allocation8 + $0x1e8] sm:$0xff] }
 0x780   :  { %v6415_v61 = vpop.eup %6414 }
 0x781   :  { %v1669_v41 = vmul.f32 %v6415_v61, %v1646_v8  ;;  %v6417_v51 = vpop.eup %6416  ;;  %v2049_v8 = vld [vmem:[#allocation8 + $0x200] sm:$0xff] }
 0x782   :  { %v1672_v54 = vsub.f32 1.0, %v6417_v51  ;;  %v1674_v63 = vmul.f32 %v6417_v51, %v7130_v13  ;;  %v5679_v51 = vpack.c.bf16 %v2049_v8, %v2046_v45 }
 0x783   :  { %v1670_v48 = vadd.f32 %v1669_v41, %v6896_v23  ;;  %v2035_v23 = vld [vmem:[#allocation8 + $0x190] sm:$0xff]  ;;  %v5707_v41 = vpack.c.bf16 %v2044_v43, %v2041_v38  ;;  %v2076_v38 = vld [vmem:[#allocation8 + $0x2d8] sm:$0xff] }
 0x784   :  { %v5704_v29 = vpack.c.bf16 %v2038_v9, %v2035_v23  ;;  %v2066_v23 = vld [vmem:[#allocation8 + $0x288] sm:$0xff]  ;;  %v2065_v9 = vld [vmem:[#allocation8 + $0x280] sm:$0xff]  ;;  %v2079_v43 = vld [vmem:[#allocation8 + $0x2f0] sm:$0xff] }
 0x785   :  { %6418 = vtanh.f32 %v1670_v48  ;;  %v2045_v48 = vld [vmem:[#allocation8 + $0x1e0] sm:$0xff] }
 0x78f   :  { %v6419_v55 = vpop.eup %6418 }
 0x790   :  { %v1673_v59 = vmul.f32 %v6419_v55, %v1672_v54  ;;  %v2048_v54 = vld [vmem:[#allocation8 + $0x1f8] sm:$0xff]  ;;  %v2047_v55 = vld [vmem:[#allocation8 + $0x1f0] sm:$0xff] }
 0x792   :  { %v7174_v3 = vadd.f32 %v1674_v63, %v1673_v59  ;;  %v2050_v59 = vld [vmem:[#allocation8 + $0x208] sm:$0xff]  ;;  %v2052_v63 = vld [vmem:[#allocation8 + $0x218] sm:$0xff] }
 0x794   :  { %1745 = vmatmul.mubr.f32.vlgmr.msra.gmra.mrb[14].mxu0 %v7174_v3  ;;  %4700 = vmatmul.mubr.f32.vlgmr.msra.gmra.mrb[32].mxu1 %v7174_v3 }
 0x795   :  { %5618 = vmatpush1.bf16.msra.mxu0 %v6721_v16  ;;  %5649 = vmatpush3.bf16.msra.mxu1 %v6743_v42  ;;  %v2034_v16 = vld [vmem:[#allocation8 + $0x188] sm:$0xff] }
 0x796   :  { %5620 = vmatprep.subr.bf16.mxu0 %v6724_v17  ;;  %5650 = vmatprep.subr.bf16.mxu1 %v6631_v0  ;;  %v2037_v17 = vld [vmem:[#allocation8 + $0x1a0] sm:$0xff] }
 0x797   :  { %1916 = vmatprep.mubr.f32.mxu0 %v6632_v1  ;;  %4734 = vmatprep.mubr.msk.f32.mxu1 %vm6633_vm0, %v6632_v1 }
 0x799   :  { %5622 = vmatpush1.bf16.msra.mxu0 %v6729_v26  ;;  %5652 = vmatpush3.bf16.msra.mxu1 %v6755_v52  ;;  %v5671_v26 = vpack.c.bf16 %v2037_v17, %v2034_v16  ;;  %v2055_v16 = vld [vmem:[#allocation8 + $0x230] sm:$0xff]  ;;  %v5681_v17 = vpack.c.bf16 %v2048_v54, %v2045_v48  ;;  %v2078_v48 = vld [vmem:[#allocation8 + $0x2e8] sm:$0xff]  ;;  %v2080_v54 = vld [vmem:[#allocation8 + $0x2f8] sm:$0xff] }
 0x79a   :  { %5624 = vmatprep.subr.bf16.mxu0 %v6732_v27  ;;  %5653 = vmatprep.subr.bf16.mxu1 %v6631_v0 }
 0x79d   :  { %5626 = vmatpush1.bf16.msra.mxu0 %v6737_v36  ;;  %5655 = vmatpush3.bf16.msra.mxu1 %v6768_v62 }
 0x79e   :  { %5628 = vmatprep.subr.bf16.mxu0 %v6740_v37  ;;  %5656 = vmatprep.subr.bf16.mxu1 %v6631_v0 }
 0x7a1   :  { %5630 = vmatpush1.bf16.msra.mxu0 %v6747_v46  ;;  %5658 = vmatpush3.bf16.msra.mxu1 %v6781_v11 }
 0x7a2   :  { %5632 = vmatprep.subr.bf16.mxu0 %v6750_v47  ;;  %5659 = vmatprep.subr.bf16.mxu1 %v6631_v0 }
 0x7a5   :  { %5634 = vmatpush1.bf16.msra.mxu0 %v6760_v56  ;;  %5661 = vmatpush3.bf16.msra.mxu1 %v6794_v21 }
 0x7a6   :  { %5636 = vmatprep.subr.bf16.mxu0 %v6763_v57  ;;  %5662 = vmatprep.subr.bf16.mxu1 %v6631_v0 }
 0x7a9   :  { %5638 = vmatpush1.bf16.msra.mxu0 %v6773_v4  ;;  %5664 = vmatpush3.bf16.msra.mxu1 %v6805_v28  ;;  %v2033_v28 = vld [vmem:[#allocation8 + $0x180] sm:$0xff] }
 0x7aa   :  { %5640 = vmatprep.subr.bf16.mxu0 %v6776_v5  ;;  %5665 = vmatprep.subr.bf16.mxu1 %v6631_v0 }
 0x7ad   :  { %5642 = vmatpush1.bf16.msra.mxu0 %v6786_v15  ;;  %5667 = vmatpush3.bf16.msra.mxu1 %v6814_v32 }
 0x7ae   :  { %5644 = vmatprep.subr.bf16.mxu0 %v6789_v18  ;;  %5668 = vmatprep.subr.bf16.mxu1 %v6631_v0 }
 0x7b1   :  { %5646 = vmatpush1.bf16.msra.mxu0 %v6799_v25  ;;  %5670 = vmatpush3.bf16.msra.mxu1 %v6821_v35  ;;  %v2036_v35 = vld [vmem:[#allocation8 + $0x198] sm:$0xff] }
 0x7b2   :  { %5703 = vmatprep.subr.bf16.mxu1 %v6631_v0  ;;  %5672 = vmatprep.subr.bf16.mxu0 %v5671_v26  ;;  %v5673_v58 = vpack.c.bf16 %v2036_v35, %v2033_v28  ;;  %v5710_v26 = vpack.c.bf16 %v2050_v59, %v2047_v55 }
 0x867   :  { %v1746_v27 = vpop.f32.mrb[14].mxu0  ;;  %v1817_v36 = vpop.f32.mrb[32].mxu1 }
 0x868   :  { %v6260_v37 = vadd.f32 %v6894_v20, %v1746_v27  ;;  %v1748_v42 = vpop.f32.mrb[15].mxu0  ;;  %v4701_v46 = vpop.f32.mrb[33].mxu1  ;;  %v1818_v11 = vadd.f32 %v1817_v36, %v6907_v7  ;;  %v2051_v27 = vld [vmem:[#allocation8 + $0x210] sm:$0xff]  ;;  %v5683_v36 = vpack.c.bf16 %v2055_v16, %v2052_v63 }
 0x869   :  { %v6262_v52 = vadd.f32 %v6898_v30, %v1748_v42  ;;  %v2053_v42 = vld [vmem:[#allocation8 + $0x220] sm:$0xff]  ;;  %v2056_v46 = vld [vmem:[#allocation8 + $0x238] sm:$0xff]  ;;  %v2367_v63 = vld [vmem:[#allocation10 + $0x1d0] sm:$0xff] }
 0x86a   :  { %v3983_v47 = vmul.f32 -1.442695, %v6260_v37  ;;  %v2054_v37 = vld [vmem:[#allocation8 + $0x228] sm:$0xff] }
 0x86b   :  { %v3984_v56 = vmul.f32 -1.442695, %v6262_v52  ;;  %v2061_v52 = vld [vmem:[#allocation8 + $0x260] sm:$0xff] }
 0x86c   :  { %6420 = vpow2.f32 %v3983_v47  ;;  %v2058_v47 = vld [vmem:[#allocation8 + $0x248] sm:$0xff] }
 0x86d   :  { %6422 = vpow2.f32 %v3984_v56  ;;  %v5685_v56 = vpack.c.bf16 %v2054_v37, %v2051_v27  ;;  %v2373_v37 = vld [vmem:[#allocation10 + $0x200] sm:$0xff] }
 0x876   :  { %v6421_v57 = vpop.eup %6420 }
 0x877   :  { %v1831_v62 = vadd.f32 1.0, %v6421_v57  ;;  %v6423_v4 = vpop.eup %6422  ;;  %v5713_v57 = vpack.c.bf16 %v2056_v46, %v2053_v42  ;;  %v2369_v46 = vld [vmem:[#allocation10 + $0x1e0] sm:$0xff] }
 0x878   :  { %v1838_v5 = vadd.f32 1.0, %v6423_v4  ;;  %v5687_v4 = vpack.c.bf16 %v2061_v52, %v2058_v47  ;;  %v2372_v47 = vld [vmem:[#allocation10 + $0x1f8] sm:$0xff] }
 0x879   :  { %6424 = vrcp.f32 %v1831_v62  ;;  %v2057_v62 = vld [vmem:[#allocation8 + $0x240] sm:$0xff]  ;;  %v7286_v52 = vpack.c.bf16 %v2372_v47, %v2369_v46  ;;  %v2392_v46 = vld [vmem:[#allocation10 + $0x298] sm:$0xff] }
 0x87a   :  { %6426 = vrcp.f32 %v1838_v5  ;;  %v2060_v5 = vld [vmem:[#allocation8 + $0x258] sm:$0xff] }
 0x883   :  { %v6425_v15 = vpop.eup %6424 }
 0x884   :  { %v1841_v18 = vmul.f32 %v6425_v15, %v1818_v11  ;;  %v6427_v25 = vpop.eup %6426  ;;  %v2059_v11 = vld [vmem:[#allocation8 + $0x250] sm:$0xff]  ;;  %v2062_v15 = vld [vmem:[#allocation8 + $0x268] sm:$0xff] }
 0x885   :  { %v1844_v32 = vsub.f32 1.0, %v6427_v25  ;;  %v1846_v22 = vmul.f32 %v6427_v25, %v7174_v3  ;;  %v5689_v25 = vpack.c.bf16 %v2060_v5, %v2057_v62  ;;  %v5716_v28 = vpack.c.bf16 %v2062_v15, %v2059_v11  ;;  %v2378_v5 = vld [vmem:[#allocation10 + $0x228] sm:$0xff] }
 0x886   :  { %v1842_v21 = vadd.f32 %v1841_v18, %v6901_v39  ;;  %v2042_v39 = vld [vmem:[#allocation8 + $0x1c8] sm:$0xff]  ;;  %v2064_v18 = vld [vmem:[#allocation8 + $0x278] sm:$0xff] }
 0x887   :  { %v5677_v61 = vpack.c.bf16 %v2042_v39, %v2039_v53  ;;  %v2072_v53 = vld [vmem:[#allocation8 + $0x2b8] sm:$0xff]  ;;  %v2074_v39 = vld [vmem:[#allocation8 + $0x2c8] sm:$0xff] }
 0x888   :  { %6428 = vtanh.f32 %v1842_v21  ;;  %v2067_v21 = vld [vmem:[#allocation8 + $0x290] sm:$0xff]  ;;  %v2382_v15 = vld [vmem:[#allocation10 + $0x248] sm:$0xff] }
 0x889   :  { %v5691_v35 = vpack.c.bf16 %v2067_v21, %v2064_v18  ;;  %v2385_v18 = vld [vmem:[#allocation10 + $0x260] sm:$0xff] }
 0x88a   :  { %v7296_v21 = vpack.c.bf16 %v2385_v18, %v2382_v15  ;;  %v2404_v15 = vld [vmem:[#allocation10 + $0x2f8] sm:$0xff] }
 0x892   :  { %v6429_v10 = vpop.eup %6428 }
 0x893   :  { %v1845_v2 = vmul.f32 %v6429_v10, %v1844_v32  ;;  %v2063_v32 = vld [vmem:[#allocation8 + $0x270] sm:$0xff]  ;;  %v2068_v10 = vld [vmem:[#allocation8 + $0x298] sm:$0xff] }
 0x895   :  { %v7217_v33 = vadd.f32 %v1846_v22, %v1845_v2  ;;  %v5693_v2 = vpack.c.bf16 %v2066_v23, %v2063_v32  ;;  %v5719_v22 = vpack.c.bf16 %v2068_v10, %v2065_v9  ;;  %v2391_v23 = vld [vmem:[#allocation10 + $0x290] sm:$0xff] }
 0x896   :  { %v2387_v10 = vld [vmem:[#allocation10 + $0x270] sm:$0xff] }
 0x897   :  { %1917 = vmatmul.mubr.f32.vlgmr.msra.gmra.mrb[16].mxu0 %v7217_v33  ;;  %4735 = vmatmul.mubr.f32.vlgmr.msra.gmra.mrb[34].mxu1 %v7217_v33 }
 0x898   :  { %5674 = vmatpush1.bf16.msra.mxu0 %v5673_v58  ;;  %5705 = vmatpush3.bf16.msra.mxu1 %v5704_v29  ;;  %v2069_v58 = vld [vmem:[#allocation8 + $0x2a0] sm:$0xff]  ;;  %v5695_v29 = vpack.c.bf16 %v2073_v14, %v2070_v12  ;;  %v2390_v12 = vld [vmem:[#allocation10 + $0x288] sm:$0xff] }
 0x899   :  { %5676 = vmatprep.subr.bf16.mxu0 %v5675_v49  ;;  %5706 = vmatprep.subr.bf16.mxu1 %v6631_v0  ;;  %v2071_v49 = vld [vmem:[#allocation8 + $0x2b0] sm:$0xff]  ;;  %v5697_v45 = vpack.c.bf16 %v2072_v53, %v2069_v58  ;;  %v7304_v14 = vpack.c.bf16 %v2390_v12, %v2387_v10  ;;  %v2396_v53 = vld [vmem:[#allocation10 + $0x2b8] sm:$0xff] }
 0x89a   :  { %2163 = vmatprep.mubr.f32.mxu0 %v6632_v1  ;;  %4769 = vmatprep.mubr.msk.f32.mxu1 %vm6633_vm0, %v6632_v1  ;;  %v5722_v8 = vpack.c.bf16 %v2074_v39, %v2071_v49  ;;  %v2359_v49 = vld [vmem:[#allocation10 + $0x190] sm:$0xff]  ;;  %v2362_v39 = vld [vmem:[#allocation10 + $0x1a8] sm:$0xff] }
 0x89c   :  { %5678 = vmatpush1.bf16.msra.mxu0 %v5677_v61  ;;  %5708 = vmatpush3.bf16.msra.mxu1 %v5707_v41  ;;  %v2075_v61 = vld [vmem:[#allocation8 + $0x2d0] sm:$0xff]  ;;  %v5699_v41 = vpack.c.bf16 %v2079_v43, %v2076_v38  ;;  %v7313_v43 = vpack.c.bf16 %v2362_v39, %v2359_v49 }
 0x89d   :  { %5680 = vmatprep.subr.bf16.mxu0 %v5679_v51  ;;  %5709 = vmatprep.subr.bf16.mxu1 %v6631_v0  ;;  %v2077_v51 = vld [vmem:[#allocation8 + $0x2e0] sm:$0xff]  ;;  %v5701_v55 = vpack.c.bf16 %v2078_v48, %v2075_v61  ;;  %v2402_v48 = vld [vmem:[#allocation10 + $0x2e8] sm:$0xff] }
 0x89e   :  { %v5725_v59 = vpack.c.bf16 %v2080_v54, %v2077_v51  ;;  %v2365_v51 = vld [vmem:[#allocation10 + $0x1c0] sm:$0xff]  ;;  %v2368_v54 = vld [vmem:[#allocation10 + $0x1d8] sm:$0xff] }
 0x8a0   :  { %5682 = vmatpush1.bf16.msra.mxu0 %v5681_v17  ;;  %5711 = vmatpush3.bf16.msra.mxu1 %v5710_v26  ;;  %v2363_v17 = vld [vmem:[#allocation10 + $0x1b0] sm:$0xff]  ;;  %v2366_v26 = vld [vmem:[#allocation10 + $0x1c8] sm:$0xff] }
 0x8a1   :  { %5684 = vmatprep.subr.bf16.mxu0 %v5683_v36  ;;  %5712 = vmatprep.subr.bf16.mxu1 %v6631_v0  ;;  %v7280_v27 = vpack.c.bf16 %v2366_v26, %v2363_v17  ;;  %v2370_v36 = vld [vmem:[#allocation10 + $0x1e8] sm:$0xff]  ;;  %v2383_v17 = vld [vmem:[#allocation10 + $0x250] sm:$0xff] }
 0x8a2   :  { %v7284_v42 = vpack.c.bf16 %v2373_v37, %v2370_v36  ;;  %v2386_v26 = vld [vmem:[#allocation10 + $0x268] sm:$0xff]  ;;  %v2389_v37 = vld [vmem:[#allocation10 + $0x280] sm:$0xff] }
 0x8a3   :  { %v7337_v36 = vpack.c.bf16 %v2386_v26, %v2383_v17  ;;  %v7340_v47 = vpack.c.bf16 %v2392_v46, %v2389_v37 }
 0x8a4   :  { %5686 = vmatpush1.bf16.msra.mxu0 %v5685_v56  ;;  %5714 = vmatpush3.bf16.msra.mxu1 %v5713_v57  ;;  %v2376_v56 = vld [vmem:[#allocation10 + $0x218] sm:$0xff]  ;;  %v2379_v57 = vld [vmem:[#allocation10 + $0x230] sm:$0xff] }
 0x8a5   :  { %5688 = vmatprep.subr.bf16.mxu0 %v5687_v4  ;;  %5715 = vmatprep.subr.bf16.mxu1 %v6631_v0  ;;  %v7290_v62 = vpack.c.bf16 %v2379_v57, %v2376_v56  ;;  %v2375_v4 = vld [vmem:[#allocation10 + $0x210] sm:$0xff]  ;;  %v2398_v57 = vld [vmem:[#allocation10 + $0x2c8] sm:$0xff] }
 0x8a6   :  { %v7292_v11 = vpack.c.bf16 %v2378_v5, %v2375_v4  ;;  %v2395_v56 = vld [vmem:[#allocation10 + $0x2b0] sm:$0xff]  ;;  %v2401_v5 = vld [vmem:[#allocation10 + $0x2e0] sm:$0xff] }
 0x8a7   :  { %v7344_v4 = vpack.c.bf16 %v2398_v57, %v2395_v56  ;;  %v7348_v18 = vpack.c.bf16 %v2404_v15, %v2401_v5 }
 0x8a8   :  { %5690 = vmatpush1.bf16.msra.mxu0 %v5689_v25  ;;  %5717 = vmatpush3.bf16.msra.mxu1 %v5716_v28  ;;  %v2381_v25 = vld [vmem:[#allocation10 + $0x240] sm:$0xff]  ;;  %v2384_v28 = vld [vmem:[#allocation10 + $0x258] sm:$0xff] }
 0x8a9   :  { %5692 = vmatprep.subr.bf16.mxu0 %v5691_v35  ;;  %5718 = vmatprep.subr.bf16.mxu1 %v6631_v0  ;;  %v7299_v32 = vpack.c.bf16 %v2384_v28, %v2381_v25  ;;  %v2388_v35 = vld [vmem:[#allocation10 + $0x278] sm:$0xff] }
 0x8aa   :  { %v7302_v9 = vpack.c.bf16 %v2391_v23, %v2388_v35 }
 0x8ac   :  { %5694 = vmatpush1.bf16.msra.mxu0 %v5693_v2  ;;  %5720 = vmatpush3.bf16.msra.mxu1 %v5719_v22  ;;  %v2394_v2 = vld [vmem:[#allocation10 + $0x2a8] sm:$0xff]  ;;  %v2397_v22 = vld [vmem:[#allocation10 + $0x2c0] sm:$0xff] }
 0x8ad   :  { %5696 = vmatprep.subr.bf16.mxu0 %v5695_v29  ;;  %5721 = vmatprep.subr.bf16.mxu1 %v6631_v0  ;;  %v7308_v58 = vpack.c.bf16 %v2397_v22, %v2394_v2  ;;  %v2393_v29 = vld [vmem:[#allocation10 + $0x2a0] sm:$0xff] }
 0x8ae   :  { %v7310_v38 = vpack.c.bf16 %v2396_v53, %v2393_v29 }
 0x8b0   :  { %5698 = vmatpush1.bf16.msra.mxu0 %v5697_v45  ;;  %5723 = vmatpush3.bf16.msra.mxu1 %v5722_v8  ;;  %v2400_v45 = vld [vmem:[#allocation10 + $0x2d8] sm:$0xff]  ;;  %v2403_v8 = vld [vmem:[#allocation10 + $0x2f0] sm:$0xff] }
 0x8b1   :  { %5700 = vmatprep.subr.bf16.mxu0 %v5699_v41  ;;  %5724 = vmatprep.subr.bf16.mxu1 %v6631_v0  ;;  %v7317_v61 = vpack.c.bf16 %v2403_v8, %v2400_v45  ;;  %v2399_v41 = vld [vmem:[#allocation10 + $0x2d0] sm:$0xff] }
 0x8b4   :  { %5702 = vmatpush1.bf16.msra.mxu0 %v5701_v55  ;;  %5726 = vmatpush3.bf16.msra.mxu1 %v5725_v59  ;;  %v7320_v55 = vpack.c.bf16 %v2402_v48, %v2399_v41  ;;  %v7323_v59 = vpack.c.bf16 %v2368_v54, %v2365_v51 }
 0x8b5   :  { %5759 = vmatprep.subr.bf16.mxu1 %v6631_v0 }
 0x8b7   :  { %2164 = vmatmul.mubr.f32.vlgmr.msra.gmra.mrb[18].mxu0 %v6910_v44  ;;  %4770 = vmatmul.mubr.f32.vlgmr.msra.gmra.mrb[36].mxu1 %v6910_v44  ;;  %v2358_v44 = vld [vmem:[#allocation10 + $0x188] sm:$0xff] }
 0x8b8   :  { %2169 = vmatprep.mubr.f32.mxu0 %v6632_v1  ;;  %4772 = vmatprep.mubr.msk.f32.mxu1 %vm6633_vm0, %v6632_v1 }
 0x8b9   :  { %5761 = vmatpush3.bf16.msra.mxu1 %v7313_v43 }
 0x8ba   :  { %5762 = vmatprep.subr.bf16.mxu1 %v6631_v0 }
 0x8bb   :  { %2170 = vmatmul.mubr.f32.gmra.mrb[20].mxu0 %v6954_v34  ;;  %4773 = vmatmul.mubr.f32.gmra.mrb[38].mxu1 %v6954_v34  ;;  %v2361_v34 = vld [vmem:[#allocation10 + $0x1a0] sm:$0xff] }
 0x8bc   :  { %2175 = vmatprep.mubr.f32.mxu0 %v6632_v1  ;;  %4775 = vmatprep.mubr.msk.f32.mxu1 %vm6633_vm0, %v6632_v1 }
 0x8bd   :  { %5764 = vmatpush3.bf16.msra.mxu1 %v7323_v59 }
 0x8be   :  { %5765 = vmatprep.subr.bf16.mxu1 %v6631_v0 }
 0x8bf   :  { %2176 = vmatmul.mubr.f32.gmra.mrb[22].mxu0 %v6998_v31  ;;  %4776 = vmatmul.mubr.f32.gmra.mrb[40].mxu1 %v6998_v31  ;;  %v7272_v31 = vpack.c.bf16 %v2361_v34, %v2358_v44  ;;  %v2371_v44 = vld [vmem:[#allocation10 + $0x1f0] sm:$0xff]  ;;  %v2374_v34 = vld [vmem:[#allocation10 + $0x208] sm:$0xff] }
 0x8c0   :  { %2181 = vmatprep.mubr.f32.mxu0 %v6632_v1  ;;  %4778 = vmatprep.mubr.msk.f32.mxu1 %vm6633_vm0, %v6632_v1 }
 0x8c1   :  { %5728 = vmatprep.subr.bf16.mxu0 %v7272_v31 }
 0x8c3   :  { %2182 = vmatmul.mubr.f32.gmra.mrb[24].mxu0 %v7042_v24  ;;  %4779 = vmatmul.mubr.f32.gmra.mrb[42].mxu1 %v7042_v24  ;;  %v2357_v24 = vld [vmem:[#allocation10 + $0x180] sm:$0xff] }
 0x8c4   :  { %2187 = vmatprep.mubr.f32.mxu0 %v6632_v1  ;;  %4781 = vmatprep.mubr.msk.f32.mxu1 %vm6633_vm0, %v6632_v1 }
 0x8c7   :  { %2188 = vmatmul.mubr.f32.gmra.mrb[26].mxu0 %v7086_v19  ;;  %4782 = vmatmul.mubr.f32.gmra.mrb[44].mxu1 %v7086_v19  ;;  %v2360_v19 = vld [vmem:[#allocation10 + $0x198] sm:$0xff] }
 0x8c8   :  { %2193 = vmatprep.mubr.f32.mxu0 %v6632_v1  ;;  %4784 = vmatprep.mubr.msk.f32.mxu1 %vm6633_vm0, %v6632_v1 }
 0x8cb   :  { %2194 = vmatmul.mubr.f32.gmra.mrb[28].mxu0 %v7130_v13  ;;  %4785 = vmatmul.mubr.f32.gmra.mrb[46].mxu1 %v7130_v13  ;;  %v7274_v13 = vpack.c.bf16 %v2360_v19, %v2357_v24  ;;  %v7329_v24 = vpack.c.bf16 %v2374_v34, %v2371_v44  ;;  %v2377_v19 = vld [vmem:[#allocation10 + $0x220] sm:$0xff] }
 0x8cc   :  { %2199 = vmatprep.mubr.f32.mxu0 %v6632_v1  ;;  %4787 = vmatprep.mubr.msk.f32.mxu1 %vm6633_vm0, %v6632_v1 }
 0x8cd   :  { %5730 = vmatpush1.bf16.msra.mxu0 %v7274_v13  ;;  %5767 = vmatpush3.bf16.msra.mxu1 %v7329_v24 }
 0x8ce   :  { %5768 = vmatprep.subr.bf16.mxu1 %v6631_v0 }
 0x8cf   :  { %2200 = vmatmul.mubr.f32.gmra.mrb[30].mxu0 %v7174_v3  ;;  %4788 = vmatmul.mubr.f32.gmra.mrb[48].mxu1 %v7174_v3  ;;  %v2364_v3 = vld [vmem:[#allocation10 + $0x1b8] sm:$0xff] }
 0x8d0   :  { %2205 = vmatprep.mubr.f32.mxu0 %v6632_v1  ;;  %4790 = vmatprep.mubr.msk.f32.mxu1 %vm6633_vm0, %v6632_v1  ;;  %v7278_v16 = vpack.c.bf16 %v2367_v63, %v2364_v3  ;;  %v2380_v3 = vld [vmem:[#allocation10 + $0x238] sm:$0xff] }
 0x8d1   :  { %v7333_v63 = vpack.c.bf16 %v2380_v3, %v2377_v19 }
 0x8d2   :  { %5732 = vmatprep.subr.bf16.mxu0 %v7278_v16 }
 0x8d3   :  { %2206 = vmatmul.mubr.f32.gmra.mrb[32].mxu0 %v7217_v33  ;;  %4791 = vmatmul.mubr.f32.gmra.mrb[50].mxu1 %v7217_v33 }
 0x8d4   :  { %2211 = vmatprep.mubr.f32.mxu0 %v6632_v1  ;;  %4793 = vmatprep.mubr.msk.f32.mxu1 %vm6633_vm0, %v6632_v1 }
 0x8d5   :  { %5734 = vmatpush1.bf16.msra.mxu0 %v7280_v27  ;;  %5770 = vmatpush3.bf16.msra.mxu1 %v7333_v63 }
 0x8d6   :  { %5736 = vmatprep.subr.bf16.mxu0 %v7284_v42  ;;  %5771 = vmatprep.subr.bf16.mxu1 %v6631_v0 }
 0x8d9   :  { %5738 = vmatpush1.bf16.msra.mxu0 %v7286_v52  ;;  %5773 = vmatpush3.bf16.msra.mxu1 %v7337_v36 }
 0x8da   :  { %5740 = vmatprep.subr.bf16.mxu0 %v7290_v62  ;;  %5774 = vmatprep.subr.bf16.mxu1 %v6631_v0 }
 0x8dd   :  { %5742 = vmatpush1.bf16.msra.mxu0 %v7292_v11  ;;  %5776 = vmatpush3.bf16.msra.mxu1 %v7340_v47 }
 0x8de   :  { %5744 = vmatprep.subr.bf16.mxu0 %v7296_v21  ;;  %5777 = vmatprep.subr.bf16.mxu1 %v6631_v0 }
 0x8e1   :  { %5746 = vmatpush1.bf16.msra.mxu0 %v7299_v32  ;;  %5779 = vmatpush3.bf16.msra.mxu1 %v7344_v4 }
 0x8e2   :  { %5748 = vmatprep.subr.bf16.mxu0 %v7302_v9  ;;  %5780 = vmatprep.subr.bf16.mxu1 %v6631_v0 }
 0x8e5   :  { %5750 = vmatpush1.bf16.msra.mxu0 %v7304_v14  ;;  %5782 = vmatpush3.bf16.msra.mxu1 %v7348_v18 }
 0x8e6   :  { %5752 = vmatprep.subr.bf16.mxu0 %v7308_v58  ;;  %5815 = vmatprep.subr.bf16.mxu1 %v6631_v0 }
 0x8e9   :  { %5754 = vmatpush1.bf16.msra.mxu0 %v7310_v38 }
 0x8ea   :  { %5756 = vmatprep.subr.bf16.mxu0 %v7317_v61 }
 0x8ed   :  { %5758 = vmatpush1.bf16.msra.mxu0 %v7320_v55 }
 0x8ee   :  { %5784 = vmatprep.subr.bf16.mxu0 %v7272_v31 }
 0x96a   :  { %v1918_v25 = vpop.f32.mrb[16].mxu0  ;;  %v1989_v28 = vpop.f32.mrb[34].mxu1 }
 0x96b   :  { %v6264_v35 = vadd.f32 %v6894_v20, %v1918_v25  ;;  %v1920_v23 = vpop.f32.mrb[17].mxu0  ;;  %v4736_v10 = vpop.f32.mrb[35].mxu1  ;;  %v1990_v45 = vadd.f32 %v1989_v28, %v6907_v7 }
 0x96c   :  { %v6266_v2 = vadd.f32 %v6898_v30, %v1920_v23  ;;  %v3988_v23 = vld [vmem:[%s7779_s4 + $0x3] sm:$0x7] }
 0x96d   :  { %v3985_v12 = vmul.f32 -1.442695, %v6264_v35  ;;  %v3987_v10 = vld [vmem:[%s7778_s3 + $0x3] sm:$0x7]  ;;  %s6634_s3 = smov [#allocation11]  }
 0x96e   :  { %v3986_v22 = vmul.f32 -1.442695, %v6266_v2  ;;  %v2412_v2 = vrot.slane %v3988_v23, %v6879_v60  ;;  %s3948_s4 = sshll.u32 %s6634_s3, 4  ;;  %s3949_s4 = int_to_ptr.vmem [resolvable:$true] %s3948_s4 }
 0x96f   :  { %6430 = vpow2.f32 %v3985_v12  ;;  %v2087_v12 = vrot.slane %v3987_v10, %v6879_v60  ;;  %s6596_s13 = scalar_lea.vmem %s3949_s4, 1152  ;;  %p6601_p11 = scmp.lt.s32.totalorder %s3949_s4, %s3949_s4 }
 0x970   :  { %6432 = vpow2.f32 %v3986_v22  ;;  %p6597_p10 = scmp.ne.s32.totalorder %s3949_s4, %s6596_s13  ;;  %p6602_p12 = scmp.lt.s32.totalorder %s6596_s13, %s6596_s13 }
 0x972   :  { %p6603_p13 = por %p6602_p12, %p6601_p11 }
 0x974   :  { %p6604_p0 = pnand %p6603_p13, %p6597_p10 }
 0x979   :  { %v6431_v29 = vpop.eup %6430 }
 0x97a   :  { %v2003_v53 = vadd.f32 1.0, %v6431_v29  ;;  %v6433_v49 = vpop.eup %6432  ;;  %v2091_v29 = vrot.slane %v3987_v10, %v6886_v6 }
 0x97b   :  { %v2010_v39 = vadd.f32 1.0, %v6433_v49 }
 0x97c   :  { %6434 = vrcp.f32 %v2003_v53  ;;  %v2416_v53 = vrot.slane %v3988_v23, %v6886_v6  ;;  %v7433_v6 = vrot.slane %v3988_v23, %v6867_v40 }
 0x97d   :  { %6436 = vrcp.f32 %v2010_v39  ;;  %v7426_v39 = vadd.f32 %v2412_v2, %v2087_v12 }
 0x986   :  { %v6435_v8 = vpop.eup %6434 }
 0x987   :  { %v2013_v41 = vmul.f32 %v6435_v8, %v1990_v45  ;;  %v6437_v44 = vpop.eup %6436  ;;  %v7428_v8 = vadd.f32 %v2416_v53, %v2091_v29 }
 0x988   :  { %v2016_v3 = vsub.f32 1.0, %v6437_v44  ;;  %v2018_v37 = vmul.f32 %v6437_v44, %v7217_v33 }
 0x989   :  { %v2014_v20 = vadd.f32 %v2013_v41, %v6904_v50 }
 0x98a   :  { %v7357_v48 = vpop.f32.mrb[36].mxu1 }
 0x98b   :  { %6438 = vtanh.f32 %v2014_v20  ;;  %v4771_v51 = vpop.f32.mrb[37].mxu1 }
 0x98e   :  { %v7359_v30 = vpop.f32.mrb[38].mxu1 }
 0x98f   :  { %v4774_v54 = vpop.f32.mrb[39].mxu1 }
 0x992   :  { %v7361_v34 = vpop.f32.mrb[40].mxu1 }
 0x993   :  { %v4777_v19 = vpop.f32.mrb[41].mxu1 }
 0x995   :  { %v6439_v17 = vpop.eup %6438 }
 0x996   :  { %v7363_v26 = vpop.f32.mrb[42].mxu1  ;;  %v2017_v7 = vmul.f32 %v6439_v17, %v2016_v3 }
 0x997   :  { %v4780_v46 = vpop.f32.mrb[43].mxu1 }
 0x998   :  { %v2019_v50 = vadd.f32 %v2018_v37, %v2017_v7  ;;  %v7436_v37 = vrot.slane %v3987_v10, %v6867_v40 }
 0x99a   :  { %v7366_v56 = vpop.f32.mrb[44].mxu1  ;;  %2212 = vmatmul.mubr.f32.gmra.mrb[34].mxu0 %v2019_v50  ;;  %4794 = vmatmul.mubr.f32.gmra.mrb[52].mxu1 %v2019_v50 }
 0x99b   :  { %v4783_v57 = vpop.f32.mrb[45].mxu1  ;;  %2488 = vmatprep.mubr.f32.mxu0 %v6632_v1  ;;  %4828 = vmatprep.mubr.msk.f32.mxu1 %vm6633_vm0, %v6632_v1 }
 0x99e   :  { %v7371_v5 = vpop.f32.mrb[46].mxu1  ;;  %2489 = vmatmul.mubr.f32.vlgmr.msra.gmra.mrb[18].mxu0 %v6632_v1  ;;  %4829 = vmatmul.mubr.f32.vlgmr.msra.gmra.mrb[54].mxu1 %v6632_v1 }
 0x99f   :  { %v4786_v15 = vpop.f32.mrb[47].mxu1  ;;  %5786 = vmatpush1.bf16.msra.mxu0 %v7274_v13  ;;  %5817 = vmatpush3.bf16.msra.mxu1 %v7313_v43 }
 0x9a0   :  { %5788 = vmatprep.subr.bf16.mxu0 %v7278_v16  ;;  %5818 = vmatprep.subr.bf16.mxu1 %v6631_v0  ;;  %v2285_v15 = vadd.f32 %v7357_v48, %v7436_v37 }
 0x9a1   :  { %2656 = vmatprep.mubr.f32.mxu0 %v6632_v1  ;;  %4863 = vmatprep.mubr.msk.f32.mxu1 %vm6633_vm0, %v6632_v1 }
 0x9a2   :  { %v7382_v33 = vpop.f32.mrb[48].mxu1 }
 0x9a3   :  { %v4789_v25 = vpop.f32.mrb[49].mxu1  ;;  %5790 = vmatpush1.bf16.msra.mxu0 %v7280_v27  ;;  %5820 = vmatpush3.bf16.msra.mxu1 %v7323_v59 }
 0x9a4   :  { %5792 = vmatprep.subr.bf16.mxu0 %v7284_v42  ;;  %5821 = vmatprep.subr.bf16.mxu1 %v6631_v0 }
 0x9a6   :  { %v7388_v28 = vpop.f32.mrb[50].mxu1 }
 0x9a7   :  { %v4792_v35 = vpop.f32.mrb[51].mxu1  ;;  %5794 = vmatpush1.bf16.msra.mxu0 %v7286_v52  ;;  %5823 = vmatpush3.bf16.msra.mxu1 %v7329_v24 }
 0x9a8   :  { %5796 = vmatprep.subr.bf16.mxu0 %v7290_v62  ;;  %5824 = vmatprep.subr.bf16.mxu1 %v6631_v0 }
 0x9ab   :  { %5798 = vmatpush1.bf16.msra.mxu0 %v7292_v11  ;;  %5826 = vmatpush3.bf16.msra.mxu1 %v7333_v63 }
 0x9ac   :  { %5800 = vmatprep.subr.bf16.mxu0 %v7296_v21  ;;  %5827 = vmatprep.subr.bf16.mxu1 %v6631_v0 }
 0x9af   :  { %5802 = vmatpush1.bf16.msra.mxu0 %v7299_v32  ;;  %5829 = vmatpush3.bf16.msra.mxu1 %v7337_v36 }
 0x9b0   :  { %5804 = vmatprep.subr.bf16.mxu0 %v7302_v9  ;;  %5830 = vmatprep.subr.bf16.mxu1 %v6631_v0 }
 0x9b3   :  { %5806 = vmatpush1.bf16.msra.mxu0 %v7304_v14  ;;  %5832 = vmatpush3.bf16.msra.mxu1 %v7340_v47 }
 0x9b4   :  { %5808 = vmatprep.subr.bf16.mxu0 %v7308_v58  ;;  %5833 = vmatprep.subr.bf16.mxu1 %v6631_v0 }
 0x9b7   :  { %5810 = vmatpush1.bf16.msra.mxu0 %v7310_v38  ;;  %5835 = vmatpush3.bf16.msra.mxu1 %v7344_v4 }
 0x9b8   :  { %5812 = vmatprep.subr.bf16.mxu0 %v7317_v61  ;;  %5836 = vmatprep.subr.bf16.mxu1 %v6631_v0 }
 0x9bb   :  { %5814 = vmatpush1.bf16.msra.mxu0 %v7320_v55  ;;  %5838 = vmatpush3.bf16.msra.mxu1 %v7348_v18 }
 0x9bc   :  { %5840 = vmatprep.subr.bf16.mxu0 %v7272_v31  ;;  %5871 = vmatprep.subr.bf16.mxu1 %v6631_v0 }
 0xa6d   :  { %v7422_v22 = vpop.f32.mrb[52].mxu1 }
 0xa6e   :  { %v4795_v49 = vpop.f32.mrb[53].mxu1 }
 0xa71   :  { %v2490_v45 = vpop.f32.mrb[18].mxu0  ;;  %v2561_v41 = vpop.f32.mrb[54].mxu1 }
 0xa72   :  { %v6268_v20 = vadd.f32 %v7426_v39, %v2490_v45  ;;  %v2492_v51 = vpop.f32.mrb[19].mxu0  ;;  %v4830_v54 = vpop.f32.mrb[55].mxu1  ;;  %v2562_v50 = vadd.f32 %v2561_v41, %v7433_v6 }
 0xa73   :  { %v6270_v60 = vadd.f32 %v7428_v8, %v2492_v51 }
 0xa74   :  { %v3989_v44 = vmul.f32 -1.442695, %v6268_v20 }
 0xa75   :  { %v3990_v19 = vmul.f32 -1.442695, %v6270_v60 }
 0xa76   :  { %6440 = vpow2.f32 %v3989_v44 }
 0xa77   :  { %6442 = vpow2.f32 %v3990_v19 }
 0xa80   :  { %v6441_v3 = vpop.eup %6440 }
 0xa81   :  { %v2572_v17 = vadd.f32 1.0, %v6441_v3  ;;  %v6443_v7 = vpop.eup %6442 }
 0xa82   :  { %v2579_v46 = vadd.f32 1.0, %v6443_v7 }
 0xa83   :  { %6444 = vrcp.f32 %v2572_v17 }
 0xa84   :  { %6446 = vrcp.f32 %v2579_v46  ;;  %v2290_v46 = vadd.f32 %v7359_v30, %v7436_v37 }
 0xa8d   :  { %v6445_v57 = vpop.eup %6444 }
 0xa8e   :  { %v2582_v25 = vmul.f32 %v6445_v57, %v2562_v50  ;;  %v6447_v12 = vpop.eup %6446 }
 0xa8f   :  { %v2585_v2 = vsub.f32 1.0, %v6447_v12  ;;  %v2587_v53 = vmul.f32 0.0, %v6447_v12 }
 0xa90   :  { %v2583_v35 = vadd.f32 %v2582_v25, %v2285_v15 }
 0xa92   :  { %6448 = vtanh.f32 %v2583_v35 }
 0xa9c   :  { %v6449_v29 = vpop.eup %6448 }
 0xa9d   :  { %v2586_v23 = vmul.f32 %v6449_v29, %v2585_v2 }
 0xa9f   :  { %v7441_v49 = vadd.f32 %v2587_v53, %v2586_v23 }
 0xaa1   :  { %2590 = vst [vmem:[#allocation11] sm:$0xff] %v7441_v49  ;;  %2657 = vmatmul.mubr.f32.vlgmr.msra.gmra.mrb[20].mxu0 %v7441_v49  ;;  %4864 = vmatmul.mubr.f32.vlgmr.msra.gmra.mrb[56].mxu1 %v7441_v49 }
 0xaa2   :  { %5842 = vmatpush1.bf16.msra.mxu0 %v7274_v13  ;;  %5873 = vmatpush3.bf16.msra.mxu1 %v7313_v43 }
 0xaa3   :  { %5844 = vmatprep.subr.bf16.mxu0 %v7278_v16  ;;  %5874 = vmatprep.subr.bf16.mxu1 %v6631_v0 }
 0xaa4   :  { %2825 = vmatprep.mubr.f32.mxu0 %v6632_v1  ;;  %4898 = vmatprep.mubr.msk.f32.mxu1 %vm6633_vm0, %v6632_v1 }
 0xaa6   :  { %5846 = vmatpush1.bf16.msra.mxu0 %v7280_v27  ;;  %5876 = vmatpush3.bf16.msra.mxu1 %v7323_v59 }
 0xaa7   :  { %5848 = vmatprep.subr.bf16.mxu0 %v7284_v42  ;;  %5877 = vmatprep.subr.bf16.mxu1 %v6631_v0 }
 0xaaa   :  { %5850 = vmatpush1.bf16.msra.mxu0 %v7286_v52  ;;  %5879 = vmatpush3.bf16.msra.mxu1 %v7329_v24 }
 0xaab   :  { %5852 = vmatprep.subr.bf16.mxu0 %v7290_v62  ;;  %5880 = vmatprep.subr.bf16.mxu1 %v6631_v0 }
 0xaae   :  { %5854 = vmatpush1.bf16.msra.mxu0 %v7292_v11  ;;  %5882 = vmatpush3.bf16.msra.mxu1 %v7333_v63 }
 0xaaf   :  { %5856 = vmatprep.subr.bf16.mxu0 %v7296_v21  ;;  %5883 = vmatprep.subr.bf16.mxu1 %v6631_v0 }
 0xab2   :  { %5858 = vmatpush1.bf16.msra.mxu0 %v7299_v32  ;;  %5885 = vmatpush3.bf16.msra.mxu1 %v7337_v36 }
 0xab3   :  { %5860 = vmatprep.subr.bf16.mxu0 %v7302_v9  ;;  %5886 = vmatprep.subr.bf16.mxu1 %v6631_v0 }
 0xab6   :  { %5862 = vmatpush1.bf16.msra.mxu0 %v7304_v14  ;;  %5888 = vmatpush3.bf16.msra.mxu1 %v7340_v47 }
 0xab7   :  { %5864 = vmatprep.subr.bf16.mxu0 %v7308_v58  ;;  %5889 = vmatprep.subr.bf16.mxu1 %v6631_v0 }
 0xaba   :  { %5866 = vmatpush1.bf16.msra.mxu0 %v7310_v38  ;;  %5891 = vmatpush3.bf16.msra.mxu1 %v7344_v4 }
 0xabb   :  { %5868 = vmatprep.subr.bf16.mxu0 %v7317_v61  ;;  %5892 = vmatprep.subr.bf16.mxu1 %v6631_v0 }
 0xabe   :  { %5870 = vmatpush1.bf16.msra.mxu0 %v7320_v55  ;;  %5894 = vmatpush3.bf16.msra.mxu1 %v7348_v18 }
 0xabf   :  { %5896 = vmatprep.subr.bf16.mxu0 %v7272_v31  ;;  %5927 = vmatprep.subr.bf16.mxu1 %v6631_v0 }
 0xb74   :  { %v2658_v40 = vpop.f32.mrb[20].mxu0  ;;  %v2729_v48 = vpop.f32.mrb[56].mxu1 }
 0xb75   :  { %v6272_v10 = vadd.f32 %v7426_v39, %v2658_v40  ;;  %v2660_v45 = vpop.f32.mrb[21].mxu0  ;;  %v4865_v41 = vpop.f32.mrb[57].mxu1  ;;  %v2730_v17 = vadd.f32 %v2729_v48, %v7433_v6 }
 0xb76   :  { %v6274_v51 = vadd.f32 %v7428_v8, %v2660_v45 }
 0xb77   :  { %v3991_v20 = vmul.f32 -1.442695, %v6272_v10 }
 0xb78   :  { %v3992_v54 = vmul.f32 -1.442695, %v6274_v51 }
 0xb79   :  { %6450 = vpow2.f32 %v3991_v20 }
 0xb7a   :  { %6452 = vpow2.f32 %v3992_v54 }
 0xb83   :  { %v6451_v44 = vpop.eup %6450 }
 0xb84   :  { %v2740_v60 = vadd.f32 1.0, %v6451_v44  ;;  %v6453_v19 = vpop.eup %6452 }
 0xb85   :  { %v2747_v3 = vadd.f32 1.0, %v6453_v19  ;;  %v2295_v19 = vadd.f32 %v7361_v34, %v7436_v37 }
 0xb86   :  { %6454 = vrcp.f32 %v2740_v60 }
 0xb87   :  { %6456 = vrcp.f32 %v2747_v3 }
 0xb90   :  { %v6455_v7 = vpop.eup %6454 }
 0xb91   :  { %v2750_v50 = vmul.f32 %v6455_v7, %v2730_v17  ;;  %v6457_v15 = vpop.eup %6456 }
 0xb92   :  { %v2753_v25 = vsub.f32 1.0, %v6457_v15  ;;  %v2755_v2 = vmul.f32 %v6457_v15, %v7441_v49 }
 0xb93   :  { %v2751_v57 = vadd.f32 %v2750_v50, %v2290_v46 }
 0xb95   :  { %6458 = vtanh.f32 %v2751_v57 }
 0xb9f   :  { %v6459_v35 = vpop.eup %6458 }
 0xba0   :  { %v2754_v12 = vmul.f32 %v6459_v35, %v2753_v25 }
 0xba2   :  { %v7487_v29 = vadd.f32 %v2755_v2, %v2754_v12 }
 0xba4   :  { %2759 = vst [vmem:[#allocation11 + $0x8] sm:$0xff] %v7487_v29  ;;  %2826 = vmatmul.mubr.f32.vlgmr.msra.gmra.mrb[22].mxu0 %v7487_v29  ;;  %4899 = vmatmul.mubr.f32.vlgmr.msra.gmra.mrb[58].mxu1 %v7487_v29 }
 0xba5   :  { %5898 = vmatpush1.bf16.msra.mxu0 %v7274_v13  ;;  %5929 = vmatpush3.bf16.msra.mxu1 %v7313_v43 }
 0xba6   :  { %5900 = vmatprep.subr.bf16.mxu0 %v7278_v16  ;;  %5930 = vmatprep.subr.bf16.mxu1 %v6631_v0 }
 0xba7   :  { %2994 = vmatprep.mubr.f32.mxu0 %v6632_v1  ;;  %4933 = vmatprep.mubr.msk.f32.mxu1 %vm6633_vm0, %v6632_v1 }
 0xba9   :  { %5902 = vmatpush1.bf16.msra.mxu0 %v7280_v27  ;;  %5932 = vmatpush3.bf16.msra.mxu1 %v7323_v59 }
 0xbaa   :  { %5904 = vmatprep.subr.bf16.mxu0 %v7284_v42  ;;  %5933 = vmatprep.subr.bf16.mxu1 %v6631_v0 }
 0xbad   :  { %5906 = vmatpush1.bf16.msra.mxu0 %v7286_v52  ;;  %5935 = vmatpush3.bf16.msra.mxu1 %v7329_v24 }
 0xbae   :  { %5908 = vmatprep.subr.bf16.mxu0 %v7290_v62  ;;  %5936 = vmatprep.subr.bf16.mxu1 %v6631_v0 }
 0xbb1   :  { %5910 = vmatpush1.bf16.msra.mxu0 %v7292_v11  ;;  %5938 = vmatpush3.bf16.msra.mxu1 %v7333_v63 }
 0xbb2   :  { %5912 = vmatprep.subr.bf16.mxu0 %v7296_v21  ;;  %5939 = vmatprep.subr.bf16.mxu1 %v6631_v0 }
 0xbb5   :  { %5914 = vmatpush1.bf16.msra.mxu0 %v7299_v32  ;;  %5941 = vmatpush3.bf16.msra.mxu1 %v7337_v36 }
 0xbb6   :  { %5916 = vmatprep.subr.bf16.mxu0 %v7302_v9  ;;  %5942 = vmatprep.subr.bf16.mxu1 %v6631_v0 }
 0xbb9   :  { %5918 = vmatpush1.bf16.msra.mxu0 %v7304_v14  ;;  %5944 = vmatpush3.bf16.msra.mxu1 %v7340_v47 }
 0xbba   :  { %5920 = vmatprep.subr.bf16.mxu0 %v7308_v58  ;;  %5945 = vmatprep.subr.bf16.mxu1 %v6631_v0 }
 0xbbd   :  { %5922 = vmatpush1.bf16.msra.mxu0 %v7310_v38  ;;  %5947 = vmatpush3.bf16.msra.mxu1 %v7344_v4 }
 0xbbe   :  { %5924 = vmatprep.subr.bf16.mxu0 %v7317_v61  ;;  %5948 = vmatprep.subr.bf16.mxu1 %v6631_v0 }
 0xbc1   :  { %5926 = vmatpush1.bf16.msra.mxu0 %v7320_v55  ;;  %5950 = vmatpush3.bf16.msra.mxu1 %v7348_v18 }
 0xbc2   :  { %5952 = vmatprep.subr.bf16.mxu0 %v7272_v31  ;;  %5983 = vmatprep.subr.bf16.mxu1 %v6631_v0 }
 0xc77   :  { %v2827_v30 = vpop.f32.mrb[22].mxu0  ;;  %v2898_v23 = vpop.f32.mrb[58].mxu1 }
 0xc78   :  { %v6276_v53 = vadd.f32 %v7426_v39, %v2827_v30  ;;  %v2829_v49 = vpop.f32.mrb[23].mxu0  ;;  %v4900_v40 = vpop.f32.mrb[59].mxu1  ;;  %v2899_v44 = vadd.f32 %v2898_v23, %v7433_v6 }
 0xc79   :  { %v6278_v10 = vadd.f32 %v7428_v8, %v2829_v49 }
 0xc7a   :  { %v3993_v48 = vmul.f32 -1.442695, %v6276_v53 }
 0xc7b   :  { %v3994_v45 = vmul.f32 -1.442695, %v6278_v10 }
 0xc7c   :  { %6460 = vpow2.f32 %v3993_v48 }
 0xc7d   :  { %6462 = vpow2.f32 %v3994_v45 }
 0xc86   :  { %v6461_v41 = vpop.eup %6460 }
 0xc87   :  { %v2909_v20 = vadd.f32 1.0, %v6461_v41  ;;  %v6463_v51 = vpop.eup %6462 }
 0xc88   :  { %v2916_v54 = vadd.f32 1.0, %v6463_v51 }
 0xc89   :  { %6464 = vrcp.f32 %v2909_v20  ;;  %v2300_v20 = vadd.f32 %v7363_v26, %v7436_v37 }
 0xc8a   :  { %6466 = vrcp.f32 %v2916_v54 }
 0xc93   :  { %v6465_v60 = vpop.eup %6464 }
 0xc94   :  { %v2919_v3 = vmul.f32 %v6465_v60, %v2899_v44  ;;  %v6467_v7 = vpop.eup %6466 }
 0xc95   :  { %v2922_v46 = vsub.f32 1.0, %v6467_v7  ;;  %v2924_v15 = vmul.f32 %v6467_v7, %v7487_v29 }
 0xc96   :  { %v2920_v17 = vadd.f32 %v2919_v3, %v2295_v19 }
 0xc98   :  { %6468 = vtanh.f32 %v2920_v17 }
 0xca2   :  { %v6469_v50 = vpop.eup %6468 }
 0xca3   :  { %v2923_v57 = vmul.f32 %v6469_v50, %v2922_v46 }
 0xca5   :  { %v7533_v25 = vadd.f32 %v2924_v15, %v2923_v57 }
 0xca7   :  { %2928 = vst [vmem:[#allocation11 + $0x10] sm:$0xff] %v7533_v25  ;;  %2995 = vmatmul.mubr.f32.vlgmr.msra.gmra.mrb[24].mxu0 %v7533_v25  ;;  %4934 = vmatmul.mubr.f32.vlgmr.msra.gmra.mrb[60].mxu1 %v7533_v25 }
 0xca8   :  { %5954 = vmatpush1.bf16.msra.mxu0 %v7274_v13  ;;  %5985 = vmatpush3.bf16.msra.mxu1 %v7313_v43 }
 0xca9   :  { %5956 = vmatprep.subr.bf16.mxu0 %v7278_v16  ;;  %5986 = vmatprep.subr.bf16.mxu1 %v6631_v0 }
 0xcaa   :  { %3163 = vmatprep.mubr.f32.mxu0 %v6632_v1  ;;  %4968 = vmatprep.mubr.msk.f32.mxu1 %vm6633_vm0, %v6632_v1 }
 0xcac   :  { %5958 = vmatpush1.bf16.msra.mxu0 %v7280_v27  ;;  %5988 = vmatpush3.bf16.msra.mxu1 %v7323_v59 }
 0xcad   :  { %5960 = vmatprep.subr.bf16.mxu0 %v7284_v42  ;;  %5989 = vmatprep.subr.bf16.mxu1 %v6631_v0 }
 0xcb0   :  { %5962 = vmatpush1.bf16.msra.mxu0 %v7286_v52  ;;  %5991 = vmatpush3.bf16.msra.mxu1 %v7329_v24 }
 0xcb1   :  { %5964 = vmatprep.subr.bf16.mxu0 %v7290_v62  ;;  %5992 = vmatprep.subr.bf16.mxu1 %v6631_v0 }
 0xcb4   :  { %5966 = vmatpush1.bf16.msra.mxu0 %v7292_v11  ;;  %5994 = vmatpush3.bf16.msra.mxu1 %v7333_v63 }
 0xcb5   :  { %5968 = vmatprep.subr.bf16.mxu0 %v7296_v21  ;;  %5995 = vmatprep.subr.bf16.mxu1 %v6631_v0 }
 0xcb8   :  { %5970 = vmatpush1.bf16.msra.mxu0 %v7299_v32  ;;  %5997 = vmatpush3.bf16.msra.mxu1 %v7337_v36 }
 0xcb9   :  { %5972 = vmatprep.subr.bf16.mxu0 %v7302_v9  ;;  %5998 = vmatprep.subr.bf16.mxu1 %v6631_v0 }
 0xcbc   :  { %5974 = vmatpush1.bf16.msra.mxu0 %v7304_v14  ;;  %6000 = vmatpush3.bf16.msra.mxu1 %v7340_v47 }
 0xcbd   :  { %5976 = vmatprep.subr.bf16.mxu0 %v7308_v58  ;;  %6001 = vmatprep.subr.bf16.mxu1 %v6631_v0 }
 0xcc0   :  { %5978 = vmatpush1.bf16.msra.mxu0 %v7310_v38  ;;  %6003 = vmatpush3.bf16.msra.mxu1 %v7344_v4 }
 0xcc1   :  { %5980 = vmatprep.subr.bf16.mxu0 %v7317_v61  ;;  %6004 = vmatprep.subr.bf16.mxu1 %v6631_v0 }
 0xcc4   :  { %5982 = vmatpush1.bf16.msra.mxu0 %v7320_v55  ;;  %6006 = vmatpush3.bf16.msra.mxu1 %v7348_v18 }
 0xcc5   :  { %6008 = vmatprep.subr.bf16.mxu0 %v7272_v31  ;;  %6039 = vmatprep.subr.bf16.mxu1 %v6631_v0 }
 0xd7a   :  { %v2996_v34 = vpop.f32.mrb[24].mxu0  ;;  %v3067_v35 = vpop.f32.mrb[60].mxu1 }
 0xd7b   :  { %v6280_v12 = vadd.f32 %v7426_v39, %v2996_v34  ;;  %v2998_v2 = vpop.f32.mrb[25].mxu0  ;;  %v4935_v29 = vpop.f32.mrb[61].mxu1  ;;  %v3068_v45 = vadd.f32 %v3067_v35, %v7433_v6 }
 0xd7c   :  { %v6282_v23 = vadd.f32 %v7428_v8, %v2998_v2 }
 0xd7d   :  { %v3995_v30 = vmul.f32 -1.442695, %v6280_v12 }
 0xd7e   :  { %v3996_v53 = vmul.f32 -1.442695, %v6282_v23 }
 0xd7f   :  { %6470 = vpow2.f32 %v3995_v30 }
 0xd80   :  { %6472 = vpow2.f32 %v3996_v53 }
 0xd89   :  { %v6471_v49 = vpop.eup %6470 }
 0xd8a   :  { %v3078_v40 = vadd.f32 1.0, %v6471_v49  ;;  %v6473_v48 = vpop.eup %6472  ;;  %v2305_v49 = vadd.f32 %v7366_v56, %v7436_v37 }
 0xd8b   :  { %v3085_v10 = vadd.f32 1.0, %v6473_v48 }
 0xd8c   :  { %6474 = vrcp.f32 %v3078_v40 }
 0xd8d   :  { %6476 = vrcp.f32 %v3085_v10 }
 0xd96   :  { %v6475_v41 = vpop.eup %6474 }
 0xd97   :  { %v3088_v51 = vmul.f32 %v6475_v41, %v3068_v45  ;;  %v6477_v44 = vpop.eup %6476 }
 0xd98   :  { %v3091_v60 = vsub.f32 1.0, %v6477_v44  ;;  %v3093_v17 = vmul.f32 %v6477_v44, %v7533_v25 }
 0xd99   :  { %v3089_v54 = vadd.f32 %v3088_v51, %v2300_v20 }
 0xd9b   :  { %6478 = vtanh.f32 %v3089_v54 }
 0xda5   :  { %v6479_v19 = vpop.eup %6478 }
 0xda6   :  { %v3092_v3 = vmul.f32 %v6479_v19, %v3091_v60 }
 0xda8   :  { %v7579_v7 = vadd.f32 %v3093_v17, %v3092_v3 }
 0xdaa   :  { %3097 = vst [vmem:[#allocation11 + $0x18] sm:$0xff] %v7579_v7  ;;  %3164 = vmatmul.mubr.f32.vlgmr.msra.gmra.mrb[26].mxu0 %v7579_v7  ;;  %4969 = vmatmul.mubr.f32.vlgmr.msra.gmra.mrb[62].mxu1 %v7579_v7 }
 0xdab   :  { %6010 = vmatpush1.bf16.msra.mxu0 %v7274_v13  ;;  %6041 = vmatpush3.bf16.msra.mxu1 %v7313_v43 }
 0xdac   :  { %6012 = vmatprep.subr.bf16.mxu0 %v7278_v16  ;;  %6042 = vmatprep.subr.bf16.mxu1 %v6631_v0 }
 0xdad   :  { %3332 = vmatprep.mubr.f32.mxu0 %v6632_v1  ;;  %5003 = vmatprep.mubr.msk.f32.mxu1 %vm6633_vm0, %v6632_v1 }
 0xdaf   :  { %6014 = vmatpush1.bf16.msra.mxu0 %v7280_v27  ;;  %6044 = vmatpush3.bf16.msra.mxu1 %v7323_v59 }
 0xdb0   :  { %6016 = vmatprep.subr.bf16.mxu0 %v7284_v42  ;;  %6045 = vmatprep.subr.bf16.mxu1 %v6631_v0 }
 0xdb3   :  { %6018 = vmatpush1.bf16.msra.mxu0 %v7286_v52  ;;  %6047 = vmatpush3.bf16.msra.mxu1 %v7329_v24 }
 0xdb4   :  { %6020 = vmatprep.subr.bf16.mxu0 %v7290_v62  ;;  %6048 = vmatprep.subr.bf16.mxu1 %v6631_v0 }
 0xdb7   :  { %6022 = vmatpush1.bf16.msra.mxu0 %v7292_v11  ;;  %6050 = vmatpush3.bf16.msra.mxu1 %v7333_v63 }
 0xdb8   :  { %6024 = vmatprep.subr.bf16.mxu0 %v7296_v21  ;;  %6051 = vmatprep.subr.bf16.mxu1 %v6631_v0 }
 0xdbb   :  { %6026 = vmatpush1.bf16.msra.mxu0 %v7299_v32  ;;  %6053 = vmatpush3.bf16.msra.mxu1 %v7337_v36 }
 0xdbc   :  { %6028 = vmatprep.subr.bf16.mxu0 %v7302_v9  ;;  %6054 = vmatprep.subr.bf16.mxu1 %v6631_v0 }
 0xdbf   :  { %6030 = vmatpush1.bf16.msra.mxu0 %v7304_v14  ;;  %6056 = vmatpush3.bf16.msra.mxu1 %v7340_v47 }
 0xdc0   :  { %6032 = vmatprep.subr.bf16.mxu0 %v7308_v58  ;;  %6057 = vmatprep.subr.bf16.mxu1 %v6631_v0 }
 0xdc3   :  { %6034 = vmatpush1.bf16.msra.mxu0 %v7310_v38  ;;  %6059 = vmatpush3.bf16.msra.mxu1 %v7344_v4 }
 0xdc4   :  { %6036 = vmatprep.subr.bf16.mxu0 %v7317_v61  ;;  %6060 = vmatprep.subr.bf16.mxu1 %v6631_v0 }
 0xdc7   :  { %6038 = vmatpush1.bf16.msra.mxu0 %v7320_v55  ;;  %6062 = vmatpush3.bf16.msra.mxu1 %v7348_v18 }
 0xdc8   :  { %6064 = vmatprep.subr.bf16.mxu0 %v7272_v31  ;;  %6095 = vmatprep.subr.bf16.mxu1 %v6631_v0 }
 0xe7d   :  { %v3165_v26 = vpop.f32.mrb[26].mxu0  ;;  %v3236_v46 = vpop.f32.mrb[62].mxu1 }
 0xe7e   :  { %v6284_v50 = vadd.f32 %v7426_v39, %v3165_v26  ;;  %v3167_v57 = vpop.f32.mrb[27].mxu0  ;;  %v4970_v15 = vpop.f32.mrb[63].mxu1  ;;  %v3237_v23 = vadd.f32 %v3236_v46, %v7433_v6 }
 0xe7f   :  { %v6286_v34 = vadd.f32 %v7428_v8, %v3167_v57 }
 0xe80   :  { %v3997_v25 = vmul.f32 -1.442695, %v6284_v50 }
 0xe81   :  { %v3998_v35 = vmul.f32 -1.442695, %v6286_v34 }
 0xe82   :  { %6480 = vpow2.f32 %v3997_v25 }
 0xe83   :  { %6482 = vpow2.f32 %v3998_v35  ;;  %v2310_v35 = vadd.f32 %v7371_v5, %v7436_v37 }
 0xe8c   :  { %v6481_v12 = vpop.eup %6480 }
 0xe8d   :  { %v3247_v2 = vadd.f32 1.0, %v6481_v12  ;;  %v6483_v29 = vpop.eup %6482 }
 0xe8e   :  { %v3254_v30 = vadd.f32 1.0, %v6483_v29 }
 0xe8f   :  { %6484 = vrcp.f32 %v3247_v2 }
 0xe90   :  { %6486 = vrcp.f32 %v3254_v30 }
 0xe99   :  { %v6485_v53 = vpop.eup %6484 }
 0xe9a   :  { %v3257_v40 = vmul.f32 %v6485_v53, %v3237_v23  ;;  %v6487_v10 = vpop.eup %6486 }
 0xe9b   :  { %v3260_v45 = vsub.f32 1.0, %v6487_v10  ;;  %v3262_v51 = vmul.f32 %v6487_v10, %v7579_v7 }
 0xe9c   :  { %v3258_v48 = vadd.f32 %v3257_v40, %v2305_v49 }
 0xe9e   :  { %6488 = vtanh.f32 %v3258_v48 }
 0xea8   :  { %v6489_v41 = vpop.eup %6488 }
 0xea9   :  { %v3261_v20 = vmul.f32 %v6489_v41, %v3260_v45 }
 0xeab   :  { %v7625_v54 = vadd.f32 %v3262_v51, %v3261_v20 }
 0xead   :  { %3266 = vst [vmem:[#allocation11 + $0x20] sm:$0xff] %v7625_v54  ;;  %3333 = vmatmul.mubr.f32.vlgmr.msra.gmra.mrb[28].mxu0 %v7625_v54  ;;  %5004 = vmatmul.mubr.f32.vlgmr.msra.gmra.mrb[64].mxu1 %v7625_v54 }
 0xeae   :  { %6066 = vmatpush1.bf16.msra.mxu0 %v7274_v13  ;;  %6097 = vmatpush3.bf16.msra.mxu1 %v7313_v43 }
 0xeaf   :  { %6068 = vmatprep.subr.bf16.mxu0 %v7278_v16  ;;  %6098 = vmatprep.subr.bf16.mxu1 %v6631_v0 }
 0xeb0   :  { %3501 = vmatprep.mubr.f32.mxu0 %v6632_v1  ;;  %5038 = vmatprep.mubr.msk.f32.mxu1 %vm6633_vm0, %v6632_v1 }
 0xeb2   :  { %6070 = vmatpush1.bf16.msra.mxu0 %v7280_v27  ;;  %6100 = vmatpush3.bf16.msra.mxu1 %v7323_v59 }
 0xeb3   :  { %6072 = vmatprep.subr.bf16.mxu0 %v7284_v42  ;;  %6101 = vmatprep.subr.bf16.mxu1 %v6631_v0 }
 0xeb6   :  { %6074 = vmatpush1.bf16.msra.mxu0 %v7286_v52  ;;  %6103 = vmatpush3.bf16.msra.mxu1 %v7329_v24 }
 0xeb7   :  { %6076 = vmatprep.subr.bf16.mxu0 %v7290_v62  ;;  %6104 = vmatprep.subr.bf16.mxu1 %v6631_v0 }
 0xeba   :  { %6078 = vmatpush1.bf16.msra.mxu0 %v7292_v11  ;;  %6106 = vmatpush3.bf16.msra.mxu1 %v7333_v63 }
 0xebb   :  { %6080 = vmatprep.subr.bf16.mxu0 %v7296_v21  ;;  %6107 = vmatprep.subr.bf16.mxu1 %v6631_v0 }
 0xebe   :  { %6082 = vmatpush1.bf16.msra.mxu0 %v7299_v32  ;;  %6109 = vmatpush3.bf16.msra.mxu1 %v7337_v36 }
 0xebf   :  { %6084 = vmatprep.subr.bf16.mxu0 %v7302_v9  ;;  %6110 = vmatprep.subr.bf16.mxu1 %v6631_v0 }
 0xec2   :  { %6086 = vmatpush1.bf16.msra.mxu0 %v7304_v14  ;;  %6112 = vmatpush3.bf16.msra.mxu1 %v7340_v47 }
 0xec3   :  { %6088 = vmatprep.subr.bf16.mxu0 %v7308_v58  ;;  %6113 = vmatprep.subr.bf16.mxu1 %v6631_v0 }
 0xec6   :  { %6090 = vmatpush1.bf16.msra.mxu0 %v7310_v38  ;;  %6115 = vmatpush3.bf16.msra.mxu1 %v7344_v4 }
 0xec7   :  { %6092 = vmatprep.subr.bf16.mxu0 %v7317_v61  ;;  %6116 = vmatprep.subr.bf16.mxu1 %v6631_v0 }
 0xeca   :  { %6094 = vmatpush1.bf16.msra.mxu0 %v7320_v55  ;;  %6118 = vmatpush3.bf16.msra.mxu1 %v7348_v18 }
 0xecb   :  { %6120 = vmatprep.subr.bf16.mxu0 %v7272_v31  ;;  %6151 = vmatprep.subr.bf16.mxu1 %v6631_v0 }
 0xf80   :  { %v3334_v56 = vpop.f32.mrb[28].mxu0  ;;  %v3405_v44 = vpop.f32.mrb[64].mxu1 }
 0xf81   :  { %v6288_v60 = vadd.f32 %v7426_v39, %v3334_v56  ;;  %v3336_v19 = vpop.f32.mrb[29].mxu0  ;;  %v5005_v3 = vpop.f32.mrb[65].mxu1  ;;  %v3406_v25 = vadd.f32 %v3405_v44, %v7433_v6 }
 0xf82   :  { %v6290_v7 = vadd.f32 %v7428_v8, %v3336_v19 }
 0xf83   :  { %v3999_v17 = vmul.f32 -1.442695, %v6288_v60 }
 0xf84   :  { %v4000_v26 = vmul.f32 -1.442695, %v6290_v7 }
 0xf85   :  { %6490 = vpow2.f32 %v3999_v17  ;;  %v2315_v17 = vadd.f32 %v7382_v33, %v7436_v37 }
 0xf86   :  { %6492 = vpow2.f32 %v4000_v26 }
 0xf8f   :  { %v6491_v46 = vpop.eup %6490 }
 0xf90   :  { %v3416_v50 = vadd.f32 1.0, %v6491_v46  ;;  %v6493_v57 = vpop.eup %6492 }
 0xf91   :  { %v3423_v15 = vadd.f32 1.0, %v6493_v57 }
 0xf92   :  { %6494 = vrcp.f32 %v3416_v50 }
 0xf93   :  { %6496 = vrcp.f32 %v3423_v15 }
 0xf9c   :  { %v6495_v34 = vpop.eup %6494 }
 0xf9d   :  { %v3426_v12 = vmul.f32 %v6495_v34, %v3406_v25  ;;  %v6497_v29 = vpop.eup %6496 }
 0xf9e   :  { %v3429_v30 = vsub.f32 1.0, %v6497_v29  ;;  %v3431_v49 = vmul.f32 %v6497_v29, %v7625_v54 }
 0xf9f   :  { %v3427_v2 = vadd.f32 %v3426_v12, %v2310_v35 }
 0xfa1   :  { %6498 = vtanh.f32 %v3427_v2 }
 0xfab   :  { %v6499_v23 = vpop.eup %6498 }
 0xfac   :  { %v3430_v53 = vmul.f32 %v6499_v23, %v3429_v30 }
 0xfae   :  { %v7671_v40 = vadd.f32 %v3431_v49, %v3430_v53 }
 0xfb0   :  { %3435 = vst [vmem:[#allocation11 + $0x28] sm:$0xff] %v7671_v40  ;;  %3502 = vmatmul.mubr.f32.vlgmr.msra.gmra.mrb[30].mxu0 %v7671_v40  ;;  %5039 = vmatmul.mubr.f32.vlgmr.msra.gmra.mrb[66].mxu1 %v7671_v40 }
 0xfb1   :  { %6122 = vmatpush1.bf16.msra.mxu0 %v7274_v13  ;;  %6153 = vmatpush3.bf16.msra.mxu1 %v7313_v43 }
 0xfb2   :  { %6124 = vmatprep.subr.bf16.mxu0 %v7278_v16  ;;  %6154 = vmatprep.subr.bf16.mxu1 %v6631_v0 }
 0xfb3   :  { %3670 = vmatprep.mubr.f32.mxu0 %v6632_v1  ;;  %5073 = vmatprep.mubr.msk.f32.mxu1 %vm6633_vm0, %v6632_v1 }
 0xfb5   :  { %6126 = vmatpush1.bf16.msra.mxu0 %v7280_v27  ;;  %6156 = vmatpush3.bf16.msra.mxu1 %v7323_v59 }
 0xfb6   :  { %6128 = vmatprep.subr.bf16.mxu0 %v7284_v42  ;;  %6157 = vmatprep.subr.bf16.mxu1 %v6631_v0 }
 0xfb9   :  { %6130 = vmatpush1.bf16.msra.mxu0 %v7286_v52  ;;  %6159 = vmatpush3.bf16.msra.mxu1 %v7329_v24 }
 0xfba   :  { %6132 = vmatprep.subr.bf16.mxu0 %v7290_v62  ;;  %6160 = vmatprep.subr.bf16.mxu1 %v6631_v0 }
 0xfbd   :  { %6134 = vmatpush1.bf16.msra.mxu0 %v7292_v11  ;;  %6162 = vmatpush3.bf16.msra.mxu1 %v7333_v63 }
 0xfbe   :  { %6136 = vmatprep.subr.bf16.mxu0 %v7296_v21  ;;  %6163 = vmatprep.subr.bf16.mxu1 %v6631_v0 }
 0xfc1   :  { %6138 = vmatpush1.bf16.msra.mxu0 %v7299_v32  ;;  %6165 = vmatpush3.bf16.msra.mxu1 %v7337_v36 }
 0xfc2   :  { %6140 = vmatprep.subr.bf16.mxu0 %v7302_v9  ;;  %6166 = vmatprep.subr.bf16.mxu1 %v6631_v0 }
 0xfc5   :  { %6142 = vmatpush1.bf16.msra.mxu0 %v7304_v14  ;;  %6168 = vmatpush3.bf16.msra.mxu1 %v7340_v47 }
 0xfc6   :  { %6144 = vmatprep.subr.bf16.mxu0 %v7308_v58  ;;  %6169 = vmatprep.subr.bf16.mxu1 %v6631_v0 }
 0xfc9   :  { %6146 = vmatpush1.bf16.msra.mxu0 %v7310_v38  ;;  %6171 = vmatpush3.bf16.msra.mxu1 %v7344_v4 }
 0xfca   :  { %6148 = vmatprep.subr.bf16.mxu0 %v7317_v61  ;;  %6172 = vmatprep.subr.bf16.mxu1 %v6631_v0 }
 0xfcd   :  { %6150 = vmatpush1.bf16.msra.mxu0 %v7320_v55  ;;  %6174 = vmatpush3.bf16.msra.mxu1 %v7348_v18 }
 0xfce   :  { %6176 = vmatprep.subr.bf16.mxu0 %v7272_v31  ;;  %6207 = vmatprep.subr.bf16.mxu1 %v6631_v0 }
0x1083   :  { %v3503_v5 = vpop.f32.mrb[30].mxu0  ;;  %v3574_v48 = vpop.f32.mrb[66].mxu1 }
0x1084   :  { %v6292_v10 = vadd.f32 %v7426_v39, %v3503_v5  ;;  %v3505_v45 = vpop.f32.mrb[31].mxu0  ;;  %v5040_v41 = vpop.f32.mrb[67].mxu1  ;;  %v3575_v31 = vadd.f32 %v3574_v48, %v7433_v6  ;;  %v2325_v48 = vadd.f32 %v7422_v22, %v7436_v37 }
0x1085   :  { %v6294_v51 = vadd.f32 %v7428_v8, %v3505_v45 }
0x1086   :  { %v4001_v20 = vmul.f32 -1.442695, %v6292_v10 }
0x1087   :  { %v4002_v54 = vmul.f32 -1.442695, %v6294_v51 }
0x1088   :  { %6500 = vpow2.f32 %v4001_v20 }
0x1089   :  { %6502 = vpow2.f32 %v4002_v54 }
0x1092   :  { %v6501_v56 = vpop.eup %6500 }
0x1093   :  { %v3585_v44 = vadd.f32 1.0, %v6501_v56  ;;  %v6503_v60 = vpop.eup %6502 }
0x1094   :  { %v3592_v19 = vadd.f32 1.0, %v6503_v60 }
0x1095   :  { %6504 = vrcp.f32 %v3585_v44 }
0x1096   :  { %6506 = vrcp.f32 %v3592_v19 }
0x109f   :  { %v6505_v3 = vpop.eup %6504 }
0x10a0   :  { %v3595_v7 = vmul.f32 %v6505_v3, %v3575_v31  ;;  %v6507_v46 = vpop.eup %6506 }
0x10a1   :  { %v3598_v50 = vsub.f32 1.0, %v6507_v46  ;;  %v3600_v25 = vmul.f32 %v6507_v46, %v7671_v40 }
0x10a2   :  { %v3596_v26 = vadd.f32 %v3595_v7, %v2315_v17 }
0x10a4   :  { %6508 = vtanh.f32 %v3596_v26 }
0x10ae   :  { %v6509_v57 = vpop.eup %6508 }
0x10af   :  { %v3599_v15 = vmul.f32 %v6509_v57, %v3598_v50 }
0x10b1   :  { %v3601_v34 = vadd.f32 %v3600_v25, %v3599_v15 }
0x10b3   :  { %3604 = vst [vmem:[#allocation11 + $0x30] sm:$0xff] %v3601_v34  ;;  %3671 = vmatmul.mubr.f32.vlgmr.msra.gmra.mrb[32].mxu0 %v3601_v34  ;;  %5074 = vmatmul.mubr.f32.vlgmr.msra.gmra.mrb[68].mxu1 %v3601_v34 }
0x10b4   :  { %6178 = vmatpush1.bf16.msra.mxu0 %v7274_v13  ;;  %6209 = vmatpush3.bf16.msra.mxu1 %v7313_v43 }
0x10b5   :  { %6180 = vmatprep.subr.bf16.mxu0 %v7278_v16  ;;  %6210 = vmatprep.subr.bf16.mxu1 %v6631_v0 }
0x10b6   :  { %3839 = vmatprep.mubr.f32.mxu0 %v6632_v1  ;;  %5108 = vmatprep.mubr.msk.f32.mxu1 %vm6633_vm0, %v6632_v1 }
0x10b8   :  { %6182 = vmatpush1.bf16.msra.mxu0 %v7280_v27  ;;  %6212 = vmatpush3.bf16.msra.mxu1 %v7323_v59 }
0x10b9   :  { %6184 = vmatprep.subr.bf16.mxu0 %v7284_v42  ;;  %6213 = vmatprep.subr.bf16.mxu1 %v6631_v0 }
0x10bc   :  { %6186 = vmatpush1.bf16.msra.mxu0 %v7286_v52  ;;  %6215 = vmatpush3.bf16.msra.mxu1 %v7329_v24 }
0x10bd   :  { %6188 = vmatprep.subr.bf16.mxu0 %v7290_v62  ;;  %6216 = vmatprep.subr.bf16.mxu1 %v6631_v0 }
0x10c0   :  { %6190 = vmatpush1.bf16.msra.mxu0 %v7292_v11  ;;  %6218 = vmatpush3.bf16.msra.mxu1 %v7333_v63 }
0x10c1   :  { %6192 = vmatprep.subr.bf16.mxu0 %v7296_v21  ;;  %6219 = vmatprep.subr.bf16.mxu1 %v6631_v0 }
0x10c4   :  { %6194 = vmatpush1.bf16.msra.mxu0 %v7299_v32  ;;  %6221 = vmatpush3.bf16.msra.mxu1 %v7337_v36 }
0x10c5   :  { %6196 = vmatprep.subr.bf16.mxu0 %v7302_v9  ;;  %6222 = vmatprep.subr.bf16.mxu1 %v6631_v0 }
0x10c8   :  { %6198 = vmatpush1.bf16.msra.mxu0 %v7304_v14  ;;  %6224 = vmatpush3.bf16.msra.mxu1 %v7340_v47 }
0x10c9   :  { %6200 = vmatprep.subr.bf16.mxu0 %v7308_v58  ;;  %6225 = vmatprep.subr.bf16.mxu1 %v6631_v0 }
0x10cc   :  { %6202 = vmatpush1.bf16.msra.mxu0 %v7310_v38  ;;  %6227 = vmatpush3.bf16.msra.mxu1 %v7344_v4  ;;  %v2320_v38 = vadd.f32 %v7388_v28, %v7436_v37 }
0x10cd   :  { %6204 = vmatprep.subr.bf16.mxu0 %v7317_v61  ;;  %6228 = vmatprep.subr.bf16.mxu1 %v6631_v0 }
0x10d0   :  { %6206 = vmatpush1.bf16.msra.mxu0 %v7320_v55  ;;  %6230 = vmatpush3.bf16.msra.mxu1 %v7348_v18 }
0x1186   :  { %v3672_v1 = vpop.f32.mrb[32].mxu0  ;;  %v3743_v13 = vpop.f32.mrb[68].mxu1 }
0x1187   :  { %v6296_v16 = vadd.f32 %v7426_v39, %v3672_v1  ;;  %v3674_v27 = vpop.f32.mrb[33].mxu0  ;;  %v5075_v42 = vpop.f32.mrb[69].mxu1  ;;  %v3744_v14 = vadd.f32 %v3743_v13, %v7433_v6 }
0x1188   :  { %v6298_v62 = vadd.f32 %v7428_v8, %v3674_v27 }
0x1189   :  { %v4003_v52 = vmul.f32 -1.442695, %v6296_v16 }
0x118a   :  { %v4004_v11 = vmul.f32 -1.442695, %v6298_v62 }
0x118b   :  { %6510 = vpow2.f32 %v4003_v52 }
0x118c   :  { %6512 = vpow2.f32 %v4004_v11 }
0x1195   :  { %v6511_v21 = vpop.eup %6510 }
0x1196   :  { %v3754_v32 = vadd.f32 1.0, %v6511_v21  ;;  %v6513_v0 = vpop.eup %6512 }
0x1197   :  { %v3761_v9 = vadd.f32 1.0, %v6513_v0 }
0x1198   :  { %6514 = vrcp.f32 %v3754_v32 }
0x1199   :  { %6516 = vrcp.f32 %v3761_v9 }
0x11a2   :  { %v6515_v58 = vpop.eup %6514 }
0x11a3   :  { %v3764_v43 = vmul.f32 %v6515_v58, %v3744_v14  ;;  %v6517_v55 = vpop.eup %6516 }
0x11a4   :  { %v3767_v59 = vsub.f32 1.0, %v6517_v55  ;;  %v3769_v36 = vmul.f32 %v6517_v55, %v3601_v34 }
0x11a5   :  { %v3765_v61 = vadd.f32 %v3764_v43, %v2320_v38 }
0x11a7   :  { %6518 = vtanh.f32 %v3765_v61 }
0x11b1   :  { %v6519_v24 = vpop.eup %6518 }
0x11b2   :  { %v3768_v63 = vmul.f32 %v6519_v24, %v3767_v59 }
0x11b4   :  { %v3770_v47 = vadd.f32 %v3769_v36, %v3768_v63 }
0x11b6   :  { %3773 = vst [vmem:[#allocation11 + $0x38] sm:$0xff] %v3770_v47  ;;  %3840 = vmatmul.mubr.f32.vlgmr.msra.gmra.mrb[34].mxu0 %v3770_v47  ;;  %5109 = vmatmul.mubr.f32.vlgmr.msra.gmra.mrb[70].mxu1 %v3770_v47 }
0x1289   :  { %v3841_v4 = vpop.f32.mrb[34].mxu0  ;;  %v3912_v18 = vpop.f32.mrb[70].mxu1 }
0x128a   :  { %v6300_v33 = vadd.f32 %v7426_v39, %v3841_v4  ;;  %v3843_v35 = vpop.f32.mrb[35].mxu0  ;;  %v5110_v12 = vpop.f32.mrb[71].mxu1  ;;  %v3913_v40 = vadd.f32 %v3912_v18, %v7433_v6 }
0x128b   :  { %v6302_v2 = vadd.f32 %v7428_v8, %v3843_v35 }
0x128c   :  { %v4005_v28 = vmul.f32 -1.442695, %v6300_v33 }
0x128d   :  { %v4006_v29 = vmul.f32 -1.442695, %v6302_v2 }
0x128e   :  { %6520 = vpow2.f32 %v4005_v28 }
0x128f   :  { %6522 = vpow2.f32 %v4006_v29 }
0x1298   :  { %v6521_v30 = vpop.eup %6520 }
0x1299   :  { %v3923_v23 = vadd.f32 1.0, %v6521_v30  ;;  %v6523_v53 = vpop.eup %6522 }
0x129a   :  { %v3930_v49 = vadd.f32 1.0, %v6523_v53 }
0x129b   :  { %6524 = vrcp.f32 %v3923_v23 }
0x129c   :  { %6526 = vrcp.f32 %v3930_v49 }
0x12a5   :  { %v6525_v5 = vpop.eup %6524 }
0x12a6   :  { %v3933_v39 = vmul.f32 %v6525_v5, %v3913_v40  ;;  %v6527_v45 = vpop.eup %6526 }
0x12a7   :  { %v3936_v8 = vsub.f32 1.0, %v6527_v45  ;;  %v3938_v51 = vmul.f32 %v6527_v45, %v3770_v47 }
0x12a8   :  { %v3934_v10 = vadd.f32 %v3933_v39, %v2325_v48 }
0x12aa   :  { %6528 = vtanh.f32 %v3934_v10 }
0x12b4   :  { %v6529_v41 = vpop.eup %6528 }
0x12b5   :  { %v3937_v20 = vmul.f32 %v6529_v41, %v3936_v8 }
0x12b7   :  { %v3939_v54 = vadd.f32 %v3938_v51, %v3937_v20 }
0x12b9   :  { %3942 = vst [vmem:[#allocation11 + $0x40] sm:$0xff] %v3939_v54 }
0x12ba   :  { %6607 = shalt.err (!%p6604_p0)
}
0x12bb   :  { %s6608_s16 = scalar_lea.hbm %s7780_s5, 1152 }
0x12bc   :  { %p6609_p1 = scmp.ne.s32.totalorder %s7780_s5, %s6608_s16  ;;  %p6612_p2 = scmp.lt.u32.totalorder %s6608_s16, %s7780_s5 }
0x12be   :  { %p6614_p3 = pnand %p6612_p2, %p6609_p1 }
0x12c0   :  { %6617 = shalt.err (!%p6614_p3)
}
0x12c1   :  { %3954 = dma.vmem_to_hbm [thread:$0]  %s3949_s4, 1152, %s7780_s5, [#allocation7], %s6628_s1, %s6628_s1, %s6629_s17  }
0x12c2   :  { %6622 = dma.done.wait [#allocation7], 1152  }
0x12c3   :  { %6623 = vsyncadd [#allocation7], 4294966144 }
0x12c4   :  { %3958 = vsyncpa [#allocation6], 1 }
0x12c5   :  { %3959 = vsyncpa [#allocation9], 1 }
0x12c6   :  { %3960 = vsyncpa [#allocation7], 1 }

</bundles_post_ra>
